<compile_context>
chip_gen: v5e
topology: v5e:2x2
jax: 0.10.0
libtpu: 0.0.40
codegen_flags: <defaults>
</compile_context>

<pallas_src>
import functools
import inspect

import jax
import jax.numpy as jnp
from jax import lax
from jax.experimental import pallas as pl
from jax.experimental.pallas import tpu as pltpu

EPS = 1e-6
BF16 = jnp.bfloat16
LANE = 128


def _round_up(n, m):
    return ((n + m - 1) // m) * m


def _simple_rms_norm(x, d, eps=EPS):
    # SimpleRMSNorm: x / (||x||_2 * d^{-1/2} + eps), no learned parameters.
    # `d` is the TRUE feature width; padded lanes are zero so the L2 norm is
    # unchanged by padding and padded lanes stay zero in the output.
    norm = jnp.sqrt(jnp.sum(x * x, axis=-1, keepdims=True))
    return x / (norm * (d ** -0.5) + eps)


def _silu(x):
    return x * jax.nn.sigmoid(x)


def _tpu_generation():
    try:
        kind = jax.devices()[0].device_kind.lower()
    except Exception:
        return None
    for g in ("v7", "v6", "v5"):
        if g in kind:
            return g
    return None


def _pick_seq_tile(n, target):
    t = min(target, n)
    t -= t % 8
    while t > 8 and n % t:
        t -= 8
    return max(t, 8)


def _weight_pipeline_mode():
    # Explicit feature check for BlockSpec(pipeline_mode=...) support; no broad
    # try/except around the actual pallas_call, so real errors (VMEM OOM etc.)
    # propagate loudly.
    if not hasattr(pl, "Buffered"):
        return None
    try:
        params = inspect.signature(pl.BlockSpec).parameters
    except (TypeError, ValueError):
        return None
    if "pipeline_mode" not in params:
        return None
    return pl.Buffered(1)


def _decoder_layer_kernel(x_ref, wq_ref, wk_ref, wv_ref, wu_ref, wo_ref,
                          w12_ref, w3_ref, o_ref, kv_ref, *,
                          num_heads, head_dim_p, embed_dim, hidden_dim,
                          glu_dim_p):
    c = pl.program_id(1)          # sequence-chunk index (carried axis)
    tq = x_ref.shape[0]
    hdp = head_dim_p

    # Reset the per-head KV recurrence state at the start of every sequence.
    @pl.when(c == 0)
    def _():
        kv_ref[...] = jnp.zeros_like(kv_ref)

    x = x_ref[...].astype(jnp.float32)        # (TQ, Dp)

    # ---------------- token_norm ----------------
    t = _simple_rms_norm(x, embed_dim)
    tb = t.astype(BF16)

    # ------------- NormLinearAttention: projections -------------
    q = _silu(jnp.dot(tb, wq_ref[...], preferred_element_type=jnp.float32))
    k = _silu(jnp.dot(tb, wk_ref[...], preferred_element_type=jnp.float32))
    v = jnp.dot(tb, wv_ref[...], preferred_element_type=jnp.float32)
    # (the `u` gate projection is computed after the attention loop to keep its
    #  (TQ, Ep) f32 value out of the loop's live range)

    # Cast once; per-head slices below reuse these bf16 arrays.
    qb = q.astype(BF16)
    kb = k.astype(BF16)
    vb = v.astype(BF16)

    # Block-causal boolean mask for the diagonal (intra-chunk) block, shared by
    # all heads.
    row = lax.broadcasted_iota(jnp.int32, (tq, tq), 0)
    col = lax.broadcasted_iota(jnp.int32, (tq, tq), 1)
    causal = row >= col

    # ---- chunked-recurrent masked linear attention (per head, static loop).
    # head_dim is padded to 128, so every slice below is lane-aligned (no
    # masked stores / cross-lane relayouts); outputs stay in registers.
    outs = []
    for h in range(num_heads):
        sl = slice(h * hdp, (h + 1) * hdp)
        qhb, khb, vhb = qb[:, sl], kb[:, sl], vb[:, sl]
        # intra-chunk: (q k^T, causally masked) v   -- NT contraction, no .T
        s = lax.dot_general(qhb, khb, (((1,), (1,)), ((), ())),
                            preferred_element_type=jnp.float32)
        s = jnp.where(causal, s, 0.0)
        intra = jnp.dot(s.astype(BF16), vhb, preferred_element_type=jnp.float32)
        # inter-chunk: q @ S with S kept in f32 (S grows with sequence length
        # when slope_rate is None; bf16-casting it would dominate the error).
        inter = jnp.dot(q[:, sl], kv_ref[h],
                        preferred_element_type=jnp.float32)
        outs.append(intra + inter)
        # state update: S += k^T v      -- TN contraction, no explicit .T
        kv_ref[h] = kv_ref[h] + lax.dot_general(
            khb, vhb, (((0,), (0,)), ((), ())),
            preferred_element_type=jnp.float32)

    attn = jnp.concatenate(outs, axis=-1)     # (TQ, Ep) == "b h n d -> b n (h d)"
    u = jnp.dot(tb, wu_ref[...], preferred_element_type=jnp.float32)
    attn = u * _simple_rms_norm(attn, hidden_dim)   # inner norm + output gate
    attn = jnp.dot(attn.astype(BF16), wo_ref[...],
                   preferred_element_type=jnp.float32)

    x1 = x + attn                             # residual connection #1

    # ------------- channel_norm + GLU channel_mixer -------------
    t2 = _simple_rms_norm(x1, embed_dim)
    o12 = jnp.dot(t2.astype(BF16), w12_ref[...],
                  preferred_element_type=jnp.float32)
    # glu_dim is padded to a multiple of 128, so this split is lane-aligned.
    g = o12[:, :glu_dim_p] * o12[:, glu_dim_p:]
    g = jnp.dot(g.astype(BF16), w3_ref[...], preferred_element_type=jnp.float32)

    o_ref[...] = (x1 + g).astype(o_ref.dtype)  # residual connection #2


def transnormer_decoder_layer(x, params, *, num_heads, seq_tile=None,
                              vmem_limit_bytes=None):
    """Fused TransnormerDecoderLayer forward.

    params = (w_qkvu (D,4E), w_out (E,D), w1 (D,G), w2 (D,G), w3 (G,D)),
    all nn.Linear weights pre-transposed to (in_features, out_features).
    """
    B, N, D = x.shape
    w_qkvu, w_out, w1, w2, w3 = params
    E = w_qkvu.shape[-1] // 4
    G = w1.shape[-1]
    assert E % num_heads == 0
    hd = E // num_heads

    # ---- generation-aware tile / VMEM-budget defaults ----
    gen = _tpu_generation()
    if seq_tile is None:
        target = 128 if gen in (None, "v5") else 256     # v5e MXU is 128-wide
        seq_tile = _pick_seq_tile(N, target)
    if vmem_limit_bytes is None:
        vmem_limit_bytes = {"v5": 32, "v6": 64, "v7": 48}.get(gen, 32) << 20
    assert N % seq_tile == 0 and seq_tile % 8 == 0
    n_chunks = N // seq_tile

    # ---- wrapper-side padding: D / head_dim / glu_dim up to 128 lanes so every
    # matmul, per-head slice and output store is lane-dense. True dims (D, E)
    # are passed into the kernel for the norms only.
    Dp = _round_up(D, LANE)
    hdp = _round_up(hd, LANE)
    Ep = num_heads * hdp
    Gp = _round_up(G, LANE)

    def pad2(w, r, c):
        return jnp.pad(w, ((0, r - w.shape[0]), (0, c - w.shape[1])))

    def pad_head_cols(w):   # (D, E) -> (Dp, H*hdp), head blocks lane-aligned
        w = w.reshape(D, num_heads, hd)
        w = jnp.pad(w, ((0, Dp - D), (0, 0), (0, hdp - hd)))
        return w.reshape(Dp, Ep)

    wq, wk, wv, wu = jnp.split(w_qkvu, 4, axis=-1)
    wq, wk, wv, wu = (pad_head_cols(w).astype(BF16) for w in (wq, wk, wv, wu))
    wo = jnp.pad(w_out.reshape(num_heads, hd, D),
                 ((0, 0), (0, hdp - hd), (0, Dp - D))
                 ).reshape(Ep, Dp).astype(BF16)
    w12 = jnp.concatenate([pad2(w1, Dp, Gp), pad2(w2, Dp, Gp)],
                          axis=-1).astype(BF16)
    w3p = pad2(w3, Gp, Dp).astype(BF16)
    weights = (wq, wk, wv, wu, wo, w12, w3p)

    xp = jnp.pad(x, ((0, 0), (0, 0), (0, Dp - D))) if Dp != D else x

    kernel = functools.partial(
        _decoder_layer_kernel, num_heads=num_heads, head_dim_p=hdp,
        embed_dim=D, hidden_dim=E, glu_dim_p=Gp)

    # Advisory cost hint for the XLA scheduler.
    flops = (2 * B * N * (Dp * 4 * Ep + Ep * Dp + Dp * 2 * Gp + Gp * Dp)
             + 2 * B * num_heads * N * (2 * seq_tile * hdp + 2 * hdp * hdp))
    cost = pl.CostEstimate(
        flops=flops,
        transcendentals=2 * B * N * Ep,
        bytes_accessed=2 * B * N * Dp * x.dtype.itemsize
                       + 2 * sum(int(w.size) for w in weights))

    def act_spec():
        return pl.BlockSpec((pl.Squeezed(), seq_tile, Dp),
                            lambda b, c: (b, c, 0))

    def build(weight_pipeline_mode):
        wkw = ({} if weight_pipeline_mode is None
               else {"pipeline_mode": weight_pipeline_mode})

        def wspec(w):
            return pl.BlockSpec(w.shape, lambda b, c: (0, 0), **wkw)

        return pl.pallas_call(
            kernel,
            out_shape=jax.ShapeDtypeStruct((B, N, Dp), x.dtype),
            grid=(B, n_chunks),
            in_specs=[act_spec()] + [wspec(w) for w in weights],
            out_specs=act_spec(),
            scratch_shapes=[
                pltpu.VMEM((num_heads, hdp, hdp), jnp.float32),  # KV recurrence
            ],
            compiler_params=pltpu.CompilerParams(
                dimension_semantics=("parallel", "arbitrary"),
                vmem_limit_bytes=vmem_limit_bytes),
            cost_estimate=cost,
        )

    out = None
    wmode = _weight_pipeline_mode()
    if wmode is not None:
        try:
            # Grid-invariant weights -> single-buffered windows (saves VMEM).
            out = build(wmode)(xp, *weights)
        except (NotImplementedError, TypeError, ValueError):
            # This build advertises pipeline_mode but its pallas_call pipeline
            # rejects single-buffered windows; fall back to the default windows.
            # Anything else (e.g. a VMEM OOM XlaRuntimeError) propagates loudly.
            out = None
    if out is None:
        out = build(None)(xp, *weights)

    return out[..., :D] if Dp != D else out


if __name__ == "__main__":
    key = jax.random.PRNGKey(0)
    B, N = 2, 256         # batch, sequence length
    D = 64                # decoder_embed_dim
    E = 64                # hidden_dim of NormLinearAttention
    H = 2                 # decoder_attention_heads
    G = 128               # glu_dim
    TQ = 64               # sequence chunk size -> 4 chunks (exercises recurrence)

    ks = jax.random.split(key, 6)
    x = jax.random.normal(ks[0], (B, N, D), jnp.float32)
    # nn.Linear weights (bias=False), stored pre-transposed as (in, out)
    w_qkvu = jax.random.normal(ks[1], (D, 4 * E), jnp.float32) * (D ** -0.5)
    w_out = jax.random.normal(ks[2], (E, D), jnp.float32) * (E ** -0.5)
    w1 = jax.random.normal(ks[3], (D, G), jnp.float32) * (D ** -0.5)
    w2 = jax.random.normal(ks[4], (D, G), jnp.float32) * (D ** -0.5)
    w3 = jax.random.normal(ks[5], (G, D), jnp.float32) * (G ** -0.5)

    out = transnormer_decoder_layer(
        x, (w_qkvu, w_out, w1, w2, w3), num_heads=H, seq_tile=TQ)
    out = jax.block_until_ready(out)

    # Pure-JAX reference: full (N,N) masked linear attention in f32 (HIGHEST
    # precision) using the same bf16-rounded weights the kernel consumes.
    def ref(x):
        hp = lax.Precision.HIGHEST
        rb = lambda w: w.astype(jnp.bfloat16).astype(jnp.float32)
        wqkvu_r, wout_r, w1_r, w2_r, w3_r = map(rb, (w_qkvu, w_out, w1, w2, w3))
        t = _simple_rms_norm(x, D)
        qkvu = jnp.dot(t, wqkvu_r, precision=hp)
        q, k, v, u = jnp.split(qkvu, 4, axis=-1)
        q, k = _silu(q), _silu(k)
        hd = E // H
        qh = q.reshape(B, N, H, hd).transpose(0, 2, 1, 3)
        kh = k.reshape(B, N, H, hd).transpose(0, 2, 1, 3)
        vh = v.reshape(B, N, H, hd).transpose(0, 2, 1, 3)
        mask = jnp.tril(jnp.ones((N, N), jnp.float32))
        energy = jnp.einsum("bhnd,bhmd->bhnm", qh, kh, precision=hp) * mask
        o = jnp.einsum("bhnm,bhmd->bhnd", energy, vh, precision=hp)
        o = o.transpose(0, 2, 1, 3).reshape(B, N, E)
        o = u * _simple_rms_norm(o, E)
        x1 = x + jnp.dot(o, wout_r, precision=hp)
        t2 = _simple_rms_norm(x1, D)
        return x1 + jnp.dot(jnp.dot(t2, w1_r, precision=hp)
                            * jnp.dot(t2, w2_r, precision=hp), w3_r, precision=hp)

    r = ref(x)
    err = float(jnp.max(jnp.abs(out - r)))
    scale = float(jnp.max(jnp.abs(r)))
    # bf16 matmul operands (f32 accumulation) -> scale-relative tolerance.
    assert err <= 4e-2 * scale + 4e-2, (err, scale)
    print("KERNEL_OK")
</pallas_src>

<mosaic_0001>
module attributes {stable_mosaic.version = 11 : i64} {
  func.func @_decoder_layer_kernel(%arg0: i32, %arg1: i32, %arg2: memref<1x64x128xf32, #tpu.memory_space<vmem>>, %arg3: memref<128x256xbf16, #tpu.memory_space<vmem>>, %arg4: memref<128x256xbf16, #tpu.memory_space<vmem>>, %arg5: memref<128x256xbf16, #tpu.memory_space<vmem>>, %arg6: memref<128x256xbf16, #tpu.memory_space<vmem>>, %arg7: memref<256x128xbf16, #tpu.memory_space<vmem>>, %arg8: memref<128x256xbf16, #tpu.memory_space<vmem>>, %arg9: memref<128x128xbf16, #tpu.memory_space<vmem>>, %arg10: memref<1x64x128xf32, #tpu.memory_space<vmem>>, %arg11: memref<2x128x128xf32, #tpu.memory_space<vmem>>) attributes {dimension_semantics = [#tpu.dimension_semantics<parallel>, #tpu.dimension_semantics<arbitrary>], iteration_bounds = array<i64: 2, 4>, scalar_prefetch = 0 : i64, scratch_operands = 1 : i64, tpu.core_type = #tpu.core_type<tc>, window_params = [{transform_indices = @transform_0, window_bounds = array<i64: 1, 64, 128>}, {pipeline_mode = #tpu.pipeline_mode<synchronous>, transform_indices = @transform_1, window_bounds = array<i64: 128, 256>}, {pipeline_mode = #tpu.pipeline_mode<synchronous>, transform_indices = @transform_2, window_bounds = array<i64: 128, 256>}, {pipeline_mode = #tpu.pipeline_mode<synchronous>, transform_indices = @transform_3, window_bounds = array<i64: 128, 256>}, {pipeline_mode = #tpu.pipeline_mode<synchronous>, transform_indices = @transform_4, window_bounds = array<i64: 128, 256>}, {pipeline_mode = #tpu.pipeline_mode<synchronous>, transform_indices = @transform_5, window_bounds = array<i64: 256, 128>}, {pipeline_mode = #tpu.pipeline_mode<synchronous>, transform_indices = @transform_6, window_bounds = array<i64: 128, 256>}, {pipeline_mode = #tpu.pipeline_mode<synchronous>, transform_indices = @transform_7, window_bounds = array<i64: 128, 128>}, {transform_indices = @transform_8, window_bounds = array<i64: 1, 64, 128>}]} {
    %c0_i32 = arith.constant 0 : i32
    %0 = arith.cmpi eq, %arg1, %c0_i32 : i32
    %1 = arith.extui %0 : i1 to i32
    %c0_i32_0 = arith.constant 0 : i32
    %2 = arith.cmpi ne, %1, %c0_i32_0 : i32
    scf.if %2 {
      %cst_64 = arith.constant 0.000000e+00 : f32
      %121 = vector.broadcast %cst_64 : f32 to vector<2x128x128xf32>
      %c0_65 = arith.constant 0 : index
      %c0_66 = arith.constant 0 : index
      %c0_67 = arith.constant 0 : index
      %122 = vector.load %arg11[%c0_65, %c0_66, %c0_67] : memref<2x128x128xf32, #tpu.memory_space<vmem>>, vector<2x128x128xf32>
      tpu.vector_store %arg11[%c0_65, %c0_66, %c0_67], %121 {strides = array<i32>} : memref<2x128x128xf32, #tpu.memory_space<vmem>>, vector<2x128x128xf32>,
    } else {
    }
    %c0 = arith.constant 0 : index
    %c0_1 = arith.constant 0 : index
    %c0_2 = arith.constant 0 : index
    %3 = vector.load %arg2[%c0, %c0_1, %c0_2] : memref<1x64x128xf32, #tpu.memory_space<vmem>>, vector<1x64x128xf32>
    %4 = vector.shape_cast %3 : vector<1x64x128xf32> to vector<64x128xf32>
    %5 = arith.mulf %4, %4 : vector<64x128xf32>
    %cst = arith.constant dense<0.000000e+00> : vector<64xf32>
    %6 = vector.multi_reduction <add>, %5, %cst [1] : vector<64x128xf32> to vector<64xf32>
    %7 = vector.shape_cast %6 : vector<64xf32> to vector<64x1xf32>
    %8 = math.sqrt %7 : vector<64x1xf32>
    %cst_3 = arith.constant 1.250000e-01 : f32
    %9 = vector.broadcast %cst_3 : f32 to vector<64x1xf32>
    %10 = arith.mulf %8, %9 : vector<64x1xf32>
    %cst_4 = arith.constant 9.99999997E-7 : f32
    %11 = vector.broadcast %cst_4 : f32 to vector<64x1xf32>
    %12 = arith.addf %10, %11 : vector<64x1xf32>
    %13 = vector.broadcast %12 : vector<64x1xf32> to vector<64x128xf32>
    %14 = arith.divf %4, %13 : vector<64x128xf32>
    %15 = arith.truncf %14 : vector<64x128xf32> to vector<64x128xbf16>
    %c0_5 = arith.constant 0 : index
    %c0_6 = arith.constant 0 : index
    %16 = vector.load %arg3[%c0_5, %c0_6] : memref<128x256xbf16, #tpu.memory_space<vmem>>, vector<128x256xbf16>
    %cst_7 = arith.constant dense<0.000000e+00> : vector<64x256xf32>
    %17 = tpu.matmul %15, %16, %cst_7 {dimension_numbers = #tpu.dot_dimension_numbers<[1], [0], [0], [1], [0, 0, 1, 1], [], []>} : vector<64x128xbf16>, vector<128x256xbf16>, vector<64x256xf32> -> vector<64x256xf32>
    %18 = arith.negf %17 : vector<64x256xf32>
    %19 = math.exp %18 : vector<64x256xf32>
    %cst_8 = arith.constant 1.000000e+00 : f32
    %20 = vector.broadcast %cst_8 : f32 to vector<64x256xf32>
    %21 = arith.addf %20, %19 : vector<64x256xf32>
    %22 = arith.divf %20, %21 : vector<64x256xf32>
    %23 = arith.mulf %17, %22 : vector<64x256xf32>
    %c0_9 = arith.constant 0 : index
    %c0_10 = arith.constant 0 : index
    %24 = vector.load %arg4[%c0_9, %c0_10] : memref<128x256xbf16, #tpu.memory_space<vmem>>, vector<128x256xbf16>
    %cst_11 = arith.constant dense<0.000000e+00> : vector<64x256xf32>
    %25 = tpu.matmul %15, %24, %cst_11 {dimension_numbers = #tpu.dot_dimension_numbers<[1], [0], [0], [1], [0, 0, 1, 1], [], []>} : vector<64x128xbf16>, vector<128x256xbf16>, vector<64x256xf32> -> vector<64x256xf32>
    %26 = arith.negf %25 : vector<64x256xf32>
    %27 = math.exp %26 : vector<64x256xf32>
    %cst_12 = arith.constant 1.000000e+00 : f32
    %28 = vector.broadcast %cst_12 : f32 to vector<64x256xf32>
    %29 = arith.addf %28, %27 : vector<64x256xf32>
    %30 = arith.divf %28, %29 : vector<64x256xf32>
    %31 = arith.mulf %25, %30 : vector<64x256xf32>
    %c0_13 = arith.constant 0 : index
    %c0_14 = arith.constant 0 : index
    %32 = vector.load %arg5[%c0_13, %c0_14] : memref<128x256xbf16, #tpu.memory_space<vmem>>, vector<128x256xbf16>
    %cst_15 = arith.constant dense<0.000000e+00> : vector<64x256xf32>
    %33 = tpu.matmul %15, %32, %cst_15 {dimension_numbers = #tpu.dot_dimension_numbers<[1], [0], [0], [1], [0, 0, 1, 1], [], []>} : vector<64x128xbf16>, vector<128x256xbf16>, vector<64x256xf32> -> vector<64x256xf32>
    %34 = arith.truncf %23 : vector<64x256xf32> to vector<64x256xbf16>
    %35 = arith.truncf %31 : vector<64x256xf32> to vector<64x256xbf16>
    %36 = arith.truncf %33 : vector<64x256xf32> to vector<64x256xbf16>
    %37 = tpu.iota {dimensions = array<i32: 0>} : vector<64x64xi32>
    %38 = tpu.iota {dimensions = array<i32: 1>} : vector<64x64xi32>
    %39 = arith.cmpi sge, %37, %38 : vector<64x64xi32>
    %40 = vector.extract_strided_slice %34 {offsets = [0, 0], sizes = [64, 128], strides = [1, 1]} : vector<64x256xbf16> to vector<64x128xbf16>
    %41 = vector.extract_strided_slice %35 {offsets = [0, 0], sizes = [64, 128], strides = [1, 1]} : vector<64x256xbf16> to vector<64x128xbf16>
    %42 = vector.extract_strided_slice %36 {offsets = [0, 0], sizes = [64, 128], strides = [1, 1]} : vector<64x256xbf16> to vector<64x128xbf16>
    %cst_16 = arith.constant dense<0.000000e+00> : vector<64x64xf32>
    %43 = tpu.matmul %40, %41, %cst_16 {dimension_numbers = #tpu.dot_dimension_numbers<[1], [1], [0], [0], [0, 0, 1, 0], [], []>} : vector<64x128xbf16>, vector<64x128xbf16>, vector<64x64xf32> -> vector<64x64xf32>
    %cst_17 = arith.constant 0.000000e+00 : f32
    %44 = vector.broadcast %cst_17 : f32 to vector<64x64xf32>
    %45 = arith.select %39, %43, %44 : vector<64x64xi1>, vector<64x64xf32>
    %46 = arith.truncf %45 : vector<64x64xf32> to vector<64x64xbf16>
    %cst_18 = arith.constant dense<0.000000e+00> : vector<64x128xf32>
    %47 = tpu.matmul %46, %42, %cst_18 {dimension_numbers = #tpu.dot_dimension_numbers<[1], [0], [0], [1], [0, 0, 1, 1], [], []>} : vector<64x64xbf16>, vector<64x128xbf16>, vector<64x128xf32> -> vector<64x128xf32>
    %48 = vector.extract_strided_slice %23 {offsets = [0, 0], sizes = [64, 128], strides = [1, 1]} : vector<64x256xf32> to vector<64x128xf32>
    %c0_19 = arith.constant 0 : index
    %c0_20 = arith.constant 0 : index
    %c0_21 = arith.constant 0 : index
    %49 = vector.load %arg11[%c0_19, %c0_20, %c0_21] : memref<2x128x128xf32, #tpu.memory_space<vmem>>, vector<1x128x128xf32>
    %50 = vector.shape_cast %49 : vector<1x128x128xf32> to vector<128x128xf32>
    %cst_22 = arith.constant dense<0.000000e+00> : vector<64x128xf32>
    %51 = tpu.matmul %48, %50, %cst_22 {dimension_numbers = #tpu.dot_dimension_numbers<[1], [0], [0], [1], [0, 0, 1, 1], [], []>} : vector<64x128xf32>, vector<128x128xf32>, vector<64x128xf32> -> vector<64x128xf32>
    %52 = arith.addf %47, %51 : vector<64x128xf32>
    %c0_23 = arith.constant 0 : index
    %c0_24 = arith.constant 0 : index
    %c0_25 = arith.constant 0 : index
    %53 = vector.load %arg11[%c0_23, %c0_24, %c0_25] : memref<2x128x128xf32, #tpu.memory_space<vmem>>, vector<1x128x128xf32>
    %54 = vector.shape_cast %53 : vector<1x128x128xf32> to vector<128x128xf32>
    %cst_26 = arith.constant dense<0.000000e+00> : vector<128x128xf32>
    %55 = tpu.matmul %41, %42, %cst_26 {dimension_numbers = #tpu.dot_dimension_numbers<[0], [0], [1], [1], [0, 1, 1, 1], [], []>} : vector<64x128xbf16>, vector<64x128xbf16>, vector<128x128xf32> -> vector<128x128xf32>
    %56 = arith.addf %54, %55 : vector<128x128xf32>
    %c0_27 = arith.constant 0 : index
    %c0_28 = arith.constant 0 : index
    %c0_29 = arith.constant 0 : index
    %57 = vector.load %arg11[%c0_27, %c0_28, %c0_29] : memref<2x128x128xf32, #tpu.memory_space<vmem>>, vector<1x128x128xf32>
    %58 = vector.shape_cast %57 : vector<1x128x128xf32> to vector<128x128xf32>
    %59 = vector.shape_cast %56 : vector<128x128xf32> to vector<1x128x128xf32>
    tpu.vector_store %arg11[%c0_27, %c0_28, %c0_29], %59 {strides = array<i32>} : memref<2x128x128xf32, #tpu.memory_space<vmem>>, vector<1x128x128xf32>,
    %60 = vector.extract_strided_slice %34 {offsets = [0, 128], sizes = [64, 128], strides = [1, 1]} : vector<64x256xbf16> to vector<64x128xbf16>
    %61 = vector.extract_strided_slice %35 {offsets = [0, 128], sizes = [64, 128], strides = [1, 1]} : vector<64x256xbf16> to vector<64x128xbf16>
    %62 = vector.extract_strided_slice %36 {offsets = [0, 128], sizes = [64, 128], strides = [1, 1]} : vector<64x256xbf16> to vector<64x128xbf16>
    %cst_30 = arith.constant dense<0.000000e+00> : vector<64x64xf32>
    %63 = tpu.matmul %60, %61, %cst_30 {dimension_numbers = #tpu.dot_dimension_numbers<[1], [1], [0], [0], [0, 0, 1, 0], [], []>} : vector<64x128xbf16>, vector<64x128xbf16>, vector<64x64xf32> -> vector<64x64xf32>
    %cst_31 = arith.constant 0.000000e+00 : f32
    %64 = vector.broadcast %cst_31 : f32 to vector<64x64xf32>
    %65 = arith.select %39, %63, %64 : vector<64x64xi1>, vector<64x64xf32>
    %66 = arith.truncf %65 : vector<64x64xf32> to vector<64x64xbf16>
    %cst_32 = arith.constant dense<0.000000e+00> : vector<64x128xf32>
    %67 = tpu.matmul %66, %62, %cst_32 {dimension_numbers = #tpu.dot_dimension_numbers<[1], [0], [0], [1], [0, 0, 1, 1], [], []>} : vector<64x64xbf16>, vector<64x128xbf16>, vector<64x128xf32> -> vector<64x128xf32>
    %68 = vector.extract_strided_slice %23 {offsets = [0, 128], sizes = [64, 128], strides = [1, 1]} : vector<64x256xf32> to vector<64x128xf32>
    %c1 = arith.constant 1 : index
    %c0_33 = arith.constant 0 : index
    %c0_34 = arith.constant 0 : index
    %69 = vector.load %arg11[%c1, %c0_33, %c0_34] : memref<2x128x128xf32, #tpu.memory_space<vmem>>, vector<1x128x128xf32>
    %70 = vector.shape_cast %69 : vector<1x128x128xf32> to vector<128x128xf32>
    %cst_35 = arith.constant dense<0.000000e+00> : vector<64x128xf32>
    %71 = tpu.matmul %68, %70, %cst_35 {dimension_numbers = #tpu.dot_dimension_numbers<[1], [0], [0], [1], [0, 0, 1, 1], [], []>} : vector<64x128xf32>, vector<128x128xf32>, vector<64x128xf32> -> vector<64x128xf32>
    %72 = arith.addf %67, %71 : vector<64x128xf32>
    %c1_36 = arith.constant 1 : index
    %c0_37 = arith.constant 0 : index
    %c0_38 = arith.constant 0 : index
    %73 = vector.load %arg11[%c1_36, %c0_37, %c0_38] : memref<2x128x128xf32, #tpu.memory_space<vmem>>, vector<1x128x128xf32>
    %74 = vector.shape_cast %73 : vector<1x128x128xf32> to vector<128x128xf32>
    %cst_39 = arith.constant dense<0.000000e+00> : vector<128x128xf32>
    %75 = tpu.matmul %61, %62, %cst_39 {dimension_numbers = #tpu.dot_dimension_numbers<[0], [0], [1], [1], [0, 1, 1, 1], [], []>} : vector<64x128xbf16>, vector<64x128xbf16>, vector<128x128xf32> -> vector<128x128xf32>
    %76 = arith.addf %74, %75 : vector<128x128xf32>
    %c1_40 = arith.constant 1 : index
    %c0_41 = arith.constant 0 : index
    %c0_42 = arith.constant 0 : index
    %77 = vector.load %arg11[%c1_40, %c0_41, %c0_42] : memref<2x128x128xf32, #tpu.memory_space<vmem>>, vector<1x128x128xf32>
    %78 = vector.shape_cast %77 : vector<1x128x128xf32> to vector<128x128xf32>
    %79 = vector.shape_cast %76 : vector<128x128xf32> to vector<1x128x128xf32>
    tpu.vector_store %arg11[%c1_40, %c0_41, %c0_42], %79 {strides = array<i32>} : memref<2x128x128xf32, #tpu.memory_space<vmem>>, vector<1x128x128xf32>,
    %80 = tpu.concatenate %52, %72 in 1 : vector<64x128xf32>, vector<64x128xf32> -> vector<64x256xf32>
    %c0_43 = arith.constant 0 : index
    %c0_44 = arith.constant 0 : index
    %81 = vector.load %arg6[%c0_43, %c0_44] : memref<128x256xbf16, #tpu.memory_space<vmem>>, vector<128x256xbf16>
    %cst_45 = arith.constant dense<0.000000e+00> : vector<64x256xf32>
    %82 = tpu.matmul %15, %81, %cst_45 {dimension_numbers = #tpu.dot_dimension_numbers<[1], [0], [0], [1], [0, 0, 1, 1], [], []>} : vector<64x128xbf16>, vector<128x256xbf16>, vector<64x256xf32> -> vector<64x256xf32>
    %83 = arith.mulf %80, %80 : vector<64x256xf32>
    %cst_46 = arith.constant dense<0.000000e+00> : vector<64xf32>
    %84 = vector.multi_reduction <add>, %83, %cst_46 [1] : vector<64x256xf32> to vector<64xf32>
    %85 = vector.shape_cast %84 : vector<64xf32> to vector<64x1xf32>
    %86 = math.sqrt %85 : vector<64x1xf32>
    %cst_47 = arith.constant 1.250000e-01 : f32
    %87 = vector.broadcast %cst_47 : f32 to vector<64x1xf32>
    %88 = arith.mulf %86, %87 : vector<64x1xf32>
    %cst_48 = arith.constant 9.99999997E-7 : f32
    %89 = vector.broadcast %cst_48 : f32 to vector<64x1xf32>
    %90 = arith.addf %88, %89 : vector<64x1xf32>
    %91 = vector.broadcast %90 : vector<64x1xf32> to vector<64x256xf32>
    %92 = arith.divf %80, %91 : vector<64x256xf32>
    %93 = arith.mulf %82, %92 : vector<64x256xf32>
    %94 = arith.truncf %93 : vector<64x256xf32> to vector<64x256xbf16>
    %c0_49 = arith.constant 0 : index
    %c0_50 = arith.constant 0 : index
    %95 = vector.load %arg7[%c0_49, %c0_50] : memref<256x128xbf16, #tpu.memory_space<vmem>>, vector<256x128xbf16>
    %cst_51 = arith.constant dense<0.000000e+00> : vector<64x128xf32>
    %96 = tpu.matmul %94, %95, %cst_51 {dimension_numbers = #tpu.dot_dimension_numbers<[1], [0], [0], [1], [0, 0, 1, 1], [], []>} : vector<64x256xbf16>, vector<256x128xbf16>, vector<64x128xf32> -> vector<64x128xf32>
    %97 = arith.addf %4, %96 : vector<64x128xf32>
    %98 = arith.mulf %97, %97 : vector<64x128xf32>
    %cst_52 = arith.constant dense<0.000000e+00> : vector<64xf32>
    %99 = vector.multi_reduction <add>, %98, %cst_52 [1] : vector<64x128xf32> to vector<64xf32>
    %100 = vector.shape_cast %99 : vector<64xf32> to vector<64x1xf32>
    %101 = math.sqrt %100 : vector<64x1xf32>
    %cst_53 = arith.constant 1.250000e-01 : f32
    %102 = vector.broadcast %cst_53 : f32 to vector<64x1xf32>
    %103 = arith.mulf %101, %102 : vector<64x1xf32>
    %cst_54 = arith.constant 9.99999997E-7 : f32
    %104 = vector.broadcast %cst_54 : f32 to vector<64x1xf32>
    %105 = arith.addf %103, %104 : vector<64x1xf32>
    %106 = vector.broadcast %105 : vector<64x1xf32> to vector<64x128xf32>
    %107 = arith.divf %97, %106 : vector<64x128xf32>
    %108 = arith.truncf %107 : vector<64x128xf32> to vector<64x128xbf16>
    %c0_55 = arith.constant 0 : index
    %c0_56 = arith.constant 0 : index
    %109 = vector.load %arg8[%c0_55, %c0_56] : memref<128x256xbf16, #tpu.memory_space<vmem>>, vector<128x256xbf16>
    %cst_57 = arith.constant dense<0.000000e+00> : vector<64x256xf32>
    %110 = tpu.matmul %108, %109, %cst_57 {dimension_numbers = #tpu.dot_dimension_numbers<[1], [0], [0], [1], [0, 0, 1, 1], [], []>} : vector<64x128xbf16>, vector<128x256xbf16>, vector<64x256xf32> -> vector<64x256xf32>
    %111 = vector.extract_strided_slice %110 {offsets = [0, 0], sizes = [64, 128], strides = [1, 1]} : vector<64x256xf32> to vector<64x128xf32>
    %112 = vector.extract_strided_slice %110 {offsets = [0, 128], sizes = [64, 128], strides = [1, 1]} : vector<64x256xf32> to vector<64x128xf32>
    %113 = arith.mulf %111, %112 : vector<64x128xf32>
    %114 = arith.truncf %113 : vector<64x128xf32> to vector<64x128xbf16>
    %c0_58 = arith.constant 0 : index
    %c0_59 = arith.constant 0 : index
    %115 = vector.load %arg9[%c0_58, %c0_59] : memref<128x128xbf16, #tpu.memory_space<vmem>>, vector<128x128xbf16>
    %cst_60 = arith.constant dense<0.000000e+00> : vector<64x128xf32>
    %116 = tpu.matmul %114, %115, %cst_60 {dimension_numbers = #tpu.dot_dimension_numbers<[1], [0], [0], [1], [0, 0, 1, 1], [], []>} : vector<64x128xbf16>, vector<128x128xbf16>, vector<64x128xf32> -> vector<64x128xf32>
    %117 = arith.addf %97, %116 : vector<64x128xf32>
    %c0_61 = arith.constant 0 : index
    %c0_62 = arith.constant 0 : index
    %c0_63 = arith.constant 0 : index
    %118 = vector.load %arg10[%c0_61, %c0_62, %c0_63] : memref<1x64x128xf32, #tpu.memory_space<vmem>>, vector<1x64x128xf32>
    %119 = vector.shape_cast %118 : vector<1x64x128xf32> to vector<64x128xf32>
    %120 = vector.shape_cast %117 : vector<64x128xf32> to vector<1x64x128xf32>
    tpu.vector_store %arg10[%c0_61, %c0_62, %c0_63], %120 {strides = array<i32>} : memref<1x64x128xf32, #tpu.memory_space<vmem>>, vector<1x64x128xf32>,
    return
  }
  func.func @transform_0(%arg0: i32, %arg1: i32) -> (i32, i32, i32) {
    %c0_i32 = arith.constant 0 : i32
    %c0_i32_0 = arith.constant 0 : i32
    return %arg0, %arg1, %c0_i32 : i32, i32, i32
  }
  func.func @transform_1(%arg0: i32, %arg1: i32) -> (i32, i32) {
    %c0_i32 = arith.constant 0 : i32
    %c0_i32_0 = arith.constant 0 : i32
    %c0_i32_1 = arith.constant 0 : i32
    return %c0_i32, %c0_i32_0 : i32, i32
  }
  func.func @transform_2(%arg0: i32, %arg1: i32) -> (i32, i32) {
    %c0_i32 = arith.constant 0 : i32
    %c0_i32_0 = arith.constant 0 : i32
    %c0_i32_1 = arith.constant 0 : i32
    return %c0_i32, %c0_i32_0 : i32, i32
  }
  func.func @transform_3(%arg0: i32, %arg1: i32) -> (i32, i32) {
    %c0_i32 = arith.constant 0 : i32
    %c0_i32_0 = arith.constant 0 : i32
    %c0_i32_1 = arith.constant 0 : i32
    return %c0_i32, %c0_i32_0 : i32, i32
  }
  func.func @transform_4(%arg0: i32, %arg1: i32) -> (i32, i32) {
    %c0_i32 = arith.constant 0 : i32
    %c0_i32_0 = arith.constant 0 : i32
    %c0_i32_1 = arith.constant 0 : i32
    return %c0_i32, %c0_i32_0 : i32, i32
  }
  func.func @transform_5(%arg0: i32, %arg1: i32) -> (i32, i32) {
    %c0_i32 = arith.constant 0 : i32
    %c0_i32_0 = arith.constant 0 : i32
    %c0_i32_1 = arith.constant 0 : i32
    return %c0_i32, %c0_i32_0 : i32, i32
  }
  func.func @transform_6(%arg0: i32, %arg1: i32) -> (i32, i32) {
    %c0_i32 = arith.constant 0 : i32
    %c0_i32_0 = arith.constant 0 : i32
    %c0_i32_1 = arith.constant 0 : i32
    return %c0_i32, %c0_i32_0 : i32, i32
  }
  func.func @transform_7(%arg0: i32, %arg1: i32) -> (i32, i32) {
    %c0_i32 = arith.constant 0 : i32
    %c0_i32_0 = arith.constant 0 : i32
    %c0_i32_1 = arith.constant 0 : i32
    return %c0_i32, %c0_i32_0 : i32, i32
  }
  func.func @transform_8(%arg0: i32, %arg1: i32) -> (i32, i32, i32) {
    %c0_i32 = arith.constant 0 : i32
    %c0_i32_0 = arith.constant 0 : i32
    return %arg0, %arg1, %c0_i32 : i32, i32, i32
  }
}

</mosaic_0001>

<bundles_post_ra>
// kernel: tpu_custom_call.1
= control target key start
LH: loop header
LB: loop body
LE: loop exit
PB: predicated region body
PF: predicated region fallthrough
CT: control target
= control target key end

     0   :  { %s7782_s0 = inlined_call_operand.hbm [shape: f32[2,256,128], index: 0, kind: input, shape index: {}]   ;;  %s7783_s1 = inlined_call_operand.hbm [shape: bf16[128,256], index: 1, kind: input, shape index: {}]   ;;  %s7784_s2 = inlined_call_operand.hbm [shape: bf16[128,256], index: 2, kind: input, shape index: {}]   ;;  %s7785_s3 = inlined_call_operand.hbm [shape: bf16[128,256], index: 3, kind: input, shape index: {}]   ;;  %s7786_s4 = inlined_call_operand.hbm [shape: bf16[128,256], index: 4, kind: input, shape index: {}]   ;;  %s7787_s5 = inlined_call_operand.hbm [shape: bf16[256,128], index: 5, kind: input, shape index: {}]   ;;  %s7788_s6 = inlined_call_operand.hbm [shape: bf16[128,256], index: 6, kind: input, shape index: {}]   ;;  %s7789_s7 = inlined_call_operand.hbm [shape: bf16[128,128], index: 7, kind: input, shape index: {}]   ;;  %s7790_s8 = inlined_call_operand.hbm [shape: f32[2,256,128], index: 8, kind: output, shape index: {}]  }
   0x1   :  { %7826 = sst [smem:[#allocation50_spill]] %s7783_s1 }
   0x2   :  { %7827 = sst [smem:[#allocation51_spill]] %s7784_s2 }
   0x3   :  { %7828 = sst [smem:[#allocation52_spill]] %s7785_s3 }
   0x4   :  { %7829 = sst [smem:[#allocation53_spill]] %s7786_s4 }
   0x5   :  { %7830 = sst [smem:[#allocation54_spill]] %s7787_s5 }
   0x6   :  { %7831 = sst [smem:[#allocation55_spill]] %s7788_s6 }
   0x7   :  { %7832 = sst [smem:[#allocation56_spill]] %s7789_s7 }
   0x8   :  { %7833 = sst [smem:[#allocation57_spill]] %s7790_s8 }
   0x9   :  { %13 = vsyncpa [#allocation4], 0 }
   0xa   :  { %15 = vsyncpa [#allocation4 + $0x1], 0 }
   0xb   :  { %16 = vsyncpa [#allocation7], 0 }
   0xc   :  { %17 = vsyncpa [#allocation10], 0 }
   0xd   :  { %18 = vsyncpa [#allocation13], 0 }
   0xe   :  { %19 = vsyncpa [#allocation16], 0 }
   0xf   :  { %20 = vsyncpa [#allocation5], 0 }
  0x10   :  { %22 = vsyncpa [#allocation5 + $0x1], 0  ;;  %s5384_s27 = smov 0   ;;  %s5386_s28 = smov 0  }
  0x11   :  { %s5388_s29 = smov 0   ;;  %s5390_s30 = smov 0  }
  0x12   :  { %s5392_s9 = smov 0   ;;  %s5394_s10 = smov 0  }
  0x13   :  { %s5396_s11 = smov 0   ;;  %s5398_s12 = smov 0  }
  0x14 LB: > { %7834 = sst [smem:[#allocation24_spill]] %s5311_s9  ;;  %s7791_s13 = sadd.s32 4294967295, %s5323_s12   ;;  %s5323_s12 = sphi %s5398_s12, %s28_s12   ;;  %s5319_s11 = sphi %s5396_s11, %s8019_s11   ;;  %s5315_s10 = sphi %s5394_s10, %s8018_s10   ;;  %s5311_s9 = sphi %s5392_s9, %s8017_s9   ;;  %s5307_s30 = sphi %s5390_s30, %s8016_s30   ;;  %s5303_s29 = sphi %s5388_s29, %s8015_s29   ;;  %s5299_s28 = sphi %s5386_s28, %s8014_s28   ;;  %s5295_s27 = sphi %s5384_s27, %s8013_s27  }
  0x15   : > { %p3918_p0 = scmp.ge.s32.totalorder %s5323_s12, 1  ;;  %p5428_p1 = scmp.eq.s32.totalorder %s7791_s13, 0 }
  0x16   : > { %p248_p2 = scmp.lt.s32.totalorder %s5323_s12, 9  ;;  %s7836_s1 = sld [smem:[#allocation50_spill]] }
  0x17   : > { %s5325_s19 = smov [#allocation6]   ;;  %s7839_s3 = sld [smem:[#allocation52_spill]] }
  0x18   : > { %p5436_p3 = pnand %p3918_p0, %p248_p2  ;;  %s261_s20 = sshll.u32 %s5325_s19, 4  ;;  %s262_s20 = int_to_ptr.vmem [resolvable:$true] %s261_s20 }
  0x19   : > { %s7793_s25 = smov 128   ;;  %s7794_s26 = smov 8  }
  0x1a   : > { %p4580_p4 = pneg %p5436_p3  ;;  %s5328_s15 = smov [#allocation9]  }
  0x1b   : > { %s289_s16 = sshll.u32 %s5328_s15, 4  ;;  %s7840_s5 = sld [smem:[#allocation54_spill]]  ;;  %s290_s16 = int_to_ptr.vmem [resolvable:$true] %s289_s16 }
  0x1c   : > { %s259_s17 = sshll.u32 %s7836_s1, 4  ;;  %p5444_p5 = pnand %p4580_p4, %p5428_p1  ;;  %s260_s17 = int_to_ptr.hbm [resolvable:$true] %s259_s17 }
  0x1d   : > { %s287_s24 = sshll.u32 %s7839_s3, 4  ;;  %s5329_s22 = smov [#allocation12]   ;;  %s288_s24 = int_to_ptr.hbm [resolvable:$true] %s287_s24 }
  0x1e   : > { %4583 = dma.hbm_to_vmem [thread:$0]  (!%p5444_p5), %s260_s17, 2048, %s262_s20, [#allocation7], %s7793_s25, %s7793_s25, %s7794_s26  }
  0x1f   : > { %4589 = dma.hbm_to_vmem [thread:$0]  (!%p5444_p5), %s288_s24, 2048, %s290_s16, [#allocation10], %s7793_s25, %s7793_s25, %s7794_s26  }
  0x20   : > { %s317_s23 = sshll.u32 %s5329_s22, 4  ;;  %s7841_s2 = sld [smem:[#allocation51_spill]]  ;;  %s318_s23 = int_to_ptr.vmem [resolvable:$true] %s317_s23 }
  0x21   : > { %s315_s1 = sshll.u32 %s7840_s5, 4  ;;  %s5330_s20 = smov 64   ;;  %s316_s1 = int_to_ptr.hbm [resolvable:$true] %s315_s1 }
  0x22   : > { %s5331_s15 = smov 4   ;;  %s5332_s13 = smov [#allocation8]  }
  0x23   : > { %4595 = dma.hbm_to_vmem [thread:$0]  (!%p5444_p5), %s316_s1, 2048, %s318_s23, [#allocation13], %s5330_s20, %s5330_s20, %s5331_s15  }
  0x24   : > { %s275_s19 = sshll.u32 %s5332_s13, 4  ;;  %s7842_s4 = sld [smem:[#allocation53_spill]]  ;;  %s276_s19 = int_to_ptr.vmem [resolvable:$true] %s275_s19 }
  0x25   : > { %s7843_s6 = sld [smem:[#allocation55_spill]]  ;;  %s5333_s16 = smov [#allocation11]  }
  0x26   : > { %s273_s17 = sshll.u32 %s7841_s2, 4  ;;  %s303_s22 = sshll.u32 %s5333_s16, 4  ;;  %s274_s17 = int_to_ptr.hbm [resolvable:$true] %s273_s17  ;;  %s304_s22 = int_to_ptr.vmem [resolvable:$true] %s303_s22 }
  0x27   : > { %4586 = dma.hbm_to_vmem [thread:$0]  (!%p5444_p5), %s274_s17, 2048, %s276_s19, [#allocation7], %s7793_s25, %s7793_s25, %s7794_s26  }
  0x28   : > { %s5334_s5 = smov [#allocation14]   ;;  %s7844_s7 = sld [smem:[#allocation56_spill]] }
  0x29   : > { %s331_s9 = sshll.u32 %s5334_s5, 4  ;;  %s5335_s19 = smov [#allocation15]   ;;  %s332_s9 = int_to_ptr.vmem [resolvable:$true] %s331_s9 }
  0x2a   : > { %s301_s24 = sshll.u32 %s7842_s4, 4  ;;  %s3917_s3 = sadd.s32 4294967294, %s5323_s12   ;;  %s302_s24 = int_to_ptr.hbm [resolvable:$true] %s301_s24 }
  0x2b   : > { %s329_s1 = sshll.u32 %s7843_s6, 4  ;;  %s37_s8 = sadd.s32 1, %s5315_s10  ;;  %s330_s1 = int_to_ptr.hbm [resolvable:$true] %s329_s1 }
  0x2c   : > { %4592 = dma.hbm_to_vmem [thread:$0]  (!%p5444_p5), %s302_s24, 2048, %s304_s22, [#allocation10], %s7793_s25, %s7793_s25, %s7794_s26  }
  0x2d   : > { %4598 = dma.hbm_to_vmem [thread:$0]  (!%p5444_p5), %s330_s1, 2048, %s332_s9, [#allocation13], %s7793_s25, %s7793_s25, %s7794_s26  }
  0x2e   : > { %s343_s13 = sshll.u32 %s7844_s7, 4  ;;  %s345_s24 = sshll.u32 %s5335_s19, 4  ;;  %s344_s13 = int_to_ptr.hbm [resolvable:$true] %s343_s13  ;;  %s346_s24 = int_to_ptr.vmem [resolvable:$true] %s345_s24 }
  0x2f   : > { %4601 = dma.hbm_to_vmem [thread:$0]  (!%p5444_p5), %s344_s13, 1024, %s346_s24, [#allocation16], %s5330_s20, %s5330_s20, %s5331_s15  }
  0x30   : > { %p38_p6 = scmp.ge.s32.totalorder %s37_s8, 4  ;;  %s40_s16 = sadd.s32 1, %s5319_s11 }
  0x31   : > { %s49_s22 = sadd.s32 1, %s5303_s29  ;;  %p56_p7 = scmp.ne.s32.totalorder %s5303_s29, %s5299_s28 }
  0x32   : > { %s8021_s8 = smov (%p38_p6, %s37_s8), 0  ;;  %s8023_s16 = smov (!%p38_p6, %s40_s16), %s5319_s11 }
  0x33   : > { %s45_s21 = ssub.s32 %s5315_s10, %s8021_s8  ;;  %p57_p8 = scmp.eq.s32.totalorder %s5323_s12, 0 }
  0x34   : > { %p42_p9 = scmp.ge.s32.totalorder %s8023_s16, 2  ;;  %p62_p10 = scmp.ne.s32.totalorder %s5299_s28, %s5295_s27 }
  0x35   : > { %s7845_s20 = sadd.s32 4294967295, %s5323_s12   ;;  %p241_p12 = scmp.eq.s32.totalorder %s3917_s3, 7 }
  0x36   : > { %p235_p11 = scmp.eq.s32.totalorder %s7845_s20, 7  ;;  %s8025_s16 = smov (%p42_p9, %s8023_s16), 0 }
  0x37   : > { %7846 = sst [smem:[#allocation25_spill]] %s8025_s16  ;;  %p5515_p13 = por %p5428_p1, %p62_p10 }
  0x38   : > { %p5522_p0 = por %p235_p11, %p56_p7  ;;  %s44_s5 = ssub.s32 %s5319_s11, %s8025_s16 }
  0x39   : > { %p5528_p2 = por %p241_p12, %p62_p10  ;;  %s46_s23 = sor.u32 %s45_s21, %s44_s5 }
  0x3a   : > { %p58_p4 = por %p57_p8, %p56_p7  ;;  %p47_p5 = scmp.eq.s32.totalorder %s46_s23, 0 }
  0x3b   : > { %s359_s17 = sand.u32 1, %s5303_s29   ;;  %p4617_p6 = scmp.lt.s32.totalorder %s5323_s12, 8 }
  0x3c   : > { %s3927_s13 = sshll.u32 %s359_s17, 6  ;;  %s3928_s24 = sshll.u32 %s5315_s10, 3 }
  0x3d   : > { %s5538_s19 = scalar_select %p47_p5, %s5303_s29, %s49_s22  }
  0x3e   : > { %s3929_s3 = sshll.u32 %s5319_s11, 5  ;;  %s363_s20 = scalar_lea.vmem [#allocation3], %s3927_s13 }
  0x3f   : > { %s373_s25 = sshll.u32 %s363_s20, 4  ;;  %s368_s26 = sadd.s32 %s3929_s3, %s3928_s24  ;;  %s374_s25 = int_to_ptr.vmem [resolvable:$true] %s373_s25 }
  0x40   : > { %s3930_s2 = sshll.u32 %s368_s26, 3  ;;  %p4603_p9 = pnand %p4617_p6, %p58_p4 }
  0x41   : > { %s370_s7 = scalar_lea.hbm %s7782_s0, %s3930_s2  ;;  %s360_s5 = scalar_lea.sflag [#allocation4], %s359_s17 }
  0x42   : > { %s371_s21 = sshll.u32 %s370_s7, 4  ;;  %s7850_s23 = smov 8   ;;  %s372_s21 = int_to_ptr.hbm [resolvable:$true] %s371_s21 }
  0x43   : > { %s7851_s16 = smov 128   ;;  %385 = sbr.rel (%p5436_p3) target bundleno = 1853 (0x73d), region = 52 }
  0x44   : > { %4605 = dma.hbm_to_vmem [thread:$0]  (!%p4603_p9), %s372_s21, 1024, %s374_s25, %s360_s5, %s7851_s16, %s7851_s16, %s7850_s23  }
  0x48   : > { %s5551_s22 = sand.u32 1, %s5299_s28  }
  0x49   : > { %s3932_s26 = sshll.u32 %s5551_s22, 6  ;;  %s388_s4 = scalar_lea.sflag [#allocation4], %s5551_s22 }
  0x4a   : > { %s5555_s2 = scalar_lea.vmem [#allocation3], %s3932_s26 }
  0x4b   : > { %5270 = dma.done.wait (%p5515_p13), %s388_s4, 1024  }
  0x4c   : > { %5272 = vsyncadd (%p5515_p13), %s388_s4, 4294966272 }
  0x4d   : > { %5274 = dma.done.wait (%p5428_p1), [#allocation7], 4096  }
  0x4e   : > { %5276 = vsyncadd (%p5428_p1), [#allocation7], 4294963200 }
  0x4f   : > { %5278 = dma.done.wait (%p5428_p1), [#allocation10], 4096  }
  0x50   : > { %5280 = vsyncadd (%p5428_p1), [#allocation10], 4294963200 }
  0x51   : > { %5282 = dma.done.wait (%p5428_p1), [#allocation13], 4096  }
  0x52   : > { %5284 = vsyncadd (%p5428_p1), [#allocation13], 4294963200 }
  0x53   : > { %5286 = dma.done.wait (%p5428_p1), [#allocation16], 1024  }
  0x54   : > { %5288 = vsyncadd (%p5428_p1), [#allocation16], 4294966272  ;;  %s5577_s6 = scalar_lea.vmem [#allocation17], %s3932_s26  ;;  %p3941_p3 = scmp.ne.s32.totalorder %s5307_s30, 0 }
  0x56   : > { %466 = sbr.rel (%p3941_p3) target bundleno = 124 (0x7c), region = 88 }
  0x5b   : > { %v5336_v0 = vmov 0.0  }
  0x5c   : > { %467 = vst [vmem:[#allocation2 + $0xb0] sm:$0xff] %v5336_v0 }
  0x5d   : > { %468 = vst [vmem:[#allocation2] sm:$0xff] %v5336_v0 }
  0x5e   : > { %469 = vst [vmem:[#allocation2 + $0xd8] sm:$0xff] %v5336_v0 }
  0x5f   : > { %470 = vst [vmem:[#allocation2 + $0x18] sm:$0xff] %v5336_v0 }
  0x60   : > { %471 = vst [vmem:[#allocation2 + $0x50] sm:$0xff] %v5336_v0 }
  0x61   : > { %472 = vst [vmem:[#allocation2 + $0x68] sm:$0xff] %v5336_v0 }
  0x62   : > { %473 = vst [vmem:[#allocation2 + $0x30] sm:$0xff] %v5336_v0 }
  0x63   : > { %474 = vst [vmem:[#allocation2 + $0x48] sm:$0xff] %v5336_v0 }
  0x64   : > { %475 = vst [vmem:[#allocation2 + $0x80] sm:$0xff] %v5336_v0 }
  0x65   : > { %476 = vst [vmem:[#allocation2 + $0x88] sm:$0xff] %v5336_v0 }
  0x66   : > { %477 = vst [vmem:[#allocation2 + $0xe8] sm:$0xff] %v5336_v0 }
  0x67   : > { %478 = vst [vmem:[#allocation2 + $0xb8] sm:$0xff] %v5336_v0 }
  0x68   : > { %479 = vst [vmem:[#allocation2 + $0x60] sm:$0xff] %v5336_v0 }
  0x69   : > { %480 = vst [vmem:[#allocation2 + $0xf0] sm:$0xff] %v5336_v0 }
  0x6a   : > { %481 = vst [vmem:[#allocation2 + $0x8] sm:$0xff] %v5336_v0 }
  0x6b   : > { %482 = vst [vmem:[#allocation2 + $0x78] sm:$0xff] %v5336_v0 }
  0x6c   : > { %483 = vst [vmem:[#allocation2 + $0x38] sm:$0xff] %v5336_v0 }
  0x6d   : > { %484 = vst [vmem:[#allocation2 + $0x58] sm:$0xff] %v5336_v0 }
  0x6e   : > { %485 = vst [vmem:[#allocation2 + $0x40] sm:$0xff] %v5336_v0 }
  0x6f   : > { %486 = vst [vmem:[#allocation2 + $0xc8] sm:$0xff] %v5336_v0 }
  0x70   : > { %487 = vst [vmem:[#allocation2 + $0xe0] sm:$0xff] %v5336_v0 }
  0x71   : > { %488 = vst [vmem:[#allocation2 + $0x90] sm:$0xff] %v5336_v0 }
  0x72   : > { %489 = vst [vmem:[#allocation2 + $0x70] sm:$0xff] %v5336_v0 }
  0x73   : > { %490 = vst [vmem:[#allocation2 + $0xc0] sm:$0xff] %v5336_v0 }
  0x74   : > { %491 = vst [vmem:[#allocation2 + $0xa8] sm:$0xff] %v5336_v0 }
  0x75   : > { %492 = vst [vmem:[#allocation2 + $0xd0] sm:$0xff] %v5336_v0 }
  0x76   : > { %493 = vst [vmem:[#allocation2 + $0x10] sm:$0xff] %v5336_v0 }
  0x77   : > { %494 = vst [vmem:[#allocation2 + $0x28] sm:$0xff] %v5336_v0 }
  0x78   : > { %495 = vst [vmem:[#allocation2 + $0xa0] sm:$0xff] %v5336_v0 }
  0x79   : > { %496 = vst [vmem:[#allocation2 + $0xf8] sm:$0xff] %v5336_v0 }
  0x7a   : > { %497 = vst [vmem:[#allocation2 + $0x20] sm:$0xff] %v5336_v0 }
  0x7b   : > { %498 = vst [vmem:[#allocation2 + $0x98] sm:$0xff] %v5336_v0 }
  0x7c PF: > { %v5581_v1 = vld [vmem:[%s5555_s2 + $0x30] sm:$0xff]  ;;  %v5584_v2 = vld [vmem:[%s5555_s2 + $0x20] sm:$0xff]  ;;  %v5596_v7 = vld [vmem:[%s5555_s2 + $0x38] sm:$0xff]  ;;  %s8010_s7 = sld [smem:[#allocation24_spill]]  ;;  %s4415_s14 = sshll.u32 %s5307_s30, 3 }
  0x7d   : > { %v5587_v3 = vld [vmem:[%s5555_s2] sm:$0xff]  ;;  %v513_v4 = vmul.f32 %v5581_v1, %v5581_v1  ;;  %v511_v5 = vmul.f32 %v5584_v2, %v5584_v2  ;;  %v5599_v8 = vld [vmem:[%s5555_s2 + $0x28] sm:$0xff]  ;;  %v514_v10 = vmul.f32 %v5596_v7, %v5596_v7  ;;  %v5611_v13 = vld [vmem:[%s5555_s2 + $0x18] sm:$0xff]  ;;  %s8011_s13 = sld [smem:[#allocation57_spill]]  ;;  %s3756_s3 = sshll.u32 %s5577_s6, 4  ;;  %s3757_s3 = int_to_ptr.vmem [resolvable:$true] %s3756_s3 }
  0x7e   : > { %v507_v6 = vmul.f32 %v5587_v3, %v5587_v3  ;;  %v5602_v9 = vld [vmem:[%s5555_s2 + $0x8] sm:$0xff]  ;;  %v512_v11 = vmul.f32 %v5599_v8, %v5599_v8  ;;  %v5614_v14 = vld [vmem:[%s5555_s2 + $0x10] sm:$0xff]  ;;  %v510_v15 = vmul.f32 %v5611_v13, %v5611_v13  ;;  %v4435_v18 = vld [vmem:[#allocation6 + $0x74] sm:$0xf0]  ;;  %s3742_s30 = scalar_lea.sflag [#allocation5], %s5551_s22 }
  0x7f   : > { %527 = vadd.xlane.f32.xlu1 %v513_v4  ;;  %523 = vadd.xlane.f32.xlu0 %v511_v5  ;;  %v508_v12 = vmul.f32 %v5602_v9, %v5602_v9  ;;  %v509_v16 = vmul.f32 %v5614_v14, %v5614_v14  ;;  %v4000_v17 = vld [vmem:[#allocation6 + $0x70] sm:$0xf]  ;;  %v4434_v19 = vld [vmem:[#allocation6 + $0x74] sm:$0xf]  ;;  %v4002_v21 = vld [vmem:[#allocation6 + $0x78] sm:$0xf0] }
  0x80   : > { %515 = vadd.xlane.f32.xlu2 %v507_v6  ;;  %v4001_v20 = vor.u32 %v4435_v18, %v4000_v17  ;;  %v4080_v22 = vld [vmem:[#allocation8 + $0x70] sm:$0xf]  ;;  %v4451_v23 = vld [vmem:[#allocation8 + $0x74] sm:$0xf0]  ;;  %v4005_v26 = vor.u32 %v4434_v19, %v4002_v21  ;;  %v3992_v30 = vld [vmem:[#allocation6 + $0x60] sm:$0xf] }
  0x81   : > { %v4081_v27 = vor.u32 %v4451_v23, %v4080_v22  ;;  %v4433_v31 = vld [vmem:[#allocation6 + $0x64] sm:$0xf0]  ;;  %v4432_v42 = vld [vmem:[#allocation6 + $0x64] sm:$0xf]  ;;  %v3994_v43 = vld [vmem:[#allocation6 + $0x68] sm:$0xf0] }
  0x82   : > { %863 = vmatpush.bf16.msra.mxu0 %v4001_v20  ;;  %4524 = vmatpush.bf16.msra.mxu3 %v4001_v20  ;;  %v3993_v36 = vor.u32 %v4433_v31, %v3992_v30  ;;  %v4072_v45 = vld [vmem:[#allocation8 + $0x60] sm:$0xf]  ;;  %v4449_v46 = vld [vmem:[#allocation8 + $0x64] sm:$0xf0]  ;;  %v3984_v47 = vld [vmem:[#allocation6 + $0x50] sm:$0xf]  ;;  %v3997_v53 = vor.u32 %v4432_v42, %v3994_v43 }
  0x83   : > { %892 = vmatpush.bf16.msra.mxu1 %v4005_v26  ;;  %1337 = vmatpush.bf16.msra.mxu2 %v4081_v27  ;;  %v4431_v50 = vld [vmem:[#allocation6 + $0x54] sm:$0xf0]  ;;  %v4430_v51 = vld [vmem:[#allocation6 + $0x54] sm:$0xf]  ;;  %v3986_v54 = vld [vmem:[#allocation6 + $0x58] sm:$0xf0]  ;;  %v4073_v57 = vor.u32 %v4449_v46, %v4072_v45 }
  0x84   : > { %v3985_v58 = vor.u32 %v4431_v50, %v3984_v47  ;;  %v4064_v59 = vld [vmem:[#allocation8 + $0x50] sm:$0xf]  ;;  %v4447_v60 = vld [vmem:[#allocation8 + $0x54] sm:$0xf0]  ;;  %v3989_v0 = vor.u32 %v4430_v51, %v3986_v54  ;;  %v3976_v5 = vld [vmem:[#allocation6 + $0x40] sm:$0xf] }
  0x85   : > { %v4065_v4 = vor.u32 %v4447_v60, %v4064_v59  ;;  %v4429_v6 = vld [vmem:[#allocation6 + $0x44] sm:$0xf0]  ;;  %v4428_v18 = vld [vmem:[#allocation6 + $0x44] sm:$0xf]  ;;  %v3978_v19 = vld [vmem:[#allocation6 + $0x48] sm:$0xf0] }
  0x86   : > { %864 = vmatpush.bf16.msra.mxu0 %v3993_v36  ;;  %4525 = vmatpush.bf16.msra.mxu3 %v3993_v36  ;;  %v3977_v17 = vor.u32 %v4429_v6, %v3976_v5  ;;  %v4056_v23 = vld [vmem:[#allocation8 + $0x40] sm:$0xf]  ;;  %v4445_v26 = vld [vmem:[#allocation8 + $0x44] sm:$0xf0]  ;;  %s4416_s18 = sshll.u32 %s8010_s7, 5  ;;  %s5229_s4 = scalar_lea.hbm %s8011_s13, 512 }
  0x87   : > { %529 = vadd.xlane.f32.xlu1 %v514_v10  ;;  %525 = vadd.xlane.f32.xlu0 %v512_v11  ;;  %v4057_v42 = vor.u32 %v4445_v26, %v4056_v23  ;;  %s3753_s25 = sadd.s32 %s4416_s18, %s4415_s14 }
  0x88   : > { %517 = vadd.xlane.f32.xlu2 %v508_v12  ;;  %893 = vmatpush.bf16.msra.mxu1 %v3997_v53  ;;  %s4417_s16 = sshll.u32 %s3753_s25, 3 }
  0x89   : > { %1338 = vmatpush.bf16.msra.mxu2 %v4073_v57  ;;  %s3755_s24 = scalar_lea.hbm %s8011_s13, %s4417_s16 }
  0x8a   : > { %865 = vmatpush.bf16.msra.mxu0 %v3985_v58  ;;  %4526 = vmatpush.bf16.msra.mxu3 %v3985_v58  ;;  %s3758_s20 = sshll.u32 %s3755_s24, 4  ;;  %s3759_s20 = int_to_ptr.hbm [resolvable:$true] %s3758_s20 }
  0x8b   : > { %s5223_s21 = sshra.s32 %s3759_s20, 4  ;;  %s5224_s21 = int_to_ptr.hbm [resolvable:$true] %s5223_s21 }
  0x8c   : > { %894 = vmatpush.bf16.msra.mxu1 %v3989_v0  ;;  %s5225_s5 = scalar_lea.hbm %s5224_s21, 64  ;;  %p5230_p10 = scmp.lt.s32.totalorder %s5224_s21, %s8011_s13 }
  0x8d   : > { %1339 = vmatpush.bf16.msra.mxu2 %v4065_v4  ;;  %p5226_p1 = scmp.ne.s32.totalorder %s5224_s21, %s5225_s5  ;;  %p5231_p11 = scmp.lt.s32.totalorder %s5229_s4, %s5225_s5 }
  0x8e   : > { %866 = vmatpush.bf16.msra.mxu0 %v3977_v17  ;;  %4527 = vmatpush.bf16.msra.mxu3 %v3977_v17 }
  0x8f   : > { %521 = vadd.xlane.f32.xlu1 %v510_v15  ;;  %519 = vadd.xlane.f32.xlu0 %v509_v16  ;;  %p5227_p7 = pnand %p5226_p1, %p5522_p0  ;;  %p5232_p12 = por %p5231_p11, %p5230_p10 }
  0x91   : > { %1340 = vmatpush.bf16.msra.mxu2 %v4057_v42  ;;  %p5228_p8 = pneg %p5227_p7 }
  0x93   : > { %p5233_p13 = pnand %p5232_p12, %p5228_p8 }
  0xf2   : > { %v5620_v24 = vpop.xlane.xlu1 %527  ;;  %v5622_v25 = vpop.xlane.xlu0 %523 }
  0xf3   : > { %4705 = vrsqrt.f32 %v5620_v24  ;;  %v5625_v28 = vpop.xlane.xlu2 %515  ;;  %vm610_vm0 = vcmp.eq.f32.partialorder %v5620_v24, inf  ;;  %vm586_vm1 = vcmp.eq.f32.partialorder %v5622_v25, inf  ;;  %v589_v63 = vand.u32 2147483648, %v5622_v25 }
  0xf4   : > { %4707 = vrsqrt.f32 %v5622_v25  ;;  %vm538_vm2 = vcmp.eq.f32.partialorder %v5625_v28, inf  ;;  %v541_v21 = vand.u32 2147483648, %v5625_v28  ;;  %vm540_vm3 = vcmp.eq.f32.partialorder %v5625_v28, 0.0 }
  0xf5   : > { %4709 = vrsqrt.f32 %v5625_v28  ;;  %vm588_vm4 = vcmp.eq.f32.partialorder %v5622_v25, 0.0  ;;  %vm612_vm5 = vcmp.eq.f32.partialorder %v5620_v24, 0.0 }
  0xf9   : > { %v4706_v29 = vpop.eup %4705 }
  0xfa   : > { %v4708_v32 = vpop.eup %4707  ;;  %v604_v33 = vmul.f32 %v4706_v29, %v5620_v24  ;;  %v5630_v34 = vpop.xlane.xlu1 %529 }
  0xfb   : > { %v5632_v35 = vpop.xlane.xlu0 %525  ;;  %v4710_v37 = vpop.eup %4709  ;;  %v580_v38 = vmul.f32 %v4708_v32, %v5622_v25  ;;  %4711 = vrsqrt.f32 %v5630_v34  ;;  %vm622_vm6 = vcmp.eq.f32.partialorder %v5630_v34, inf  ;;  %vm624_vm7 = vcmp.eq.f32.partialorder %v5630_v34, 0.0 }
  0xfc   : > { %v5636_v39 = vpop.xlane.xlu2 %517  ;;  %v605_v40 = vmul.f32 %v4706_v29, %v604_v33  ;;  %v532_v41 = vmul.f32 %v4710_v37, %v5625_v28  ;;  %4713 = vrsqrt.f32 %v5632_v35  ;;  %vm598_vm8 = vcmp.eq.f32.partialorder %v5632_v35, inf }
  0xfd   : > { %v581_v44 = vmul.f32 %v4708_v32, %v580_v38  ;;  %4715 = vrsqrt.f32 %v5636_v39  ;;  %v3981_v38 = vor.u32 %v4428_v18, %v3978_v19  ;;  %vm600_vm9 = vcmp.eq.f32.partialorder %v5632_v35, 0.0 }
  0xfe   : > { %v606_v48 = vmul.f32 0.5, %v605_v40  ;;  %v533_v49 = vmul.f32 %v4710_v37, %v532_v41  ;;  %v601_v4 = vand.u32 2147483648, %v5632_v35  ;;  %vm550_vm10 = vcmp.eq.f32.partialorder %v5636_v39, inf }
  0xff   : > { %v582_v52 = vmul.f32 0.5, %v581_v44  ;;  %895 = vmatpush.bf16.msra.mxu1 %v3981_v38  ;;  %v553_v5 = vand.u32 2147483648, %v5636_v39  ;;  %vm552_vm11 = vcmp.eq.f32.partialorder %v5636_v39, 0.0 }
 0x100   : > { %v607_v55 = vsub.f32 1.5, %v606_v48  ;;  %v534_v56 = vmul.f32 0.5, %v533_v49 }
 0x101   : > { %v4712_v61 = vpop.eup %4711  ;;  %v583_v62 = vsub.f32 1.5, %v582_v52 }
 0x102   : > { %v4714_v10 = vpop.eup %4713  ;;  %v608_v11 = vmul.f32 %v4706_v29, %v607_v55  ;;  %v535_v12 = vsub.f32 1.5, %v534_v56  ;;  %v616_v15 = vmul.f32 %v4712_v61, %v5630_v34  ;;  %v5645_v16 = vpop.xlane.xlu1 %521 }
 0x103   : > { %v584_v20 = vmul.f32 %v4708_v32, %v583_v62  ;;  %v592_v22 = vmul.f32 %v4714_v10, %v5632_v35  ;;  %v4716_v27 = vpop.eup %4715  ;;  %4717 = vrsqrt.f32 %v5645_v16  ;;  %vm574_vm13 = vcmp.eq.f32.partialorder %v5645_v16, inf }
 0x104   : > { %v609_v29 = vmul.f32 %v608_v11, %v5620_v24  ;;  %v536_v30 = vmul.f32 %v4710_v37, %v535_v12  ;;  %v617_v31 = vmul.f32 %v4712_v61, %v616_v15  ;;  %v544_v32 = vmul.f32 %v4716_v27, %v5636_v39 }
 0x105   : > { %v585_v33 = vmul.f32 %v584_v20, %v5622_v25  ;;  %v593_v36 = vmul.f32 %v4714_v10, %v592_v22  ;;  %v5697_v22 = vpop.xlane.xlu0 %519 }
 0x106   : > { %v537_v40 = vmul.f32 %v536_v30, %v5625_v28  ;;  %v618_v41 = vmul.f32 0.5, %v617_v31  ;;  %v545_v44 = vmul.f32 %v4716_v27, %v544_v32  ;;  %v611_v45 = vsel %vm610_vm0, %v5620_v24, %v609_v29 }
 0x107   : > { %v587_v37 = vsel %vm586_vm1, %v5622_v25, %v585_v33  ;;  %v594_v43 = vmul.f32 0.5, %v593_v36  ;;  %v613_v25 = vand.u32 2147483648, %v5620_v24  ;;  %v625_v24 = vand.u32 2147483648, %v5630_v34 }
 0x108   : > { %v590_v46 = vsel %vm588_vm4, %v589_v63, %v587_v37  ;;  %v539_v47 = vsel %vm538_vm2, %v5625_v28, %v537_v40  ;;  %v619_v48 = vsub.f32 1.5, %v618_v41  ;;  %v546_v52 = vmul.f32 0.5, %v545_v44 }
 0x109   : > { %v631_v49 = vmul.f32 0.125, %v590_v46  ;;  %v542_v50 = vsel %vm540_vm3, %v541_v21, %v539_v47  ;;  %v595_v51 = vsub.f32 1.5, %v594_v43  ;;  %v5666_v53 = vpop.eup %4717  ;;  %v614_v28 = vsel %vm612_vm5, %v613_v25, %v611_v45  ;;  %v3962_v45 = vld [vmem:[#allocation6 + $0x28] sm:$0xf0] }
 0x10a   : > { %v627_v54 = vmul.f32 0.125, %v542_v50  ;;  %v620_v55 = vmul.f32 %v4712_v61, %v619_v48  ;;  %v547_v58 = vsub.f32 1.5, %v546_v52  ;;  %v568_v59 = vmul.f32 %v5666_v53, %v5645_v16 }
 0x10b   : > { %v5670_v56 = vadd.f32 1e-06, %v631_v49  ;;  %v596_v57 = vmul.f32 %v4714_v10, %v595_v51  ;;  %v633_v62 = vmul.f32 0.125, %v614_v28  ;;  %vm576_vm0 = vcmp.eq.f32.partialorder %v5645_v16, 0.0 }
 0x10c   : > { %v5677_v60 = vadd.f32 1e-06, %v627_v54  ;;  %v621_v61 = vmul.f32 %v620_v55, %v5630_v34  ;;  %v548_v0 = vmul.f32 %v4716_v27, %v547_v58  ;;  %v569_v12 = vmul.f32 %v5666_v53, %v568_v59 }
 0x10d   : > { %4719 = vrcp.f32 %v5670_v56  ;;  %v597_v63 = vmul.f32 %v596_v57, %v5632_v35  ;;  %v5695_v19 = vadd.f32 1e-06, %v633_v62  ;;  %v714_v40 = vand.u32 2147483648, %v5670_v56 }
 0x10e   : > { %4721 = vrcp.f32 %v5677_v60  ;;  %v623_v6 = vsel %vm622_vm6, %v5630_v34, %v621_v61  ;;  %v549_v11 = vmul.f32 %v548_v0, %v5636_v39  ;;  %v570_v26 = vmul.f32 0.5, %v569_v12 }
 0x10f   : > { %v599_v10 = vsel %vm598_vm8, %v5632_v35, %v597_v63  ;;  %v626_v15 = vsel %vm624_vm7, %v625_v24, %v623_v6  ;;  %4723 = vrsqrt.f32 %v5697_v22  ;;  %v654_v37 = vand.u32 2147483648, %v5677_v60  ;;  %v4426_v6 = vld [vmem:[#allocation6 + $0x34] sm:$0xf] }
 0x110   : > { %v602_v17 = vsel %vm600_vm9, %v601_v4, %v599_v10  ;;  %v634_v20 = vmul.f32 0.125, %v626_v15  ;;  %v551_v35 = vsel %vm550_vm10, %v5636_v39, %v549_v11  ;;  %4725 = vrcp.f32 %v5695_v19  ;;  %v3968_v4 = vld [vmem:[#allocation6 + $0x30] sm:$0xf]  ;;  %v4024_v15 = vld [vmem:[#allocation8] sm:$0xf] }
 0x111   : > { %v632_v21 = vmul.f32 0.125, %v602_v17  ;;  %v554_v34 = vsel %vm552_vm11, %v553_v5, %v551_v35  ;;  %v712_v39 = vand.u32 2147483647, %v5670_v56  ;;  %v571_v38 = vsub.f32 1.5, %v570_v26  ;;  %v4427_v5 = vld [vmem:[#allocation6 + $0x34] sm:$0xf0] }
 0x112   : > { %v5701_v27 = vadd.f32 1e-06, %v634_v20  ;;  %v628_v36 = vmul.f32 0.125, %v554_v34  ;;  %vm708_vm14 = vweird.f32 %v5670_v56  ;;  %v715_v49 = vor.u32 1.1754944e-38, %v714_v40  ;;  %v3970_v20 = vld [vmem:[#allocation6 + $0x38] sm:$0xf0] }
 0x113   : > { %v4720_v18 = vpop.eup %4719  ;;  %v5703_v29 = vadd.f32 1e-06, %v632_v21  ;;  %vm5722_vm15 = vcmp.eq.f32.partialorder %v712_v39, 8.507059e+37  ;;  %v572_v46 = vmul.f32 %v5666_v53, %v571_v38  ;;  %v652_v51 = vand.u32 2147483647, %v5677_v60 }
 0x114   : > { %v704_v23 = vmul.f32 %v4720_v18, %v5670_v56  ;;  %v5705_v30 = vpop.eup %4721  ;;  %4727 = vrcp.f32 %v5701_v27  ;;  %vm709_vm12 = vweird.f32 %v4720_v18  ;;  %v5716_v43 = vadd.f32 1e-06, %v628_v36  ;;  %v4048_v21 = vld [vmem:[#allocation8 + $0x30] sm:$0xf]  ;;  %v3960_v39 = vld [vmem:[#allocation6 + $0x20] sm:$0xf] }
 0x115   : > { %v644_v33 = vmul.f32 %v5705_v30, %v5677_v60  ;;  %4729 = vrcp.f32 %v5703_v29  ;;  %v5719_v44 = vpop.eup %4723  ;;  %vm5730_vm1 = vmor %vm708_vm14, %vm709_vm12  ;;  %v727_v25 = vand.u32 2147483647, %v5703_v29  ;;  %v729_v54 = vand.u32 2147483648, %v5703_v29  ;;  %v4425_v38 = vld [vmem:[#allocation6 + $0x24] sm:$0xf0] }
 0x116   : > { %v705_v31 = vsub.f32 1.0, %v704_v23  ;;  %v5728_v47 = vpop.eup %4725  ;;  %4731 = vrcp.f32 %v5716_v43  ;;  %v577_v55 = vand.u32 2147483648, %v5645_v16  ;;  %vm648_vm2 = vweird.f32 %v5677_v60  ;;  %v4424_v40 = vld [vmem:[#allocation6 + $0x24] sm:$0xf] }
 0x117   : > { %v645_v41 = vsub.f32 1.0, %v644_v33  ;;  %v5747_v57 = vor.u32 1.1754944e-38, %v654_v37  ;;  %v573_v58 = vmul.f32 %v572_v46, %v5645_v16  ;;  %v556_v28 = vmul.f32 %v5719_v44, %v5697_v22  ;;  %v3946_v33 = vld [vmem:[#allocation6 + $0x8] sm:$0xf0] }
 0x118   : > { %v706_v32 = vmul.f32 %v4720_v18, %v705_v31  ;;  %v5754_v59 = vmul.f32 %v5728_v47, %v5695_v19  ;;  %vm649_vm3 = vweird.f32 %v5705_v30  ;;  %vm723_vm4 = vweird.f32 %v5703_v29  ;;  %v4443_v31 = vld [vmem:[#allocation8 + $0x34] sm:$0xf0] }
 0x119   : > { %v646_v50 = vmul.f32 %v5705_v30, %v645_v41  ;;  %v575_v63 = vsel %vm574_vm13, %v5645_v16, %v573_v58  ;;  %v557_v0 = vmul.f32 %v5719_v44, %v556_v28  ;;  %vm5771_vm5 = vcmp.eq.f32.partialorder %v652_v51, 8.507059e+37  ;;  %vm5793_vm8 = vmor %vm648_vm2, %vm649_vm3  ;;  %v4441_v51 = vld [vmem:[#allocation8 + $0x24] sm:$0xf0]  ;;  %v3952_v58 = vld [vmem:[#allocation6 + $0x10] sm:$0xf] }
 0x11a   : > { %v707_v42 = vadd.f32 %v4720_v18, %v706_v32  ;;  %v5737_v52 = vpop.eup %4727  ;;  %vm5779_vm6 = vcmp.eq.f32.partialorder %v727_v25, 8.507059e+37  ;;  %v730_v17 = vor.u32 1.1754944e-38, %v729_v54  ;;  %vm663_vm7 = vweird.f32 %v5716_v43 }
 0x11b   : > { %v5744_v56 = vpop.eup %4729  ;;  %v5765_v62 = vadd.f32 %v5705_v30, %v646_v50  ;;  %v5777_v11 = vmul.f32 %v5737_v52, %v5701_v27  ;;  %v667_v35 = vand.u32 2147483647, %v5716_v43  ;;  %v558_v34 = vmul.f32 0.5, %v557_v0  ;;  %v4040_v50 = vld [vmem:[#allocation8 + $0x20] sm:$0xf] }
 0x11c   : > { %v711_v53 = vsel %vm5730_vm1, %v4720_v18, %v707_v42  ;;  %v719_v61 = vmul.f32 %v5744_v56, %v5703_v29  ;;  %v578_v18 = vsel %vm576_vm0, %v577_v55, %v575_v63  ;;  %v5785_v23 = vpop.eup %4731  ;;  %vm724_vm9 = vweird.f32 %v5744_v56  ;;  %v4422_v63 = vld [vmem:[#allocation6 + $0x14] sm:$0xf]  ;;  %v3954_v0 = vld [vmem:[#allocation6 + $0x18] sm:$0xf0] }
 0x11d   : > { %v5762_v24 = vsel %vm5722_vm15, %v715_v49, %v711_v53  ;;  %v630_v26 = vmul.f32 0.125, %v578_v18  ;;  %v659_v36 = vmul.f32 %v5785_v23, %v5716_v43  ;;  %v669_v32 = vand.u32 2147483648, %v5716_v43  ;;  %vm5815_vm11 = vmor %vm723_vm4, %vm724_vm9  ;;  %v3944_v43 = vld [vmem:[#allocation6] sm:$0xf] }
 0x11e   : > { %v720_v12 = vsub.f32 1.0, %v719_v61  ;;  %v559_v42 = vsub.f32 1.5, %v558_v34  ;;  %v3969_v60 = vor.u32 %v4427_v5, %v3968_v4  ;;  %v3973_v37 = vor.u32 %v4426_v6, %v3970_v20  ;;  %v4421_v34 = vld [vmem:[#allocation6 + $0x4] sm:$0xf0] }
 0x11f   : > { %v5802_v41 = vadd.f32 1e-06, %v630_v26  ;;  %v660_v48 = vsub.f32 1.0, %v659_v36  ;;  %vm664_vm10 = vweird.f32 %v5785_v23  ;;  %v4049_v49 = vor.u32 %v4443_v31, %v4048_v21  ;;  %v4420_v31 = vld [vmem:[#allocation6 + $0x4] sm:$0xf] }
 0x120   : > { %v721_v16 = vmul.f32 %v5744_v56, %v720_v12  ;;  %v651_v53 = vsel %vm5793_vm8, %v5705_v30, %v5765_v62  ;;  %v750_v25 = vsub.f32 1.0, %v5777_v11  ;;  %vm5819_vm12 = vcmp.eq.f32.partialorder %v667_v35, 8.507059e+37  ;;  %867 = vmatpush.bf16.msra.mxu0 %v3969_v60  ;;  %4528 = vmatpush.bf16.msra.mxu3 %v3969_v60  ;;  %v4423_v30 = vld [vmem:[#allocation6 + $0x14] sm:$0xf0]  ;;  %vm5833_vm13 = vmor %vm663_vm7, %vm664_vm10  ;;  %v4032_v11 = vld [vmem:[#allocation8 + $0x10] sm:$0xf] }
 0x121   : > { %4733 = vrcp.f32 %v5802_v41  ;;  %v661_v29 = vmul.f32 %v5785_v23, %v660_v48  ;;  %v670_v61 = vor.u32 1.1754944e-38, %v669_v32  ;;  %v560_v62 = vmul.f32 %v5719_v44, %v559_v42  ;;  %896 = vmatpush.bf16.msra.mxu1 %v3973_v37  ;;  %1341 = vmatpush.bf16.msra.mxu2 %v4049_v49  ;;  %v4439_v44 = vld [vmem:[#allocation8 + $0x14] sm:$0xf0]  ;;  %v4450_v60 = vld [vmem:[#allocation8 + $0x74] sm:$0xf] }
 0x122   : > { %v722_v46 = vadd.f32 %v5744_v56, %v721_v16  ;;  %vm562_vm14 = vcmp.eq.f32.partialorder %v5697_v22, inf  ;;  %v3961_v5 = vor.u32 %v4425_v38, %v3960_v39  ;;  %v3965_v6 = vor.u32 %v4424_v40, %v3962_v45  ;;  %v4082_v37 = vld [vmem:[#allocation8 + $0x78] sm:$0xf0] }
 0x123   : > { %v662_v12 = vadd.f32 %v5785_v23, %v661_v29  ;;  %v561_v18 = vmul.f32 %v560_v62, %v5697_v22  ;;  %vm564_vm15 = vcmp.eq.f32.partialorder %v5697_v22, 0.0  ;;  %v4041_v20 = vor.u32 %v4441_v51, %v4040_v50  ;;  %v4160_v50 = vld [vmem:[#allocation9 + $0x70] sm:$0xf]  ;;  %v4467_v51 = vld [vmem:[#allocation9 + $0x74] sm:$0xf0] }
 0x124   : > { %v726_v28 = vsel %vm5815_vm11, %v5744_v56, %v722_v46  ;;  %v565_v56 = vand.u32 2147483648, %v5697_v22  ;;  %868 = vmatpush.bf16.msra.mxu0 %v3961_v5  ;;  %4529 = vmatpush.bf16.msra.mxu3 %v3961_v5  ;;  %v3953_v35 = vor.u32 %v4423_v30, %v3952_v58  ;;  %v3957_v26 = vor.u32 %v4422_v63, %v3954_v0  ;;  %v4448_v29 = vld [vmem:[#allocation8 + $0x64] sm:$0xf]  ;;  %v4152_v62 = vld [vmem:[#allocation9 + $0x60] sm:$0xf] }
 0x125   : > { %v731_v21 = vsel %vm5779_vm6, %v730_v17, %v726_v28  ;;  %v666_v16 = vsel %vm5833_vm13, %v5785_v23, %v662_v12  ;;  %v563_v36 = vsel %vm562_vm14, %v5697_v22, %v561_v18  ;;  %897 = vmatpush.bf16.msra.mxu1 %v3965_v6  ;;  %1342 = vmatpush.bf16.msra.mxu2 %v4041_v20  ;;  %v4437_v17 = vld [vmem:[#allocation8 + $0x4] sm:$0xf0]  ;;  %v742_v30 = vand.u32 2147483647, %v5695_v19  ;;  %v4463_v20 = vld [vmem:[#allocation9 + $0x54] sm:$0xf0] }
 0x126   : > { %v4033_v32 = vor.u32 %v4439_v44, %v4032_v11  ;;  %v656_v38 = vsel %vm5771_vm5, %v5747_v57, %v651_v53  ;;  %v751_v40 = vmul.f32 %v5737_v52, %v750_v25  ;;  %v671_v23 = vsel %vm5819_vm12, %v670_v61, %v666_v16  ;;  %v4074_v61 = vld [vmem:[#allocation8 + $0x68] sm:$0xf0]  ;;  %v4465_v63 = vld [vmem:[#allocation9 + $0x64] sm:$0xf0]  ;;  %v4446_v11 = vld [vmem:[#allocation8 + $0x54] sm:$0xf] }
 0x127   : > { %v5850_v39 = vpop.eup %4733  ;;  %v566_v42 = vsel %vm564_vm15, %v565_v56, %v563_v36  ;;  %v3945_v48 = vor.u32 %v4421_v34, %v3944_v43  ;;  %v3949_v49 = vor.u32 %v4420_v31, %v3946_v33  ;;  %v735_v57 = vsub.f32 1.0, %v5754_v59  ;;  %v4066_v44 = vld [vmem:[#allocation8 + $0x58] sm:$0xf0] }
 0x128   : > { %v689_v45 = vmul.f32 %v5850_v39, %v5802_v41  ;;  %v629_v46 = vmul.f32 0.125, %v566_v42  ;;  %869 = vmatpush.bf16.msra.mxu0 %v3953_v35  ;;  %4530 = vmatpush.bf16.msra.mxu3 %v3953_v35  ;;  %v4025_v10 = vor.u32 %v4437_v17, %v4024_v15  ;;  %v672_v53 = vmul.f32 %v671_v23, %v5602_v9  ;;  %v4466_v15 = vld [vmem:[#allocation9 + $0x74] sm:$0xf]  ;;  %v4162_v17 = vld [vmem:[#allocation9 + $0x78] sm:$0xf0] }
 0x129   : > { %v732_v22 = vmul.f32 %v731_v21, %v5599_v8  ;;  %898 = vmatpush.bf16.msra.mxu1 %v3957_v26  ;;  %1343 = vmatpush.bf16.msra.mxu2 %v4033_v32  ;;  %v657_v55 = vmul.f32 %v656_v38, %v5587_v3  ;;  %v717_v58 = vmul.f32 %v5762_v24, %v5584_v2  ;;  %vm754_vm0 = vweird.f32 %v5737_v52  ;;  %v4058_v32 = vld [vmem:[#allocation8 + $0x48] sm:$0xf0]  ;;  %v4464_v38 = vld [vmem:[#allocation9 + $0x64] sm:$0xf] }
 0x12a   : > { %v690_v25 = vsub.f32 1.0, %v689_v45  ;;  %v5865_v54 = vadd.f32 1e-06, %v629_v46  ;;  %v4085_v59 = vor.u32 %v4450_v60, %v4082_v37  ;;  %v4161_v28 = vor.u32 %v4467_v51, %v4160_v50  ;;  %v4136_v60 = vld [vmem:[#allocation9 + $0x40] sm:$0xf] }
 0x12b   : > { %v5872_v9 = vpack.c.bf16 %v672_v53, %v657_v55  ;;  %v5874_v8 = vpack.c.bf16 %v732_v22, %v717_v58  ;;  %v757_v3 = vand.u32 2147483647, %v5701_v27  ;;  %v759_v2 = vand.u32 2147483648, %v5701_v27  ;;  %v4146_v55 = vld [vmem:[#allocation9 + $0x58] sm:$0xf0] }
 0x12c   : > { %4735 = vrcp.f32 %v5865_v54  ;;  %v691_v24 = vmul.f32 %v5850_v39, %v690_v25  ;;  %870 = vmatpush.bf16.msra.mxu0 %v3945_v48  ;;  %4531 = vmatpush.bf16.msra.mxu3 %v3945_v48  ;;  %v736_v0 = vmul.f32 %v5728_v47, %v735_v57  ;;  %v752_v4 = vadd.f32 %v5737_v52, %v751_v40  ;;  %v4462_v25 = vld [vmem:[#allocation9 + $0x54] sm:$0xf]  ;;  %v4122_v40 = vld [vmem:[#allocation9 + $0x28] sm:$0xf0] }
 0x12d   : > { %7868 = vst [vmem:[#allocation26_spill] sm:$0xff] %v5872_v9  ;;  %vm693_vm1 = vweird.f32 %v5802_v41  ;;  %vm694_vm2 = vweird.f32 %v5850_v39  ;;  %899 = vmatpush.bf16.msra.mxu1 %v3949_v49  ;;  %1344 = vmatpush.bf16.msra.mxu2 %v4025_v10  ;;  %vm753_vm3 = vweird.f32 %v5701_v27  ;;  %v697_v56 = vand.u32 2147483647, %v5802_v41  ;;  %v4144_v27 = vld [vmem:[#allocation9 + $0x50] sm:$0xf] }
 0x12e   : > { %7869 = vst [vmem:[#allocation27_spill] sm:$0xff] %v5874_v8  ;;  %v4077_v5 = vor.u32 %v4448_v29, %v4074_v61  ;;  %v4153_v6 = vor.u32 %v4465_v63, %v4152_v62  ;;  %vm738_vm4 = vweird.f32 %v5695_v19  ;;  %vm5889_vm5 = vmor %vm753_vm3, %vm754_vm0  ;;  %v699_v18 = vand.u32 2147483648, %v5802_v41  ;;  %v4444_v41 = vld [vmem:[#allocation8 + $0x44] sm:$0xf]  ;;  %v4461_v49 = vld [vmem:[#allocation9 + $0x44] sm:$0xf0] }
 0x12f   : > { %871 = vmatmul.bf16.vlgmr.msra.gmra.mxu0 %v5872_v9  ;;  %881 = vmatmul.bf16.vlgmr.msra.gmra.mxu3 %v5874_v8  ;;  %v744_v43 = vand.u32 2147483648, %v5695_v19  ;;  %vm5897_vm6 = vcmp.eq.f32.partialorder %v757_v3, 8.507059e+37  ;;  %v760_v35 = vor.u32 1.1754944e-38, %v759_v2  ;;  %v692_v26 = vadd.f32 %v5850_v39, %v691_v24  ;;  %vm5906_vm7 = vmor %vm693_vm1, %vm694_vm2  ;;  %v4442_v29 = vld [vmem:[#allocation8 + $0x34] sm:$0xf] }
 0x130   : > { %1366 = vmatpush.bf16.msrb.mxu3 %v4085_v59  ;;  %1811 = vmatpush.bf16.msrb.mxu0 %v4161_v28  ;;  %v737_v33 = vadd.f32 %v5728_v47, %v736_v0  ;;  %vm739_vm8 = vweird.f32 %v5728_v47  ;;  %v756_v16 = vsel %vm5889_vm5, %v5737_v52, %v752_v4  ;;  %v4069_v36 = vor.u32 %v4446_v11, %v4066_v44  ;;  %v4154_v52 = vld [vmem:[#allocation9 + $0x68] sm:$0xf0]  ;;  %v4050_v61 = vld [vmem:[#allocation8 + $0x38] sm:$0xf0]  ;;  %v4128_v3 = vld [vmem:[#allocation9 + $0x30] sm:$0xf] }
 0x131   : > { %900 = vmatmul.bf16.vlgmr.msra.gmra.mxu1 %v5872_v9  ;;  %1345 = vmatmul.bf16.vlgmr.msra.gmra.mxu2 %v5872_v9  ;;  %vm5919_vm9 = vcmp.eq.f32.partialorder %v697_v56, 8.507059e+37  ;;  %v4145_v42 = vor.u32 %v4463_v20, %v4144_v27  ;;  %v5925_v37 = vor.u32 %v4466_v15, %v4162_v17  ;;  %v700_v45 = vor.u32 1.1754944e-38, %v699_v18  ;;  %vm5934_vm11 = vmor %vm738_vm4, %vm739_vm8  ;;  %v4459_v2 = vld [vmem:[#allocation9 + $0x34] sm:$0xf0]  ;;  %v4460_v11 = vld [vmem:[#allocation9 + $0x44] sm:$0xf] }
 0x132   : > { %v5912_v31 = vpop.eup %4735  ;;  %vm678_vm10 = vweird.f32 %v5865_v54  ;;  %v682_v46 = vand.u32 2147483647, %v5865_v54  ;;  %v684_v48 = vand.u32 2147483648, %v5865_v54  ;;  %v696_v51 = vsel %vm5906_vm7, %v5850_v39, %v692_v26  ;;  %v4138_v44 = vld [vmem:[#allocation9 + $0x48] sm:$0xf0] }
 0x133   : > { %v674_v23 = vmul.f32 %v5912_v31, %v5865_v54  ;;  %vm679_vm12 = vweird.f32 %v5912_v31  ;;  %4532 = vmatpush.bf16.msrb.mxu1 %v5925_v37  ;;  %v5943_v10 = vor.u32 %v4464_v38, %v4154_v52  ;;  %v741_v53 = vsel %vm5934_vm11, %v5728_v47, %v737_v33  ;;  %v4042_v27 = vld [vmem:[#allocation8 + $0x28] sm:$0xf0]  ;;  %v4120_v20 = vld [vmem:[#allocation9 + $0x20] sm:$0xf]  ;;  %v4112_v33 = vld [vmem:[#allocation9 + $0x10] sm:$0xf] }
 0x134   : > { %1367 = vmatpush.bf16.msrb.mxu3 %v4077_v5  ;;  %1812 = vmatpush.bf16.msrb.mxu0 %v4153_v6  ;;  %v761_v22 = vsel %vm5897_vm6, %v760_v35, %v756_v16  ;;  %v745_v58 = vor.u32 1.1754944e-38, %v744_v43  ;;  %v4061_v39 = vor.u32 %v4444_v41, %v4058_v32  ;;  %v4137_v28 = vor.u32 %v4461_v49, %v4136_v60  ;;  %vm5959_vm14 = vmor %vm678_vm10, %vm679_vm12  ;;  %v4440_v6 = vld [vmem:[#allocation8 + $0x24] sm:$0xf]  ;;  %v4457_v43 = vld [vmem:[#allocation9 + $0x24] sm:$0xf0] }
 0x135   : > { %v675_v57 = vsub.f32 1.0, %v674_v23  ;;  %vm743_vm13 = vcmp.eq.f32.partialorder %v742_v30, 8.507059e+37  ;;  %v701_v47 = vsel %vm5919_vm9, %v700_v45, %v696_v51  ;;  %v685_v63 = vor.u32 1.1754944e-38, %v684_v48  ;;  %v4455_v16 = vld [vmem:[#allocation9 + $0x14] sm:$0xf0] }
 0x136   : > { %v746_v24 = vsel %vm743_vm13, %v745_v58, %v741_v53  ;;  %vm683_vm15 = vcmp.eq.f32.partialorder %v682_v46, 8.507059e+37  ;;  %v5965_v19 = vor.u32 %v4462_v25, %v4146_v55  ;;  %v762_v30 = vmul.f32 %v761_v22, %v5596_v7  ;;  %v4436_v15 = vld [vmem:[#allocation8 + $0x4] sm:$0xf]  ;;  %v4026_v23 = vld [vmem:[#allocation8 + $0x8] sm:$0xf0]  ;;  %v2014_v22 = vld [vmem:[#allocation2 + $0xf0] sm:$0xff] }
 0x137   : > { %v676_v59 = vmul.f32 %v5912_v31, %v675_v57  ;;  %4533 = vmatpush.bf16.msrb.mxu1 %v5943_v10  ;;  %v4053_v4 = vor.u32 %v4442_v29, %v4050_v61  ;;  %v702_v56 = vmul.f32 %v701_v47, %v5611_v13  ;;  %v4129_v5 = vor.u32 %v4459_v2, %v4128_v3  ;;  %v4456_v38 = vld [vmem:[#allocation9 + $0x24] sm:$0xf]  ;;  %v4453_v60 = vld [vmem:[#allocation9 + $0x4] sm:$0xf0]  ;;  %v4454_v48 = vld [vmem:[#allocation9 + $0x14] sm:$0xf] }
 0x138   : > { %1368 = vmatpush.bf16.msrb.mxu3 %v4069_v36  ;;  %1813 = vmatpush.bf16.msrb.mxu0 %v4145_v42  ;;  %v747_v18 = vmul.f32 %v746_v24, %v5581_v1  ;;  %v4141_v35 = vor.u32 %v4460_v11, %v4138_v44  ;;  %v4045_v13 = vor.u32 %v4440_v6, %v4042_v27  ;;  %v4034_v1 = vld [vmem:[#allocation8 + $0x18] sm:$0xf0]  ;;  %v4104_v42 = vld [vmem:[#allocation9] sm:$0xf]  ;;  %v4452_v51 = vld [vmem:[#allocation9 + $0x4] sm:$0xf] }
 0x139   : > { %v677_v0 = vadd.f32 %v5912_v31, %v676_v59  ;;  %v4121_v34 = vor.u32 %v4457_v43, %v4120_v20  ;;  %v4130_v36 = vld [vmem:[#allocation9 + $0x38] sm:$0xf0]  ;;  %v4113_v32 = vor.u32 %v4455_v16, %v4112_v33  ;;  %v4125_v52 = vor.u32 %v4456_v38, %v4122_v40  ;;  %v4106_v57 = vld [vmem:[#allocation9 + $0x8] sm:$0xf0]  ;;  %v2013_v25 = vld [vmem:[#allocation2 + $0x60] sm:$0xff] }
 0x13a   : > { %v5975_v21 = vpack.c.bf16 %v762_v30, %v747_v18  ;;  %v4029_v45 = vor.u32 %v4436_v15, %v4026_v23  ;;  %v4105_v46 = vor.u32 %v4453_v60, %v4104_v42  ;;  %v4114_v49 = vld [vmem:[#allocation9 + $0x18] sm:$0xf0]  ;;  %v4109_v53 = vor.u32 %v4452_v51, %v4106_v57  ;;  %v2011_v58 = vld [vmem:[#allocation2 + $0xe8] sm:$0xff]  ;;  %v2007_v29 = vld [vmem:[#allocation2 + $0x30] sm:$0xff] }
 0x13b   : > { %v681_v54 = vsel %vm5959_vm14, %v5912_v31, %v677_v0  ;;  %4534 = vmatpush.bf16.msrb.mxu1 %v5965_v19  ;;  %v4438_v31 = vld [vmem:[#allocation8 + $0x14] sm:$0xf]  ;;  %v4117_v50 = vor.u32 %v4454_v48, %v4114_v49  ;;  %v2012_v55 = vld [vmem:[#allocation2 + $0xb8] sm:$0xff]  ;;  %v2010_v59 = vld [vmem:[#allocation2 + $0x88] sm:$0xff] }
 0x13c   : > { %1369 = vmatpush.bf16.msrb.mxu3 %v4061_v39  ;;  %1814 = vmatpush.bf16.msrb.mxu0 %v4137_v28  ;;  %v686_v12 = vsel %vm683_vm15, %v685_v63, %v681_v54  ;;  %7882 = vst [vmem:[#allocation28_spill] sm:$0xff] %v5975_v21  ;;  %v4037_v41 = vor.u32 %v4438_v31, %v4034_v1  ;;  %v2009_v39 = vld [vmem:[#allocation2 + $0x80] sm:$0xff]  ;;  %v2008_v28 = vld [vmem:[#allocation2 + $0x48] sm:$0xff]  ;;  %v2005_v47 = vld [vmem:[#allocation2 + $0x50] sm:$0xff] }
 0x13d   : > { %v687_v7 = vmul.f32 %v686_v12, %v5614_v14  ;;  %v4458_v14 = vld [vmem:[#allocation9 + $0x34] sm:$0xf]  ;;  %v2006_v61 = vld [vmem:[#allocation2 + $0x68] sm:$0xff]  ;;  %v2004_v2 = vld [vmem:[#allocation2 + $0x18] sm:$0xff] }
 0x13e   : > { %v4133_v17 = vor.u32 %v4458_v14, %v4130_v36  ;;  %v2003_v0 = vld [vmem:[#allocation2 + $0xd8] sm:$0xff]  ;;  %v2001_v54 = vld [vmem:[#allocation2 + $0xb0] sm:$0xff] }
 0x13f   : > { %v5977_v26 = vpack.c.bf16 %v702_v56, %v687_v7  ;;  %886 = vmatmul.bf16.gmra.mxu3 %v5975_v21  ;;  %4535 = vmatpush.bf16.msrb.mxu1 %v4141_v35 }
 0x140   : > { %1370 = vmatpush.bf16.msrb.mxu3 %v4053_v4  ;;  %1815 = vmatpush.bf16.msrb.mxu0 %v4129_v5 }
 0x141   : > { %7883 = vst [vmem:[#allocation29_spill] sm:$0xff] %v5977_v26  ;;  %876 = vmatmul.bf16.gmra.mxu0 %v5977_v26  ;;  %905 = vmatmul.bf16.gmra.mxu1 %v5977_v26 }
 0x142   : > { %1350 = vmatmul.bf16.gmra.mxu2 %v5977_v26 }
 0x143   : > { %4536 = vmatpush.bf16.msrb.mxu1 %v4133_v17 }
 0x144   : > { %1371 = vmatpush.bf16.msrb.mxu3 %v4045_v13  ;;  %1816 = vmatpush.bf16.msrb.mxu0 %v4121_v34 }
 0x147   : > { %4537 = vmatpush.bf16.msrb.mxu1 %v4125_v52 }
 0x148   : > { %1372 = vmatpush.bf16.msrb.mxu3 %v4037_v41  ;;  %1817 = vmatpush.bf16.msrb.mxu0 %v4113_v32 }
 0x14b   : > { %4538 = vmatpush.bf16.msrb.mxu1 %v4117_v50 }
 0x14c   : > { %1373 = vmatpush.bf16.msrb.mxu3 %v4029_v45  ;;  %1818 = vmatpush.bf16.msrb.mxu0 %v4105_v46 }
 0x14f   : > { %1374 = vmatmul.bf16.vlgmr.msrb.gmra.mxu3 %v5872_v9  ;;  %4539 = vmatpush.bf16.msrb.mxu1 %v4109_v53 }
 0x150   : > { %1840 = vmatpush.bf16.msra.mxu0 %v5925_v37  ;;  %v2016_v37 = vld [vmem:[#allocation2 + $0x78] sm:$0xff] }
 0x151   : > { %910 = vmatmul.bf16.gmra.mxu1 %v5874_v8  ;;  %1819 = vmatmul.bf16.vlgmr.msrb.gmra.mxu0 %v5872_v9 }
 0x152   : > { %1355 = vmatmul.bf16.gmra.mxu2 %v5874_v8  ;;  %2017 = vmatpush.msra.mxu3 %v2016_v37 }
 0x154   : > { %1841 = vmatpush.bf16.msra.mxu0 %v5943_v10  ;;  %v2015_v10 = vld [vmem:[#allocation2 + $0x8] sm:$0xff] }
 0x155   : > { %2018 = vmatpush.msra.mxu3 %v2015_v10 }
 0x157   : > { %2019 = vmatpush.msra.mxu3 %v2014_v22 }
 0x158   : > { %1842 = vmatpush.bf16.msra.mxu0 %v5965_v19  ;;  %v2002_v19 = vld [vmem:[#allocation2] sm:$0xff] }
 0x159   : > { %2020 = vmatpush.msra.mxu3 %v2013_v25 }
 0x15b   : > { %2021 = vmatpush.msra.mxu3 %v2012_v55 }
 0x15c   : > { %1843 = vmatpush.bf16.msra.mxu0 %v4141_v35 }
 0x15d   : > { %2022 = vmatpush.msra.mxu3 %v2011_v58 }
 0x15f   : > { %1379 = vmatmul.bf16.gmra.mxu3 %v5977_v26 }
 0x160   : > { %1844 = vmatpush.bf16.msra.mxu0 %v4133_v17  ;;  %2023 = vmatpush.msra.mxu3 %v2010_v59 }
 0x161   : > { %915 = vmatmul.bf16.gmra.mxu1 %v5975_v21  ;;  %1824 = vmatmul.bf16.gmra.mxu0 %v5977_v26 }
 0x162   : > { %1360 = vmatmul.bf16.gmra.mxu2 %v5975_v21  ;;  %2024 = vmatpush.msra.mxu3 %v2009_v39 }
 0x164   : > { %1845 = vmatpush.bf16.msra.mxu0 %v4125_v52  ;;  %2025 = vmatpush.msra.mxu3 %v2008_v28 }
 0x166   : > { %2026 = vmatpush.msra.mxu3 %v2007_v29 }
 0x168   : > { %1846 = vmatpush.bf16.msra.mxu0 %v4117_v50  ;;  %2027 = vmatpush.msra.mxu3 %v2006_v61 }
 0x16a   : > { %2028 = vmatpush.msra.mxu3 %v2005_v47 }
 0x16c   : > { %1847 = vmatpush.bf16.msra.mxu0 %v4109_v53  ;;  %2029 = vmatpush.msra.mxu3 %v2004_v2 }
 0x16e   : > { %2030 = vmatpush.msra.mxu3 %v2003_v0 }
 0x16f   : > { %1384 = vmatmul.bf16.gmra.mxu3 %v5874_v8 }
 0x170   : > { %2031 = vmatpush.msra.mxu3 %v2002_v19 }
 0x171   : > { %1829 = vmatmul.bf16.gmra.mxu0 %v5874_v8  ;;  %1853 = vmatmul.bf16.vlgmr.msrb.gmra.mxu1 %v5977_v26 }
 0x172   : > { %2032 = vmatpush.msra.mxu3 %v2001_v54 }
 0x17f   : > { %1389 = vmatmul.bf16.gmra.mxu3 %v5975_v21 }
 0x181   : > { %1834 = vmatmul.bf16.gmra.mxu0 %v5975_v21  ;;  %1858 = vmatmul.bf16.gmra.mxu1 %v5874_v8 }
 0x191   : > { %1848 = vmatmul.bf16.vlgmr.msra.gmra.mxu0 %v5872_v9  ;;  %1863 = vmatmul.bf16.gmra.mxu1 %v5975_v21 }
 0x1ac   : > { %v6002_v62 = vpop.f32.mrf.mxu0 }
 0x1ad   : > { %v4006_v63 = vmul.f32 -1.442695, %v6002_v62 }
 0x1ae   : > { %v6005_v3 = vpop.f32.mrf.mxu1 }
 0x1af   : > { %v4007_v24 = vmul.f32 -1.442695, %v6005_v3  ;;  %4737 = vpow2.f32 %v4006_v63 }
 0x1b1   : > { %4739 = vpow2.f32 %v4007_v24 }
 0x1b2   : > { %v6008_v30 = vpop.f32.mrf.mxu3 }
 0x1b3   : > { %v4014_v35 = vmul.f32 -1.442695, %v6008_v30 }
 0x1b4   : > { %v6010_v4 = vpop.f32.mrf.mxu2  ;;  %v6013_v5 = vpop.f32.mrf.mxu0 }
 0x1b5   : > { %v4086_v56 = vmul.f32 -1.442695, %v6010_v4  ;;  %v4738_v6 = vpop.eup %4737  ;;  %v4008_v18 = vmul.f32 -1.442695, %v6013_v5 }
 0x1b6   : > { %v6015_v11 = vpop.f32.mrf.mxu1  ;;  %v969_v12 = vadd.f32 1.0, %v4738_v6 }
 0x1b7   : > { %7884 = vst [vmem:[#allocation30_spill] sm:$0xff] %v6015_v11  ;;  %v4740_v44 = vpop.eup %4739  ;;  %4741 = vpow2.f32 %v4086_v56  ;;  %v4009_v16 = vmul.f32 -1.442695, %v6015_v11 }
 0x1b8   : > { %v970_v27 = vadd.f32 1.0, %v4740_v44  ;;  %4743 = vrcp.f32 %v969_v12  ;;  %v994_v32 = vand.u32 2147483647, %v969_v12  ;;  %v996_v15 = vand.u32 2147483648, %v969_v12 }
 0x1b9   : > { %vm990_vm2 = vweird.f32 %v969_v12 }
 0x1ba   : > { %4745 = vrcp.f32 %v970_v27  ;;  %v6018_v20 = vpop.f32.mrf.mxu3  ;;  %v1011_v38 = vand.u32 2147483648, %v970_v27  ;;  %v1009_v46 = vand.u32 2147483647, %v970_v27  ;;  %vm1005_vm3 = vweird.f32 %v970_v27 }
 0x1bb   : > { %4747 = vpow2.f32 %v4008_v18  ;;  %v997_v57 = vor.u32 1.1754944e-38, %v996_v15  ;;  %vm995_vm5 = vcmp.eq.f32.partialorder %v994_v32, 8.507059e+37  ;;  %v4016_v61 = vmul.f32 -1.442695, %v6018_v20 }
 0x1bc   : > { %v6020_v43 = vpop.f32.mrf.mxu2  ;;  %4749 = vpow2.f32 %v4014_v35  ;;  %v1012_v25 = vor.u32 1.1754944e-38, %v1011_v38  ;;  %vm1010_vm7 = vcmp.eq.f32.partialorder %v1009_v46, 8.507059e+37 }
 0x1bd   : > { %v4742_v7 = vpop.eup %4741  ;;  %v4088_v31 = vmul.f32 -1.442695, %v6020_v43 }
 0x1be   : > { %v6023_v13 = vpop.f32.mrf.mxu1  ;;  %v4744_v34 = vpop.eup %4743  ;;  %v6027_v40 = vadd.f32 1.0, %v4742_v7 }
 0x1bf   : > { %7885 = vst [vmem:[#allocation31_spill] sm:$0xff] %v6023_v13  ;;  %v986_v33 = vmul.f32 %v4744_v34, %v969_v12  ;;  %4751 = vpow2.f32 %v4088_v31  ;;  %vm991_vm0 = vweird.f32 %v4744_v34  ;;  %v6033_v52 = vpop.f32.mrf.mxu0 }
 0x1c0   : > { %v4746_v1 = vpop.eup %4745  ;;  %4753 = vpow2.f32 %v4009_v16  ;;  %vm992_vm4 = vmor %vm990_vm2, %vm991_vm0  ;;  %v4010_v37 = vmul.f32 -1.442695, %v6033_v52  ;;  %vm1464_vm9 = vweird.f32 %v6027_v40 }
 0x1c1   : > { %v4748_v14 = vpop.eup %4747  ;;  %v1001_v36 = vmul.f32 %v4746_v1, %v970_v27  ;;  %v987_v41 = vsub.f32 1.0, %v986_v33  ;;  %vm1006_vm1 = vweird.f32 %v4746_v1  ;;  %4755 = vrcp.f32 %v6027_v40 }
 0x1c2   : > { %v6029_v23 = vpop.f32.mrf.mxu3  ;;  %v6031_v60 = vadd.f32 1.0, %v4748_v14  ;;  %v4750_v10 = vpop.eup %4749  ;;  %vm1007_vm6 = vmor %vm1005_vm3, %vm1006_vm1 }
 0x1c3   : > { %v1002_v17 = vsub.f32 1.0, %v1001_v36  ;;  %7886 = vst [vmem:[#allocation32_spill] sm:$0xff] %v6029_v23  ;;  %v988_v42 = vmul.f32 %v4744_v34, %v987_v41  ;;  %v6053_v24 = vadd.f32 1.0, %v4750_v10  ;;  %v4018_v18 = vmul.f32 -1.442695, %v6029_v23 }
 0x1c4   : > { %4757 = vrcp.f32 %v6031_v60  ;;  %v1026_v38 = vand.u32 2147483648, %v6031_v60  ;;  %vm1020_vm10 = vweird.f32 %v6031_v60 }
 0x1c5   : > { %v1003_v45 = vmul.f32 %v4746_v1, %v1002_v17  ;;  %v6035_v48 = vpop.f32.mrf.mxu2  ;;  %v989_v49 = vadd.f32 %v4744_v34, %v988_v42  ;;  %v4752_v55 = vpop.eup %4751  ;;  %v1024_v17 = vand.u32 2147483647, %v6031_v60 }
 0x1c6   : > { %v4090_v50 = vmul.f32 -1.442695, %v6035_v48  ;;  %v6038_v51 = vpop.f32.mrf.mxu1  ;;  %v4754_v39 = vpop.eup %4753  ;;  %v6049_v63 = vadd.f32 1.0, %v4752_v55 }
 0x1c7   : > { %7887 = vst [vmem:[#allocation33_spill] sm:$0xff] %v6038_v51  ;;  %v1004_v53 = vadd.f32 %v4746_v1, %v1003_v45  ;;  %v993_v22 = vsel %vm992_vm4, %v4744_v34, %v989_v49  ;;  %v6055_v0 = vpop.eup %4755  ;;  %v6067_v6 = vpop.f32.mrf.mxu0  ;;  %v4013_v46 = vmul.f32 -1.442695, %v6038_v51  ;;  %vm1025_vm12 = vcmp.eq.f32.partialorder %v1024_v17, 8.507059e+37 }
 0x1c8   : > { %v998_v58 = vsel %vm995_vm5, %v997_v57, %v993_v22  ;;  %4759 = vpow2.f32 %v4090_v50  ;;  %v4012_v35 = vmul.f32 -1.442695, %v6067_v6  ;;  %v1460_v31 = vmul.f32 %v6055_v0, %v6027_v40 }
 0x1c9   : > { %v1008_v59 = vsel %vm1007_vm6, %v4746_v1, %v1004_v53  ;;  %v1225_v28 = vmul.f32 %v998_v58, %v6002_v62  ;;  %4761 = vpow2.f32 %v4010_v37  ;;  %v6060_v62 = vadd.f32 1.0, %v4754_v39 }
 0x1ca   : > { %v1013_v29 = vsel %vm1010_vm7, %v1012_v25, %v1008_v59  ;;  %v6051_v2 = vpop.f32.mrf.mxu3  ;;  %v6064_v56 = vpop.eup %4757  ;;  %4763 = vpow2.f32 %v4016_v61  ;;  %v1461_v45 = vsub.f32 1.0, %v1460_v31  ;;  %v1468_v22 = vand.u32 2147483647, %v6027_v40 }
 0x1cb   : > { %v6047_v47 = vmul.f32 %v1013_v29, %v6005_v3  ;;  %7889 = vst [vmem:[#allocation35_spill] sm:$0xff] %v6051_v2  ;;  %2033 = vmatmul.f32.vlgmr.msra.gmra.mxu3 %v1225_v28  ;;  %v4011_v3 = vmul.f32 -1.442695, %v6023_v13  ;;  %4765 = vrcp.f32 %v6049_v63  ;;  %v1016_v34 = vmul.f32 %v6064_v56, %v6031_v60 }
 0x1cc   : > { %7891 = vst [vmem:[#allocation37_spill] sm:$0xff] %v6060_v62  ;;  %4767 = vrcp.f32 %v6053_v24  ;;  %vm1021_vm8 = vweird.f32 %v6064_v56  ;;  %v4020_v58 = vmul.f32 -1.442695, %v6051_v2  ;;  %v1027_v29 = vor.u32 1.1754944e-38, %v1026_v38 }
 0x1cd   : > { %7888 = vst [vmem:[#allocation34_spill] sm:$0xff] %v6047_v47  ;;  %v6058_v19 = vpack.c.bf16 %v6047_v47, %v1225_v28  ;;  %v6062_v54 = vpop.f32.mrf.mxu2  ;;  %4769 = vrcp.f32 %v6060_v62  ;;  %v1017_v15 = vsub.f32 1.0, %v1016_v34  ;;  %v1462_v28 = vmul.f32 %v6055_v0, %v1461_v45  ;;  %vm1022_vm11 = vmor %vm1020_vm10, %vm1021_vm8 }
 0x1ce   : > { %v6069_v44 = vpop.f32.mrf.mxu1  ;;  %v4760_v12 = vpop.eup %4759  ;;  %4771 = vpow2.f32 %v4011_v3  ;;  %v4092_v1 = vmul.f32 -1.442695, %v6062_v54  ;;  %vm1465_vm13 = vweird.f32 %v6055_v0  ;;  %vm6146_vm14 = vcmp.eq.f32.partialorder %v1468_v22, 8.507059e+37 }
 0x1cf   : > { %7890 = vst [vmem:[#allocation36_spill] sm:$0xff] %v6058_v19  ;;  %v6074_v27 = vadd.f32 1.0, %v4760_v12  ;;  %v4762_v7 = vpop.eup %4761  ;;  %v4015_v33 = vmul.f32 -1.442695, %v6069_v44  ;;  %v1018_v53 = vmul.f32 %v6064_v56, %v1017_v15  ;;  %v1470_v12 = vand.u32 2147483648, %v6027_v40  ;;  %vm6155_vm15 = vmor %vm1464_vm9, %vm1465_vm13  ;;  %v6225_v9 = vpop.f32.mrf.mxu0 }
 0x1d0   : > { %v4764_v14 = vpop.eup %4763  ;;  %v6087_v36 = vadd.f32 1.0, %v4762_v7  ;;  %v1463_v17 = vadd.f32 %v6055_v0, %v1462_v28  ;;  %vm1494_vm0 = vweird.f32 %v6049_v63  ;;  %7906 = vst [vmem:[#allocation44_spill] sm:$0xff] %v6225_v9 }
 0x1d1   : > { %4773 = vrcp.f32 %v6074_v27  ;;  %v6089_v41 = vpop.eup %4765  ;;  %v1019_v59 = vadd.f32 %v6064_v56, %v1018_v53  ;;  %v6127_v15 = vadd.f32 1.0, %v4764_v14  ;;  %v1500_v14 = vand.u32 2147483648, %v6049_v63 }
 0x1d2   : > { %v6085_v16 = vpop.f32.mrf.mxu3  ;;  %4775 = vpow2.f32 %v4018_v18  ;;  %v6095_v42 = vpop.eup %4767  ;;  %v1490_v25 = vmul.f32 %v6089_v41, %v6049_v63  ;;  %vm1495_vm2 = vweird.f32 %v6089_v41  ;;  %vm1524_vm5 = vweird.f32 %v6074_v27 }
 0x1d3   : > { %4777 = vpow2.f32 %v4012_v35  ;;  %v6099_v50 = vpop.eup %4769  ;;  %v4087_v57 = vmul.f32 -1.442695, %v6085_v16  ;;  %v1023_v18 = vsel %vm1022_vm11, %v6064_v56, %v1019_v59  ;;  %vm6200_vm3 = vmor %vm1494_vm0, %vm1495_vm2  ;;  %vm1050_vm8 = vweird.f32 %v6087_v36 }
 0x1d4   : > { %4779 = vpow2.f32 %v4092_v1  ;;  %7892 = vst [vmem:[#allocation38_spill] sm:$0xff] %v6099_v50  ;;  %v4772_v10 = vpop.eup %4771  ;;  %v1491_v35 = vsub.f32 1.0, %v1490_v25  ;;  %v1028_v31 = vsel %vm1025_vm12, %v1027_v29, %v1023_v18  ;;  %v1471_v29 = vor.u32 1.1754944e-38, %v1470_v12 }
 0x1d5   : > { %v6091_v32 = vpop.f32.mrf.mxu2  ;;  %4781 = vpow2.f32 %v4015_v33  ;;  %v6132_v45 = vmul.f32 %v1028_v31, %v6013_v5  ;;  %v6142_v53 = vadd.f32 1.0, %v4772_v10 }
 0x1d6   : > { %v4094_v49 = vmul.f32 -1.442695, %v6091_v32  ;;  %v6104_v37 = vpop.f32.mrf.mxu1  ;;  %4783 = vrcp.f32 %v6087_v36 }
 0x1d7   : > { %v6111_v55 = vpop.eup %4773  ;;  %v4017_v61 = vmul.f32 -1.442695, %v6104_v37  ;;  %7893 = vst [vmem:[#allocation39_spill] sm:$0xff] %v6132_v45  ;;  %2036 = vmatmul.f32.gmra.mxu3 %v6132_v45  ;;  %v6314_v2 = vpop.f32.mrf.mxu0 }
 0x1d8   : > { %4785 = vpow2.f32 %v4094_v49  ;;  %v4776_v39 = vpop.eup %4775  ;;  %v1520_v34 = vmul.f32 %v6111_v55, %v6074_v27  ;;  %7894 = vst [vmem:[#allocation40_spill] sm:$0xff] %v6142_v53  ;;  %vm1525_vm4 = vweird.f32 %v6111_v55 }
 0x1d9   : > { %4787 = vpow2.f32 %v4013_v46  ;;  %v4778_v3 = vpop.eup %4777  ;;  %v6161_v22 = vadd.f32 1.0, %v4776_v39  ;;  %v1501_v39 = vor.u32 1.1754944e-38, %v1500_v14  ;;  %vm6242_vm7 = vmor %vm1524_vm5, %vm1525_vm4  ;;  %7917 = vst [vmem:[#allocation49_spill] sm:$0xff] %v6314_v2  ;;  %v1056_v2 = vand.u32 2147483648, %v6087_v36 }
 0x1da   : > { %4789 = vpow2.f32 %v4087_v57  ;;  %v6122_v7 = vpop.f32.mrf.mxu3  ;;  %v4780_v60 = vpop.eup %4779  ;;  %v1498_v57 = vand.u32 2147483647, %v6049_v63  ;;  %v1521_v59 = vsub.f32 1.0, %v1520_v34  ;;  %v6178_v34 = vadd.f32 1.0, %v4778_v3 }
 0x1db   : > { %v4089_v1 = vmul.f32 -1.442695, %v6122_v7  ;;  %v4782_v33 = vpop.eup %4781  ;;  %4791 = vpow2.f32 %v4020_v58  ;;  %v6129_v38 = vadd.f32 1.0, %v4780_v60  ;;  %v1492_v58 = vmul.f32 %v6089_v41, %v1491_v35 }
 0x1dc   : > { %v6134_v56 = vpop.eup %4783  ;;  %v6138_v46 = vadd.f32 1.0, %v4782_v33  ;;  %4793 = vpow2.f32 %v4017_v61  ;;  %v1467_v61 = vsel %vm6155_vm15, %v6055_v0, %v1463_v17  ;;  %vm6173_vm1 = vcmp.eq.f32.partialorder %v1498_v57, 8.507059e+37 }
 0x1dd   : > { %4795 = vrcp.f32 %v6129_v38  ;;  %v6169_v40 = vpop.f32.mrf.mxu2  ;;  %v1046_v60 = vmul.f32 %v6134_v56, %v6087_v36  ;;  %v1493_v31 = vadd.f32 %v6089_v41, %v1492_v58  ;;  %v1528_v57 = vand.u32 2147483647, %v6074_v27 }
 0x1de   : > { %v4786_v49 = vpop.eup %4785  ;;  %4797 = vpow2.f32 %v4089_v1  ;;  %v1522_v1 = vmul.f32 %v6111_v55, %v1521_v59  ;;  %v4096_v3 = vmul.f32 -1.442695, %v6169_v40  ;;  %v1530_v58 = vand.u32 2147483648, %v6074_v27  ;;  %v6283_v9 = vpop.f32.mrf.mxu1 }
 0x1df   : > { %v4788_v5 = vpop.eup %4787  ;;  %4799 = vrcp.f32 %v6127_v15  ;;  %v6167_v18 = vadd.f32 1.0, %v4786_v49  ;;  %v1472_v49 = vsel %vm6146_vm14, %v1471_v29, %v1467_v61  ;;  %v1047_v59 = vsub.f32 1.0, %v1046_v60  ;;  %v6406_v47 = vpop.f32.mrf.mxu0 }
 0x1e0   : > { %v4790_v28 = vpop.eup %4789  ;;  %4801 = vrcp.f32 %v6138_v46  ;;  %v6193_v10 = vadd.f32 1.0, %v4788_v5  ;;  %v1497_v60 = vsel %vm6200_vm3, %v6089_v41, %v1493_v31  ;;  %v1523_v63 = vadd.f32 %v6111_v55, %v1522_v1 }
 0x1e1   : > { %v4792_v12 = vpop.eup %4791  ;;  %4803 = vrcp.f32 %v6142_v53  ;;  %v6183_v33 = vadd.f32 1.0, %v4790_v28  ;;  %v6223_v26 = vmul.f32 %v1472_v49, %v6010_v4  ;;  %vm6230_vm6 = vcmp.eq.f32.partialorder %v1528_v57, 8.507059e+37 }
 0x1e2   : > { %v4794_v0 = vpop.eup %4793  ;;  %4805 = vrcp.f32 %v6161_v22  ;;  %7901 = vst [vmem:[#allocation41_spill] sm:$0xff] %v6193_v10  ;;  %v6206_v29 = vadd.f32 1.0, %v4792_v12  ;;  %v1502_v4 = vsel %vm6173_vm1, %v1501_v39, %v1497_v60  ;;  %v1531_v35 = vor.u32 1.1754944e-38, %v1530_v58 }
 0x1e3   : > { %v6185_v17 = vpop.eup %4795  ;;  %4807 = vrcp.f32 %v6167_v18  ;;  %v6217_v21 = vadd.f32 1.0, %v4794_v0  ;;  %v1048_v0 = vmul.f32 %v6134_v56, %v1047_v59  ;;  %v1131_v59 = vand.u32 2147483648, %v6138_v46 }
 0x1e4   : > { %v4798_v14 = vpop.eup %4797  ;;  %4809 = vrcp.f32 %v6178_v34  ;;  %7904 = vst [vmem:[#allocation42_spill] sm:$0xff] %v6206_v29  ;;  %v1550_v5 = vmul.f32 %v6185_v17, %v6129_v38  ;;  %vm1051_vm9 = vweird.f32 %v6134_v56  ;;  %v1054_v60 = vand.u32 2147483647, %v6087_v36 }
 0x1e5   : > { %v6196_v28 = vpop.eup %4799  ;;  %4811 = vrcp.f32 %v6183_v33  ;;  %v6227_v51 = vadd.f32 1.0, %v4798_v14  ;;  %v1560_v14 = vand.u32 2147483648, %v6129_v38  ;;  %v6269_v58 = vadd.f32 %v6134_v56, %v1048_v0  ;;  %v6285_v41 = vpop.f32.mrf.mxu2  ;;  %vm6327_vm15 = vmor %vm1050_vm8, %vm1051_vm9 }
 0x1e6   : > { %v6210_v61 = vpop.eup %4801  ;;  %4813 = vpow2.f32 %v4096_v3  ;;  %v1551_v27 = vsub.f32 1.0, %v1550_v5  ;;  %v1527_v3 = vsel %vm6242_vm7, %v6111_v55, %v1523_v63  ;;  %v6265_v5 = vmul.f32 %v1502_v4, %v6020_v43  ;;  %7912 = vst [vmem:[#allocation46_spill] sm:$0xff] %v6285_v41 }
 0x1e7   : > { %v6219_v8 = vpop.eup %4803  ;;  %4815 = vrcp.f32 %v6193_v10  ;;  %v1121_v49 = vmul.f32 %v6210_v61, %v6138_v46  ;;  %v1558_v55 = vand.u32 2147483647, %v6129_v38  ;;  %v1532_v1 = vsel %vm6230_vm6, %v1531_v35, %v1527_v3 }
 0x1e8   : > { %7905 = vst [vmem:[#allocation43_spill] sm:$0xff] %v6219_v8  ;;  %v6236_v31 = vpop.eup %4805  ;;  %4817 = vrcp.f32 %v6206_v29  ;;  %v1552_v12 = vmul.f32 %v6185_v17, %v1551_v27  ;;  %vm1554_vm10 = vweird.f32 %v6129_v38  ;;  %v1129_v43 = vand.u32 2147483647, %v6138_v46 }
 0x1e9   : > { %v6249_v57 = vpop.eup %4807  ;;  %4819 = vrcp.f32 %v6217_v21  ;;  %v1122_v19 = vsub.f32 1.0, %v1121_v49  ;;  %v1590_v0 = vand.u32 2147483648, %v6167_v18  ;;  %v1485_v4 = vand.u32 2147483648, %v6183_v33 }
 0x1ea   : > { %v6256_v39 = vpop.eup %4809  ;;  %4821 = vrcp.f32 %v6227_v51  ;;  %v1580_v13 = vmul.f32 %v6249_v57, %v6167_v18  ;;  %v1561_v27 = vor.u32 1.1754944e-38, %v1560_v14  ;;  %v6289_v49 = vor.u32 1.1754944e-38, %v1131_v59  ;;  %v6304_v59 = vpop.f32.mrf.mxu3 }
 0x1eb   : > { %v6262_v25 = vpop.eup %4811  ;;  %v6298_v11 = vmul.f32 %v1532_v1, %v6035_v48  ;;  %vm1555_vm11 = vweird.f32 %v6185_v17  ;;  %vm1125_vm12 = vweird.f32 %v6138_v46  ;;  %v1588_v8 = vand.u32 2147483647, %v6167_v18 }
 0x1ec   : > { %v4814_v63 = vpop.eup %4813  ;;  %v1475_v35 = vmul.f32 %v6262_v25, %v6183_v33  ;;  %v1161_v14 = vand.u32 2147483648, %v6217_v21  ;;  %vm6309_vm13 = vcmp.eq.f32.partialorder %v1558_v55, 8.507059e+37  ;;  %v1123_v48 = vmul.f32 %v6210_v61, %v1122_v19  ;;  %vm6342_vm0 = vmor %vm1554_vm10, %vm1555_vm11 }
 0x1ed   : > { %v6277_v45 = vpop.eup %4815  ;;  %7914 = vst [vmem:[#allocation48_spill] sm:$0xff] %v6298_v11  ;;  %v1581_v1 = vsub.f32 1.0, %v1580_v13  ;;  %vm1126_vm14 = vweird.f32 %v6210_v61  ;;  %v6318_v50 = vor.u32 1.1754944e-38, %v1590_v0  ;;  %v1483_v62 = vand.u32 2147483647, %v6183_v33  ;;  %v6376_v11 = vpop.f32.mrf.mxu2 }
 0x1ee   : > { %7911 = vst [vmem:[#allocation45_spill] sm:$0xff] %v6277_v45  ;;  %v6287_v3 = vpop.eup %4817  ;;  %v6293_v45 = vadd.f32 1.0, %v4814_v63  ;;  %v1553_v63 = vadd.f32 %v6185_v17, %v1552_v12  ;;  %v6321_v23 = vor.u32 1.1754944e-38, %v1485_v4  ;;  %v1476_v13 = vsub.f32 1.0, %v1475_v35  ;;  %vm6382_vm7 = vmor %vm1125_vm12, %vm1126_vm14 }
 0x1ef   : > { %7913 = vst [vmem:[#allocation47_spill] sm:$0xff] %v6287_v3  ;;  %v6295_v10 = vpop.eup %4819  ;;  %v1053_v0 = vsel %vm6327_vm15, %v6134_v56, %v6269_v58  ;;  %vm1585_vm1 = vweird.f32 %v6249_v57  ;;  %v6347_v35 = vor.u32 1.1754944e-38, %v1161_v14  ;;  %v1124_v58 = vadd.f32 %v6210_v61, %v1123_v48 }
 0x1f0   : > { %v6306_v53 = vpop.eup %4821  ;;  %4823 = vrcp.f32 %v6293_v45  ;;  %v1151_v19 = vmul.f32 %v6295_v10, %v6217_v21  ;;  %v1557_v56 = vsel %vm6342_vm0, %v6185_v17, %v1553_v63  ;;  %v1582_v38 = vmul.f32 %v6249_v57, %v1581_v1 }
 0x1f1   : > { %v1505_v55 = vmul.f32 %v6306_v53, %v6227_v51  ;;  %vm1584_vm2 = vweird.f32 %v6167_v18  ;;  %v4019_v12 = vmul.f32 -1.442695, %v6283_v9  ;;  %vm6359_vm3 = vcmp.eq.f32.partialorder %v1129_v43, 8.507059e+37 }
 0x1f2   : > { %vm1480_vm4 = vweird.f32 %v6262_v25  ;;  %v1057_v3 = vor.u32 1.1754944e-38, %v1056_v2  ;;  %v4098_v36 = vmul.f32 -1.442695, %v6285_v41  ;;  %v4091_v4 = vmul.f32 -1.442695, %v6304_v59  ;;  %v6374_v41 = vpop.f32.mrf.mxu1  ;;  %vm6426_vm14 = vmor %vm1584_vm2, %vm1585_vm1 }
 0x1f3   : > { %v1076_v17 = vmul.f32 %v6256_v39, %v6178_v34  ;;  %v1477_v48 = vmul.f32 %v6262_v25, %v1476_v13  ;;  %v1152_v1 = vsub.f32 1.0, %v1151_v19  ;;  %vm1055_vm5 = vcmp.eq.f32.partialorder %v1054_v60, 8.507059e+37 }
 0x1f4   : > { %4825 = vpow2.f32 %v4019_v12  ;;  %vm1479_vm6 = vweird.f32 %v6183_v33  ;;  %v1506_v2 = vsub.f32 1.0, %v1505_v55  ;;  %v1058_v29 = vsel %vm1055_vm5, %v1057_v3, %v1053_v0  ;;  %v2332_v12 = vld [vmem:[#allocation2 + $0xf8] sm:$0xff] }
 0x1f5   : > { %4827 = vpow2.f32 %v4098_v36  ;;  %vm1156_vm8 = vweird.f32 %v6295_v10  ;;  %v6389_v19 = vmul.f32 %v1058_v29, %v6033_v52  ;;  %v1077_v3 = vsub.f32 1.0, %v1076_v17  ;;  %v6401_v36 = vpop.f32.mrf.mxu3  ;;  %vm6467_vm2 = vmor %vm1479_vm6, %vm1480_vm4 }
 0x1f6   : > { %v6368_v63 = vpop.eup %4823  ;;  %v1562_v55 = vsel %vm6309_vm13, %v1561_v27, %v1557_v56  ;;  %v1128_v0 = vsel %vm6382_vm7, %v6210_v61, %v1124_v58  ;;  %v1583_v46 = vadd.f32 %v6249_v57, %v1582_v38  ;;  %vm6397_vm9 = vcmp.eq.f32.partialorder %v1588_v8, 8.507059e+37 }
 0x1f7   : > { %v1610_v43 = vmul.f32 %v6368_v63, %v6293_v45  ;;  %4829 = vpow2.f32 %v4091_v4  ;;  %v1153_v52 = vmul.f32 %v6295_v10, %v1152_v1  ;;  %vm1155_vm10 = vweird.f32 %v6217_v21  ;;  %2039 = vmatmul.f32.gmra.mxu3 %v6389_v19 }
 0x1f8   : > { %v1078_v29 = vmul.f32 %v6256_v39, %v1077_v3  ;;  %v4021_v61 = vmul.f32 -1.442695, %v6374_v41  ;;  %v4100_v8 = vmul.f32 -1.442695, %v6376_v11  ;;  %v1478_v27 = vadd.f32 %v6262_v25, %v1477_v48  ;;  %vm6490_vm4 = vmor %vm1155_vm10, %vm1156_vm8 }
 0x1f9   : > { %vm6412_vm11 = vcmp.eq.f32.partialorder %v1483_v62, 8.507059e+37  ;;  %v1611_v58 = vsub.f32 1.0, %v1610_v43  ;;  %v1507_v38 = vmul.f32 %v6306_v53, %v1506_v2  ;;  %vm1509_vm12 = vweird.f32 %v6227_v51 }
 0x1fa   : > { %vm1081_vm13 = vweird.f32 %v6256_v39  ;;  %v4826_v4 = vpop.eup %4825  ;;  %v1079_v17 = vadd.f32 %v6256_v39, %v1078_v29  ;;  %v1086_v1 = vand.u32 2147483648, %v6178_v34  ;;  %4831 = vpow2.f32 %v4021_v61 }
 0x1fb   : > { %v4093_v13 = vmul.f32 -1.442695, %v6401_v36  ;;  %v4828_v48 = vpop.eup %4827  ;;  %v6430_v43 = vadd.f32 1.0, %v4826_v4  ;;  %vm1080_vm15 = vweird.f32 %v6178_v34  ;;  %v1084_v2 = vand.u32 2147483647, %v6178_v34 }
 0x1fc   : > { %4833 = vpow2.f32 %v4100_v8  ;;  %v1133_v3 = vsel %vm6359_vm3, %v6289_v49, %v1128_v0  ;;  %v7932_v29 = vand.u32 2147483647, %v6217_v21  ;;  %v1515_v18 = vand.u32 2147483648, %v6227_v51  ;;  %vm6448_vm1 = vmor %vm1080_vm15, %vm1081_vm13 }
 0x1fd   : > { %v6444_v60 = vadd.f32 1.0, %v4828_v48  ;;  %4835 = vpow2.f32 %v4093_v13  ;;  %v4830_v34 = vpop.eup %4829  ;;  %v1587_v49 = vsel %vm6426_vm14, %v6249_v57, %v1583_v46  ;;  %v1612_v14 = vmul.f32 %v6368_v63, %v1611_v58  ;;  %v2334_v58 = vld [vmem:[#allocation2 + $0x98] sm:$0xff]  ;;  %v2333_v48 = vld [vmem:[#allocation2 + $0x20] sm:$0xff] }
 0x1fe   : > { %vm6439_vm0 = vcmp.eq.f32.partialorder %v7932_v29, 8.507059e+37  ;;  %4837 = vrcp.f32 %v6430_v43  ;;  %v1083_v0 = vsel %vm6448_vm1, %v6256_v39, %v1079_v17  ;;  %v6461_v8 = vmul.f32 %v1562_v55, %v6062_v54  ;;  %2335 = vmatpush.msrb.mxu3 %v2334_v58  ;;  %v6516_v29 = vpop.f32.mrf.mxu0 }
 0x1ff   : > { %v1154_v57 = vadd.f32 %v6295_v10, %v1153_v52  ;;  %4839 = vrcp.f32 %v6444_v60  ;;  %v1087_v46 = vor.u32 1.1754944e-38, %v1086_v1  ;;  %v1482_v54 = vsel %vm6467_vm2, %v6262_v25, %v1478_v27 }
 0x200   : > { %v1508_v39 = vadd.f32 %v6306_v53, %v1507_v38  ;;  %vm1510_vm3 = vweird.f32 %v6306_v53  ;;  %vm1085_vm5 = vcmp.eq.f32.partialorder %v1084_v2, 8.507059e+37  ;;  %v4832_v33 = vpop.eup %4831  ;;  %v6479_v55 = vmul.f32 %v1133_v3, %v6069_v44  ;;  %2336 = vmatpush.msrb.mxu3 %v2333_v48 }
 0x201   : > { %v1592_v52 = vsel %vm6397_vm9, %v6318_v50, %v1587_v49  ;;  %v6484_v17 = vadd.f32 1.0, %v4830_v34  ;;  %v1088_v1 = vsel %vm1085_vm5, %v1087_v46, %v1083_v0  ;;  %v1613_v27 = vadd.f32 %v6368_v63, %v1612_v14  ;;  %vm6511_vm7 = vmor %vm1509_vm12, %vm1510_vm3 }
 0x202   : > { %v4834_v62 = vpop.eup %4833  ;;  %vm1615_vm6 = vweird.f32 %v6368_v63  ;;  %v1618_v44 = vand.u32 2147483647, %v6293_v45  ;;  %v6498_v50 = vmul.f32 %v1088_v1, %v6067_v6  ;;  %v1487_v21 = vsel %vm6412_vm11, %v6321_v23, %v1482_v54  ;;  %2337 = vmatpush.msrb.mxu3 %v2332_v12  ;;  %v6591_v6 = vpop.f32.mrf.mxu1 }
 0x203   : > { %v4836_v38 = vpop.eup %4835  ;;  %v1158_v2 = vsel %vm6490_vm4, %v6295_v10, %v1154_v57  ;;  %v1620_v3 = vand.u32 2147483648, %v6293_v45  ;;  %4841 = vrcp.f32 %v6484_v17  ;;  %vm1614_vm8 = vweird.f32 %v6293_v45 }
 0x204   : > { %v6518_v56 = vpop.eup %4837  ;;  %v1512_v23 = vsel %vm6511_vm7, %v6306_v53, %v1508_v39  ;;  %v7943_v10 = vand.u32 2147483647, %v6227_v51  ;;  %2042 = vmatmul.f32.gmra.mxu3 %v6498_v50  ;;  %v6527_v4 = vadd.f32 1.0, %v4832_v33  ;;  %v6532_v49 = vmul.f32 %v1592_v52, %v6091_v32  ;;  %vm6536_vm10 = vmor %vm1614_vm8, %vm1615_vm6 }
 0x205   : > { %v6529_v34 = vpop.eup %4839  ;;  %v1516_v14 = vor.u32 1.1754944e-38, %v1515_v18  ;;  %v1181_v51 = vmul.f32 %v6518_v56, %v6430_v43  ;;  %v1106_v53 = vmul.f32 %v6095_v42, %v6053_v24  ;;  %v1700_v0 = vmul.f32 %v1487_v21, %v6085_v16 }
 0x206   : > { %vm1514_vm9 = vcmp.eq.f32.partialorder %v7943_v10, 8.507059e+37  ;;  %v1163_v32 = vsel %vm6439_vm0, %v6347_v35, %v1158_v2  ;;  %v1617_v13 = vsel %vm6536_vm10, %v6368_v63, %v1613_v27  ;;  %vm1619_vm11 = vcmp.eq.f32.partialorder %v1618_v44, 8.507059e+37 }
 0x207   : > { %v1621_v57 = vor.u32 1.1754944e-38, %v1620_v3  ;;  %v1517_v18 = vsel %vm1514_vm9, %v1516_v14, %v1512_v23  ;;  %v1182_v46 = vsub.f32 1.0, %v1181_v51  ;;  %v6551_v58 = vadd.f32 1.0, %v4834_v62  ;;  %v6589_v3 = vpop.f32.mrf.mxu0  ;;  %v6601_v14 = vpop.f32.mrf.mxu3 }
 0x208   : > { %v1189_v48 = vand.u32 2147483647, %v6430_v43  ;;  %v1640_v54 = vmul.f32 %v6529_v34, %v6444_v60  ;;  %4843 = vrcp.f32 %v6527_v4  ;;  %v6557_v16 = vadd.f32 1.0, %v4836_v38 }
 0x209   : > { %v6559_v35 = vpop.eup %4841  ;;  %v1622_v61 = vsel %vm1619_vm11, %v1621_v57, %v1617_v13  ;;  %v1191_v63 = vand.u32 2147483648, %v6430_v43  ;;  %4845 = vrcp.f32 %v6551_v58  ;;  %v1107_v39 = vsub.f32 1.0, %v1106_v53 }
 0x20a   : > { %v6564_v33 = vpack.c.bf16 %v1700_v0, %v6223_v26  ;;  %v6567_v52 = vmul.f32 %v1163_v32, %v6104_v37  ;;  %v1650_v1 = vand.u32 2147483648, %v6444_v60  ;;  %v1535_v62 = vmul.f32 %v6559_v35, %v6484_v17 }
 0x20b   : > { %v6573_v25 = vmul.f32 %v1517_v18, %v6122_v7  ;;  %v1183_v27 = vmul.f32 %v6518_v56, %v1182_v46  ;;  %vm1185_vm12 = vweird.f32 %v6430_v43  ;;  %vm1110_vm13 = vweird.f32 %v6053_v24 }
 0x20c   : > { %v6579_v26 = vmul.f32 %v1622_v61, %v6169_v40  ;;  %v1641_v44 = vsub.f32 1.0, %v1640_v54  ;;  %v1536_v37 = vsub.f32 1.0, %v1535_v62  ;;  %4847 = vrcp.f32 %v6557_v16 }
 0x20d   : > { %vm6582_vm14 = vcmp.eq.f32.partialorder %v1189_v48, 8.507059e+37  ;;  %v1192_v38 = vor.u32 1.1754944e-38, %v1191_v63  ;;  %v1648_v7 = vand.u32 2147483647, %v6444_v60  ;;  %v1543_v21 = vand.u32 2147483647, %v6484_v17 }
 0x20e   : > { %v1108_v2 = vmul.f32 %v6095_v42, %v1107_v39  ;;  %v6593_v40 = vpop.eup %4843  ;;  %vm1644_vm15 = vweird.f32 %v6444_v60  ;;  %v6596_v23 = vor.u32 1.1754944e-38, %v1650_v1  ;;  %v1537_v10 = vmul.f32 %v6559_v35, %v1536_v37 }
 0x20f   : > { %vm1539_vm0 = vweird.f32 %v6484_v17  ;;  %v1545_v45 = vand.u32 2147483648, %v6484_v17  ;;  %v6603_v51 = vpop.eup %4845  ;;  %v1184_v53 = vadd.f32 %v6518_v56, %v1183_v27  ;;  %vm1186_vm1 = vweird.f32 %v6518_v56 }
 0x210   : > { %v1116_v32 = vand.u32 2147483648, %v6053_v24  ;;  %v1642_v13 = vmul.f32 %v6529_v34, %v1641_v44  ;;  %v1221_v57 = vand.u32 2147483648, %v6527_v4  ;;  %vm1111_vm2 = vweird.f32 %v6095_v42  ;;  %vm6625_vm5 = vmor %vm1185_vm12, %vm1186_vm1 }
 0x211   : > { %v1114_v18 = vand.u32 2147483647, %v6053_v24  ;;  %vm6613_vm3 = vcmp.eq.f32.partialorder %v1543_v21, 8.507059e+37  ;;  %v1211_v48 = vmul.f32 %v6593_v40, %v6527_v4  ;;  %v1680_v54 = vand.u32 2147483648, %v6551_v58  ;;  %vm1112_vm8 = vmor %vm1110_vm13, %vm1111_vm2 }
 0x212   : > { %v1109_v61 = vadd.f32 %v6095_v42, %v1108_v2  ;;  %v6621_v63 = vpop.eup %4847  ;;  %v1538_v1 = vadd.f32 %v6559_v35, %v1537_v10  ;;  %vm1540_vm4 = vweird.f32 %v6559_v35  ;;  %v1546_v62 = vor.u32 1.1754944e-38, %v1545_v45 }
 0x213   : > { %v1670_v27 = vmul.f32 %v6603_v51, %v6551_v58  ;;  %v1188_v44 = vsel %vm6625_vm5, %v6518_v56, %v1184_v53  ;;  %vm1645_vm6 = vweird.f32 %v6529_v34  ;;  %vm6637_vm7 = vcmp.eq.f32.partialorder %v1648_v7, 8.507059e+37  ;;  %vm6652_vm10 = vmor %vm1539_vm0, %vm1540_vm4 }
 0x214   : > { %v1565_v37 = vmul.f32 %v6621_v63, %v6557_v16  ;;  %v1117_v21 = vor.u32 1.1754944e-38, %v1116_v32  ;;  %v1643_v2 = vadd.f32 %v6529_v34, %v1642_v13  ;;  %v1678_v10 = vand.u32 2147483647, %v6551_v58  ;;  %vm6668_vm11 = vmor %vm1644_vm15, %vm1645_vm6 }
 0x215   : > { %v1113_v56 = vsel %vm1112_vm8, %v6095_v42, %v1109_v61  ;;  %vm1115_vm9 = vcmp.eq.f32.partialorder %v1114_v18, 8.507059e+37  ;;  %v1212_v45 = vsub.f32 1.0, %v1211_v48  ;;  %v6656_v53 = vor.u32 1.1754944e-38, %v1680_v54  ;;  %v6677_v54 = vpop.f32.mrf.mxu0 }
 0x216   : > { %v1566_v39 = vsub.f32 1.0, %v1565_v37  ;;  %v1118_v24 = vsel %vm1115_vm9, %v1117_v21, %v1113_v56  ;;  %v1193_v32 = vsel %vm6582_vm14, %v1192_v38, %v1188_v44  ;;  %v1542_v13 = vsel %vm6652_vm10, %v6559_v35, %v1538_v1  ;;  %v2331_v38 = vld [vmem:[#allocation2 + $0xa0] sm:$0xff]  ;;  %v2330_v44 = vld [vmem:[#allocation2 + $0x28] sm:$0xff]  ;;  %v6690_v37 = vpop.f32.mrf.mxu3 }
 0x217   : > { %v1671_v42 = vsub.f32 1.0, %v1670_v27  ;;  %v1233_v18 = vmul.f32 %v1118_v24, %v6008_v30  ;;  %vm1569_vm12 = vweird.f32 %v6557_v16  ;;  %v4095_v12 = vmul.f32 -1.442695, %v6601_v14  ;;  %v6679_v30 = vpop.f32.mrf.mxu1  ;;  %2338 = vmatpush.msrb.mxu3 %v2331_v38  ;;  %v2329_v24 = vld [vmem:[#allocation2 + $0x10] sm:$0xff] }
 0x218   : > { %v1567_v48 = vmul.f32 %v6621_v63, %v1566_v39  ;;  %v1136_v35 = vmul.f32 %v6196_v28, %v6127_v15  ;;  %v1647_v60 = vsel %vm6668_vm11, %v6529_v34, %v1643_v2  ;;  %vm1674_vm13 = vweird.f32 %v6551_v58 }
 0x219   : > { %v1573_v61 = vand.u32 2147483647, %v6557_v16  ;;  %v1575_v1 = vand.u32 2147483648, %v6557_v16  ;;  %v6688_v27 = vpack.c.bf16 %v6479_v55, %v1233_v18  ;;  %2045 = vmatmul.f32.gmra.mxu3 %v1233_v18  ;;  %v6693_v21 = vmul.f32 %v1193_v32, %v6283_v9 }
 0x21a   : > { %v1547_v56 = vsel %vm6613_vm3, %v1546_v62, %v1542_v13  ;;  %4849 = vpow2.f32 %v4095_v12  ;;  %v1137_v34 = vsub.f32 1.0, %v1136_v35  ;;  %v1672_v2 = vmul.f32 %v6603_v51, %v1671_v42  ;;  %2339 = vmatpush.msrb.mxu3 %v2330_v44  ;;  %v2328_v42 = vld [vmem:[#allocation2 + $0xd0] sm:$0xff] }
 0x21b   : > { %v1568_v7 = vadd.f32 %v6621_v63, %v1567_v48  ;;  %vm1570_vm14 = vweird.f32 %v6621_v63  ;;  %v1146_v39 = vand.u32 2147483648, %v6127_v15  ;;  %vm1141_vm15 = vweird.f32 %v6196_v28  ;;  %v7970_v12 = vld [vmem:[#allocation32_spill] sm:$0xff] }
 0x21c   : > { %v1138_v18 = vmul.f32 %v6196_v28, %v1137_v34  ;;  %v1144_v9 = vand.u32 2147483647, %v6127_v15  ;;  %v4097_v46 = vmul.f32 -1.442695, %v6690_v37  ;;  %v1652_v62 = vsel %vm6637_vm7, %v6596_v23, %v1647_v60  ;;  %vm6727_vm3 = vmor %vm1569_vm12, %vm1570_vm14  ;;  %2340 = vmatpush.msrb.mxu3 %v2329_v24 }
 0x21d   : > { %v6709_v32 = vmul.f32 %v6593_v40, %v1212_v45  ;;  %vm6711_vm0 = vcmp.eq.f32.partialorder %v1573_v61, 8.507059e+37  ;;  %v1166_v17 = vmul.f32 %v6236_v31, %v6161_v22  ;;  %v1704_v48 = vmul.f32 %v1547_v56, %v6304_v59  ;;  %v2327_v45 = vld [vmem:[#allocation2 + $0xa8] sm:$0xff]  ;;  %v6761_v24 = vpop.f32.mrf.mxu0 }
 0x21e   : > { %vm1675_vm1 = vweird.f32 %v6603_v51  ;;  %vm6719_vm2 = vcmp.eq.f32.partialorder %v1678_v10, 8.507059e+37  ;;  %v1139_v43 = vadd.f32 %v6196_v28, %v1138_v18  ;;  %vm1140_vm5 = vweird.f32 %v6127_v15  ;;  %2341 = vmatpush.msrb.mxu3 %v2328_v42  ;;  %v2326_v18 = vld [vmem:[#allocation2 + $0xc0] sm:$0xff] }
 0x21f   : > { %v1673_v59 = vadd.f32 %v6603_v51, %v1672_v2  ;;  %vm1142_vm4 = vmor %vm1140_vm5, %vm1141_vm15  ;;  %v1147_v10 = vor.u32 1.1754944e-38, %v1146_v39  ;;  %4851 = vpow2.f32 %v4097_v46  ;;  %v1167_v38 = vsub.f32 1.0, %v1166_v17  ;;  %v6741_v61 = vpop.f32.mrf.mxu1  ;;  %v6747_v39 = vpop.f32.mrf.mxu3  ;;  %v7966_v46 = vld [vmem:[#allocation48_spill] sm:$0xff] }
 0x220   : > { %v4850_v35 = vpop.eup %4849  ;;  %v1572_v16 = vsel %vm6727_vm3, %v6621_v63, %v1568_v7  ;;  %v1143_v60 = vsel %vm1142_vm4, %v6196_v28, %v1139_v43  ;;  %vm1145_vm6 = vcmp.eq.f32.partialorder %v1144_v9, 8.507059e+37  ;;  %v1174_v15 = vand.u32 2147483647, %v6161_v22  ;;  %vm6753_vm7 = vmor %vm1674_vm13, %vm1675_vm1  ;;  %2342 = vmatpush.msrb.mxu3 %v2327_v45  ;;  %v7968_v43 = vld [vmem:[#allocation47_spill] sm:$0xff] }
 0x221   : > { %v6743_v44 = vadd.f32 1.0, %v4850_v35  ;;  %v1148_v56 = vsel %vm1145_vm6, %v1147_v10, %v1143_v60  ;;  %v1168_v34 = vmul.f32 %v6236_v31, %v1167_v38  ;;  %v1176_v2 = vand.u32 2147483648, %v6161_v22  ;;  %v7969_v10 = vld [vmem:[#allocation46_spill] sm:$0xff] }
 0x222   : > { %v1576_v63 = vor.u32 1.1754944e-38, %v1575_v1  ;;  %v6758_v7 = vmul.f32 %v1148_v56, %v6018_v20  ;;  %vm1171_vm8 = vweird.f32 %v6236_v31  ;;  %v6765_v9 = vpack.c.bf16 %v6573_v25, %v6265_v5  ;;  %2343 = vmatpush.msrb.mxu3 %v2326_v18 }
 0x223   : > { %v6768_v58 = vpack.c.bf16 %v1704_v48, %v7966_v46  ;;  %v1677_v1 = vsel %vm6753_vm7, %v6603_v51, %v1673_v59  ;;  %v6775_v20 = vpack.c.bf16 %v6591_v6, %v6406_v47  ;;  %4853 = vrcp.f32 %v6743_v44  ;;  %v2325_v51 = vld [vmem:[#allocation2 + $0x70] sm:$0xff]  ;;  %v2322_v46 = vld [vmem:[#allocation2 + $0xc8] sm:$0xff] }
 0x224   : > { %v1577_v42 = vsel %vm6711_vm0, %v1576_v63, %v1572_v16  ;;  %2048 = vmatmul.f32.gmra.mxu3 %v6758_v7  ;;  %v6783_v5 = vpack.c.bf16 %v6679_v30, %v6516_v29  ;;  %v1169_v25 = vadd.f32 %v6236_v31, %v1168_v34  ;;  %vm1170_vm9 = vweird.f32 %v6161_v22  ;;  %v2324_v30 = vld [vmem:[#allocation2 + $0x90] sm:$0xff]  ;;  %v7967_v22 = vld [vmem:[#allocation42_spill] sm:$0xff] }
 0x225   : > { %v4852_v17 = vpop.eup %4851  ;;  %vm1172_vm10 = vmor %vm1170_vm9, %vm1171_vm8  ;;  %vm1175_vm11 = vcmp.eq.f32.partialorder %v1174_v15, 8.507059e+37  ;;  %v1177_v47 = vor.u32 1.1754944e-38, %v1176_v2  ;;  %v1944_v6 = vunpack.c.l.b16 %v6564_v33  ;;  %v1945_v13 = vunpack.c.l.b16 %v6765_v9  ;;  %2344 = vmatpush.msrb.mxu3 %v2325_v51 }
 0x226   : > { %v6791_v48 = vadd.f32 1.0, %v4852_v17  ;;  %v1173_v29 = vsel %vm1172_vm10, %v6236_v31, %v1169_v25  ;;  %v4099_v23 = vmul.f32 -1.442695, %v6747_v39  ;;  %v1196_v59 = vmul.f32 %v7968_v43, %v7967_v22 }
 0x227   : > { %v6798_v45 = vmul.f32 %v1652_v62, %v7969_v10  ;;  %v1682_v38 = vsel %vm6719_vm2, %v6656_v53, %v1677_v1  ;;  %v1178_v35 = vsel %vm1175_vm11, %v1177_v47, %v1173_v29  ;;  %v6803_v16 = vpack.c.b16 %v1945_v13, %v1944_v6  ;;  %v2323_v62 = vld [vmem:[#allocation2 + $0xe0] sm:$0xff]  ;;  %v6812_v56 = vpop.f32.mrf.mxu1  ;;  %2345 = vmatpush.msrb.mxu3 %v2324_v30  ;;  %v6819_v28 = vpop.f32.mrf.mxu3  ;;  %v2320_v10 = vld [vmem:[#allocation2 + $0x58] sm:$0xff] }
 0x228   : > { %v6807_v31 = vadd.f32 %v6593_v40, %v6709_v32  ;;  %v1706_v60 = vmul.f32 %v1577_v42, %v6401_v36  ;;  %v2068_v15 = vunpack.c.l.b16 %v6775_v20  ;;  %4855 = vrcp.f32 %v6791_v48  ;;  %v6838_v47 = vpop.f32.mrf.mxu0  ;;  %v2321_v6 = vld [vmem:[#allocation2 + $0x40] sm:$0xff] }
 0x229   : > { %v6814_v34 = vpop.eup %4853  ;;  %v1946_v53 = vunpack.c.l.b16 %v6768_v58  ;;  %v1237_v2 = vmul.f32 %v1178_v35, %v7970_v12  ;;  %2124 = vxpose.xlu2.c.b16.start [1/4] (short) %v6803_v16, 128  ;;  %4857 = vpow2.f32 %v4099_v23  ;;  %v1197_v32 = vsub.f32 1.0, %v1196_v59  ;;  %2346 = vmatpush.msrb.mxu3 %v2323_v62  ;;  %v7972_v35 = vld [vmem:[#allocation38_spill] sm:$0xff] }
 0x22a   : > { %v6822_v36 = vmul.f32 %v1682_v38, %v6376_v11  ;;  %v1595_v63 = vmul.f32 %v6814_v34, %v6743_v44  ;;  %v2069_v18 = vunpack.c.l.b16 %v6783_v5  ;;  %vm1201_vm12 = vweird.f32 %v7968_v43  ;;  %v7971_v38 = vld [vmem:[#allocation37_spill] sm:$0xff] }
 0x22b   : > { %v6829_v1 = vpack.c.bf16 %v6693_v21, %v1237_v2  ;;  %v1198_v42 = vmul.f32 %v7968_v43, %v1197_v32  ;;  %v1204_v25 = vand.u32 2147483647, %v7967_v22  ;;  %v1206_v51 = vand.u32 2147483648, %v7967_v22  ;;  %2347 = vmatpush.msrb.mxu3 %v2322_v46 }
 0x22c   : > { %v6835_v11 = vpack.c.bf16 %v1706_v60, %v6461_v8  ;;  %v1596_v17 = vsub.f32 1.0, %v1595_v63  ;;  %vm1599_vm13 = vweird.f32 %v6743_v44  ;;  %2051 = vmatmul.f32.gmra.mxu3 %v1237_v2  ;;  %v4101_v13 = vmul.f32 -1.442695, %v6819_v28 }
 0x22d   : > { %vm1600_vm14 = vweird.f32 %v6814_v34  ;;  %v1603_v29 = vand.u32 2147483647, %v6743_v44  ;;  %v1199_v30 = vadd.f32 %v7968_v43, %v1198_v42  ;;  %vm1200_vm15 = vweird.f32 %v7967_v22  ;;  %2348 = vmatpush.msrb.mxu3 %v2321_v6  ;;  %v2319_v42 = vld [vmem:[#allocation2 + $0x38] sm:$0xff] }
 0x22e   : > { %v4856_v8 = vpop.eup %4855  ;;  %v1597_v23 = vmul.f32 %v6814_v34, %v1596_v17  ;;  %vm1202_vm0 = vmor %vm1200_vm15, %vm1201_vm12  ;;  %v1207_v59 = vor.u32 1.1754944e-38, %v1206_v51  ;;  %4859 = vpow2.f32 %v4101_v13  ;;  %v1031_v60 = vmul.f32 %v7972_v35, %v7971_v38 }
 0x22f   : > { %v4858_v62 = vpop.eup %4857  ;;  %v1605_v12 = vand.u32 2147483648, %v6743_v44  ;;  %v1625_v2 = vmul.f32 %v4856_v8, %v6791_v48  ;;  %v1203_v22 = vsel %vm1202_vm0, %v7968_v43, %v1199_v30  ;;  %vm1205_vm1 = vcmp.eq.f32.partialorder %v1204_v25, 8.507059e+37  ;;  %v1864_v51 = vpop.f32.mrf.mxu1  ;;  %vm6861_vm2 = vmor %vm1599_vm13, %vm1600_vm14  ;;  %2349 = vmatpush.msrb.mxu3 %v2320_v10  ;;  %v7975_v44 = vld [vmem:[#allocation35_spill] sm:$0xff] }
 0x230   : > { %v1598_v32 = vadd.f32 %v6814_v34, %v1597_v23  ;;  %v6854_v63 = vadd.f32 1.0, %v4858_v62  ;;  %v1208_v46 = vsel %vm1205_vm1, %v1207_v59, %v1203_v22  ;;  %v1947_v17 = vunpack.c.l.b16 %v6835_v11 }
 0x231   : > { %v1626_v43 = vsub.f32 1.0, %v1625_v2  ;;  %v1633_v25 = vand.u32 2147483647, %v6791_v48  ;;  %v1635_v6 = vand.u32 2147483648, %v6791_v48  ;;  %v6869_v30 = vpack.c.bf16 %v6741_v61, %v6589_v3  ;;  %2350 = vmatpush.msrb.mxu3 %v2319_v42 }
 0x232   : > { %v1602_v23 = vsel %vm6861_vm2, %v6814_v34, %v1598_v32  ;;  %4861 = vrcp.f32 %v6854_v63  ;;  %v6876_v59 = vmul.f32 %v1208_v46, %v7975_v44  ;;  %v1032_v62 = vsub.f32 1.0, %v1031_v60  ;;  %v6896_v32 = vpop.f32.mrf.mxu0 }
 0x233   : > { %v1606_v2 = vor.u32 1.1754944e-38, %v1605_v12  ;;  %v6880_v22 = vpack.c.bf16 %v6567_v52, %v6758_v7  ;;  %v1627_v0 = vmul.f32 %v4856_v8, %v1626_v43  ;;  %vm1630_vm3 = vweird.f32 %v4856_v8 }
 0x234   : > { %v4860_v3 = vpop.eup %4859  ;;  %vm1604_vm5 = vcmp.eq.f32.partialorder %v1603_v29, 8.507059e+37  ;;  %vm1629_vm4 = vweird.f32 %v6791_v48  ;;  %2054 = vmatmul.f32.gmra.mxu3 %v6876_v59  ;;  %v6886_v61 = vpack.c.bf16 %v6812_v56, %v6677_v54  ;;  %v6890_v34 = vpack.c.b16 %v1947_v17, %v1946_v53 }
 0x235   : > { %v1607_v10 = vsel %vm1604_vm5, %v1606_v2, %v1602_v23  ;;  %v1628_v7 = vadd.f32 %v4856_v8, %v1627_v0  ;;  %v1663_v60 = vand.u32 2147483647, %v6854_v63  ;;  %v6893_v12 = vadd.f32 1.0, %v4860_v3  ;;  %vm1631_vm6 = vmor %vm1629_vm4, %vm1630_vm3 }
 0x236   : > { %vm1634_vm7 = vcmp.eq.f32.partialorder %v1633_v25, 8.507059e+37  ;;  %v1636_v29 = vor.u32 1.1754944e-38, %v1635_v6  ;;  %v2070_v48 = vunpack.c.l.b16 %v6869_v30  ;;  %v1033_v54 = vmul.f32 %v7972_v35, %v1032_v62 }
 0x237   : > { %v1632_v56 = vsel %vm1631_vm6, %v4856_v8, %v1628_v7  ;;  %v1665_v46 = vand.u32 2147483648, %v6854_v63  ;;  %4863 = vrcp.f32 %v6893_v12  ;;  %v6902_v0 = vpack.c.bf16 %v1864_v51, %v6761_v24  ;;  %v1866_v13 = vpop.f32.mrf.mxu1 }
 0x238   : > { %v4862_v53 = vpop.eup %4861  ;;  %v1708_v42 = vmul.f32 %v1607_v10, %v6601_v14  ;;  %v1637_v17 = vsel %vm1634_vm7, %v1636_v29, %v1632_v56  ;;  %vm1035_vm8 = vweird.f32 %v7971_v38  ;;  %vm1036_vm9 = vweird.f32 %v7972_v35  ;;  %v7980_v10 = vld [vmem:[#allocation34_spill] sm:$0xff]  ;;  %v7981_v29 = vld [vmem:[#allocation40_spill] sm:$0xff] }
 0x239   : > { %v1655_v43 = vmul.f32 %v4862_v53, %v6854_v63  ;;  %vm1659_vm10 = vweird.f32 %v6854_v63  ;;  %vm6909_vm11 = vcmp.eq.f32.partialorder %v1663_v60, 8.507059e+37  ;;  %v2071_v24 = vunpack.c.l.b16 %v6886_v61  ;;  %2125 = vxpose.xlu2.c.b16.cont [2/4] (short) %v6890_v34, 128  ;;  %vm6922_vm12 = vmor %vm1035_vm8, %vm1036_vm9 }
 0x23a   : > { %v1710_v14 = vmul.f32 %v1637_v17, %v6690_v37  ;;  %v1034_v51 = vadd.f32 %v7972_v35, %v1033_v54  ;;  %v1039_v25 = vand.u32 2147483647, %v7971_v38  ;;  %v1041_v6 = vand.u32 2147483648, %v7971_v38  ;;  %v7982_v54 = vld [vmem:[#allocation43_spill] sm:$0xff] }
 0x23b   : > { %v1656_v23 = vsub.f32 1.0, %v1655_v43  ;;  %v1666_v44 = vor.u32 1.1754944e-38, %v1665_v46  ;;  %v2072_v62 = vunpack.c.l.b16 %v6902_v0  ;;  %v6927_v3 = vpack.c.bf16 %v1866_v13, %v6838_v47 }
 0x23c   : > { %v6930_v37 = vpack.c.bf16 %v1708_v42, %v6532_v49  ;;  %2351 = vmatmul.f32.vlgmr.msrb.gmra.mxu3 %v7980_v10  ;;  %v1038_v7 = vsel %vm6922_vm12, %v7972_v35, %v1034_v51  ;;  %v1042_v60 = vor.u32 1.1754944e-38, %v1041_v6  ;;  %v1061_v38 = vmul.f32 %v7982_v54, %v7981_v29 }
 0x23d   : > { %v4864_v56 = vpop.eup %4863  ;;  %v1657_v46 = vmul.f32 %v4862_v53, %v1656_v23  ;;  %vm1660_vm13 = vweird.f32 %v4862_v53  ;;  %vm1040_vm14 = vcmp.eq.f32.partialorder %v1039_v25, 8.507059e+37  ;;  %v2073_v47 = vunpack.c.l.b16 %v6927_v3  ;;  %v7983_v23 = vld [vmem:[#allocation30_spill] sm:$0xff] }
 0x23e   : > { %v6940_v17 = vpack.c.bf16 %v1710_v14, %v6579_v26  ;;  %v1685_v49 = vmul.f32 %v4864_v56, %v6893_v12  ;;  %vm1689_vm15 = vweird.f32 %v6893_v12  ;;  %v1043_v42 = vsel %vm1040_vm14, %v1042_v60, %v1038_v7  ;;  %vm1661_vm0 = vmor %vm1659_vm10, %vm1660_vm13  ;;  %v1851_v14 = vpop.f32.mrf.mxu0 }
 0x23f   : > { %v1658_v13 = vadd.f32 %v4862_v53, %v1657_v46  ;;  %v1693_v35 = vand.u32 2147483647, %v6893_v12  ;;  %v2077_v43 = vpack.c.b16 %v2073_v47, %v2072_v62  ;;  %v1062_v51 = vsub.f32 1.0, %v1061_v38  ;;  %v7984_v47 = vld [vmem:[#allocation49_spill] sm:$0xff] }
 0x240   : > { %v1686_v6 = vsub.f32 1.0, %v1685_v49  ;;  %vm1690_vm1 = vweird.f32 %v4864_v56  ;;  %v1695_v25 = vand.u32 2147483648, %v6893_v12  ;;  %v1228_v26 = vmul.f32 %v1043_v42, %v7983_v23  ;;  %v7986_v23 = vld [vmem:[#allocation45_spill] sm:$0xff] }
 0x241   : > { %v1662_v2 = vsel %vm1661_vm0, %v4862_v53, %v1658_v13  ;;  %2099 = vmatpush.bf16.msrb.mxu0 %v2077_v43  ;;  %2168 = vmatpush.bf16.msra.mxu1 %v2077_v43  ;;  %v1063_v10 = vmul.f32 %v7982_v54, %v1062_v51  ;;  %vm1066_vm2 = vweird.f32 %v7982_v54  ;;  %v1069_v62 = vand.u32 2147483647, %v7981_v29  ;;  %vm1691_vm6 = vmor %vm1689_vm15, %vm1690_vm1 }
 0x242   : > { %v1667_v63 = vsel %vm6909_vm11, %v1666_v44, %v1662_v2  ;;  %v1687_v7 = vmul.f32 %v4864_v56, %v1686_v6  ;;  %v1071_v60 = vand.u32 2147483648, %v7981_v29  ;;  %v1949_v38 = vunpack.c.l.b16 %v6940_v17 }
 0x243   : > { %v1948_v46 = vunpack.c.l.b16 %v6930_v37  ;;  %v6958_v53 = vpack.c.bf16 %v1851_v14, %v7984_v47  ;;  %v1064_v49 = vadd.f32 %v7982_v54, %v1063_v10  ;;  %vm1065_vm3 = vweird.f32 %v7981_v29  ;;  %v7987_v10 = vld [vmem:[#allocation44_spill] sm:$0xff] }
 0x244   : > { %v1712_v42 = vmul.f32 %v1667_v63, %v6747_v39  ;;  %v1688_v13 = vadd.f32 %v4864_v56, %v1687_v7  ;;  %v1696_v43 = vor.u32 1.1754944e-38, %v1695_v25  ;;  %2354 = vmatmul.f32.gmra.mxu3 %v1228_v26  ;;  %vm1067_vm5 = vmor %vm1065_vm3, %vm1066_vm2  ;;  %v1072_v8 = vor.u32 1.1754944e-38, %v1071_v60  ;;  %v7985_v25 = vld [vmem:[#allocation41_spill] sm:$0xff] }
 0x245   : > { %vm1216_vm4 = vweird.f32 %v6593_v40  ;;  %v1068_v44 = vsel %vm1067_vm5, %v7982_v54, %v1064_v49  ;;  %vm1070_vm7 = vcmp.eq.f32.partialorder %v1069_v62, 8.507059e+37  ;;  %v6968_v51 = vpack.c.b16 %v1949_v38, %v1948_v46  ;;  %v7988_v54 = vld [vmem:[#allocation39_spill] sm:$0xff]  ;;  %v4240_v49 = vld [vmem:[#allocation11 + $0x60] sm:$0xf] }
 0x246   : > { %v2076_v29 = vpack.c.b16 %v2071_v24, %v2070_v48  ;;  %v1692_v39 = vsel %vm1691_vm6, %v4864_v56, %v1688_v13  ;;  %vm1694_vm8 = vcmp.eq.f32.partialorder %v1693_v35, 8.507059e+37  ;;  %v1073_v6 = vsel %vm1070_vm7, %v1072_v8, %v1068_v44  ;;  %v4248_v48 = vld [vmem:[#allocation11 + $0x70] sm:$0xf]  ;;  %v4483_v24 = vld [vmem:[#allocation11 + $0x74] sm:$0xf0]  ;;  %v7989_v38 = vld [vmem:[#allocation31_spill] sm:$0xff] }
 0x247   : > { %v1091_v14 = vmul.f32 %v7986_v23, %v7985_v25  ;;  %vm1215_vm9 = vweird.f32 %v6527_v4  ;;  %v1697_v2 = vsel %vm1694_vm8, %v1696_v43, %v1692_v39  ;;  %v6977_v12 = vpack.c.bf16 %v6896_v32, %v7987_v10  ;;  %v4232_v10 = vld [vmem:[#allocation11 + $0x50] sm:$0xf] }
 0x248   : > { %v6980_v62 = vpack.c.bf16 %v1228_v26, %v7988_v54  ;;  %v2067_v63 = vunpack.c.l.b16 %v6958_v53  ;;  %2100 = vmatpush.bf16.msrb.mxu0 %v2076_v29  ;;  %2169 = vmatpush.bf16.msra.mxu1 %v2076_v29  ;;  %v6984_v56 = vpack.c.bf16 %v1712_v42, %v6798_v45  ;;  %v1714_v35 = vmul.f32 %v1697_v2, %v6819_v28  ;;  %v4481_v42 = vld [vmem:[#allocation11 + $0x64] sm:$0xf0]  ;;  %v4479_v54 = vld [vmem:[#allocation11 + $0x54] sm:$0xf0]  ;;  %vm7025_vm14 = vmor %vm1215_vm9, %vm1216_vm4 }
 0x249   : > { %v2383_v7 = vunpack.c.h.b16 %v6927_v3  ;;  %v1092_v60 = vsub.f32 1.0, %v1091_v14  ;;  %v1230_v32 = vmul.f32 %v1073_v6, %v7989_v38  ;;  %2126 = vxpose.xlu2.c.b16.cont [3/4] (short) %v6968_v51, 128  ;;  %v2075_v26 = vpack.c.b16 %v2069_v18, %v2068_v15 }
 0x24a   : > { %vm1096_vm10 = vweird.f32 %v7986_v23  ;;  %v1101_v46 = vand.u32 2147483648, %v7985_v25  ;;  %v6997_v45 = vpack.c.bf16 %v1714_v35, %v6822_v36  ;;  %v1099_v3 = vand.u32 2147483647, %v7985_v25 }
 0x24b   : > { %v1093_v28 = vmul.f32 %v7986_v23, %v1092_v60  ;;  %v4249_v47 = vor.u32 %v4483_v24, %v4248_v48  ;;  %v2380_v13 = vunpack.c.h.b16 %v6869_v30  ;;  %v2066_v43 = vunpack.c.l.b16 %v6977_v12  ;;  %v7990_v24 = vld [vmem:[#allocation36_spill] sm:$0xff]  ;;  %v7994_v60 = vld [vmem:[#allocation33_spill] sm:$0xff] }
 0x24c   : > { %v2382_v15 = vunpack.c.h.b16 %v6902_v0  ;;  %v2246_v18 = vunpack.c.h.b16 %v6980_v62  ;;  %2101 = vmatpush.bf16.msrb.mxu0 %v2075_v26  ;;  %2170 = vmatpush.bf16.msra.mxu1 %v2075_v26  ;;  %v1950_v36 = vunpack.c.l.b16 %v6984_v56  ;;  %vm1095_vm11 = vweird.f32 %v7985_v25 }
 0x24d   : > { %2357 = vmatmul.f32.gmra.mxu3 %v1230_v32  ;;  %v1094_v8 = vadd.f32 %v7986_v23, %v1093_v28  ;;  %v1951_v44 = vunpack.c.l.b16 %v6997_v45  ;;  %v2381_v29 = vunpack.c.h.b16 %v6886_v61  ;;  %vm1097_vm12 = vmor %vm1095_vm11, %vm1096_vm10  ;;  %v1102_v30 = vor.u32 1.1754944e-38, %v1101_v46 }
 0x24e   : > { %v2074_v0 = vpack.c.b16 %v2067_v63, %v2066_v43  ;;  %2650 = vmatpush.bf16.msra.mxu3 %v4249_v47  ;;  %v4241_v39 = vor.u32 %v4481_v42, %v4240_v49  ;;  %v7012_v6 = vpack.c.b16 %v2383_v7, %v2382_v15  ;;  %vm1100_vm13 = vcmp.eq.f32.partialorder %v1099_v3, 8.507059e+37  ;;  %v4477_v42 = vld [vmem:[#allocation11 + $0x44] sm:$0xf0] }
 0x24f   : > { %v1098_v14 = vsel %vm1097_vm12, %v7986_v23, %v1094_v8  ;;  %v1955_v2 = vpack.c.b16 %v1951_v44, %v1950_v36  ;;  %v1924_v61 = vunpack.c.l.b16 %v6688_v27  ;;  %v1925_v48 = vunpack.c.l.b16 %v6880_v22  ;;  %v4216_v8 = vld [vmem:[#allocation11 + $0x30] sm:$0xf]  ;;  %v4475_v44 = vld [vmem:[#allocation11 + $0x34] sm:$0xf0]  ;;  %v4192_v23 = vld [vmem:[#allocation11] sm:$0xf] }
 0x250   : > { %v1103_v25 = vsel %vm1100_vm13, %v1102_v30, %v1098_v14  ;;  %2102 = vmatpush.bf16.msrb.mxu0 %v2074_v0  ;;  %2171 = vmatpush.bf16.msra.mxu1 %v2074_v0  ;;  %v7991_v35 = vunpack.c.h.b16 %v7990_v24  ;;  %v7030_v7 = vpack.c.bf16 %v1230_v32, %v6389_v19  ;;  %v2249_v26 = vunpack.c.h.b16 %v6688_v27 }
 0x251   : > { %v1232_v38 = vmul.f32 %v1103_v25, %v7994_v60  ;;  %1964 = vmatpush.bf16.xpose.msrb.mxu2 %v1955_v2  ;;  %v2250_v46 = vunpack.c.h.b16 %v6880_v22  ;;  %v1218_v28 = vsel %vm7025_vm14, %v6593_v40, %v6807_v31  ;;  %v1222_v3 = vor.u32 1.1754944e-38, %v1221_v57  ;;  %v4224_v22 = vld [vmem:[#allocation11 + $0x40] sm:$0xf]  ;;  %v4471_v25 = vld [vmem:[#allocation11 + $0x14] sm:$0xf0] }
 0x252   : > { %v7019_v63 = vpack.c.b16 %v2246_v18, %v7991_v35  ;;  %2651 = vmatpush.bf16.msra.mxu3 %v4241_v39  ;;  %v4233_v19 = vor.u32 %v4479_v54, %v4232_v10  ;;  %v7042_v32 = vpack.c.b16 %v1925_v48, %v1924_v61  ;;  %v2379_v47 = vunpack.c.h.b16 %v6783_v5  ;;  %v4473_v39 = vld [vmem:[#allocation11 + $0x24] sm:$0xf0]  ;;  %v4200_v54 = vld [vmem:[#allocation11 + $0x10] sm:$0xf] }
 0x253   : > { %v7046_v49 = vpack.c.bf16 %v1232_v38, %v6498_v50  ;;  %v7048_v27 = vpack.c.b16 %v2381_v29, %v2380_v13  ;;  %v7050_v43 = vpack.c.b16 %v2250_v46, %v2249_v26  ;;  %v7995_v40 = vand.u32 2147483647, %v6527_v4 }
 0x254   : > { %2408 = vmatpush.bf16.msra.mxu0 %v7012_v6  ;;  %v2378_v57 = vunpack.c.h.b16 %v6775_v20  ;;  %v2247_v5 = vunpack.c.h.b16 %v7030_v7  ;;  %v2261_v13 = vunpack.c.h.b16 %v6564_v33  ;;  %v4225_v15 = vor.u32 %v4477_v42, %v4224_v22 }
 0x255   : > { %vm1220_vm15 = vcmp.eq.f32.partialorder %v7995_v40, 8.507059e+37  ;;  %2360 = vmatmul.f32.gmra.mxu3 %v1232_v38  ;;  %v2248_v50 = vunpack.c.h.b16 %v7046_v49  ;;  %v2262_v18 = vunpack.c.h.b16 %v6765_v9  ;;  %v2377_v36 = vunpack.c.h.b16 %v6958_v53  ;;  %v4208_v53 = vld [vmem:[#allocation11 + $0x20] sm:$0xf] }
 0x256   : > { %v1223_v31 = vsel %vm1220_vm15, %v1222_v3, %v1218_v28  ;;  %2652 = vmatpush.bf16.msra.mxu3 %v4233_v19  ;;  %v7061_v4 = vpack.c.b16 %v2379_v47, %v2378_v57  ;;  %v2376_v0 = vunpack.c.h.b16 %v6977_v12  ;;  %v4217_v33 = vor.u32 %v4475_v44, %v4216_v8 }
 0x257   : > { %v7063_v20 = vpack.c.b16 %v2248_v50, %v2247_v5  ;;  %v1240_v29 = vmul.f32 %v1223_v31, %v6374_v41  ;;  %v7066_v30 = vpack.c.b16 %v2262_v18, %v2261_v13  ;;  %v2263_v10 = vunpack.c.h.b16 %v6768_v58 }
 0x258   : > { %2409 = vmatpush.bf16.msra.mxu0 %v7048_v27  ;;  %v2384_v9 = vpack.c.b16 %v2377_v36, %v2376_v0  ;;  %v2264_v41 = vunpack.c.h.b16 %v6835_v11  ;;  %v4209_v12 = vor.u32 %v4473_v39, %v4208_v53  ;;  %v2251_v48 = vunpack.c.h.b16 %v6829_v1  ;;  %v4469_v11 = vld [vmem:[#allocation11 + $0x4] sm:$0xf0] }
 0x259   : > { %1965 = vmatpush.bf16.xpose.msrb.mxu2 %v6968_v51  ;;  %2127 = vxpose.xlu2.c.b16.end [4/4] (short) %v1955_v2, 128  ;;  %v1876_v14 = vpack.c.bf16 %v1240_v29, %v6876_v59  ;;  %v1926_v2 = vunpack.c.l.b16 %v6829_v1  ;;  %v4201_v58 = vor.u32 %v4471_v25, %v4200_v54  ;;  %v2268_v60 = vunpack.c.h.b16 %v6997_v45  ;;  %v4482_v25 = vld [vmem:[#allocation11 + $0x74] sm:$0xf] }
 0x25a   : > { %2653 = vmatpush.bf16.msra.mxu3 %v4225_v15  ;;  %v7075_v51 = vpack.c.b16 %v2264_v41, %v2263_v10  ;;  %v2267_v38 = vunpack.c.h.b16 %v6984_v56  ;;  %v4193_v26 = vor.u32 %v4469_v11, %v4192_v23  ;;  %v1921_v1 = vunpack.c.l.b16 %v6980_v62  ;;  %v4234_v23 = vld [vmem:[#allocation11 + $0x58] sm:$0xf0] }
 0x25b   : > { %v1927_v61 = vunpack.c.l.b16 %v1876_v14  ;;  %v2252_v35 = vunpack.c.h.b16 %v1876_v14  ;;  %v2266_v28 = vunpack.c.h.b16 %v6940_v17  ;;  %v1922_v62 = vunpack.c.l.b16 %v7030_v7  ;;  %v7999_v7 = vld [vmem:[#allocation28_spill] sm:$0xff] }
 0x25c   : > { %2410 = vmatpush.bf16.msra.mxu0 %v7061_v4  ;;  %v7083_v46 = vpack.c.b16 %v2268_v60, %v2267_v38  ;;  %vm2082_vm2 = vcmask 523264  }
 0x25d   : > { %2363 = vmatmul.f32.gmra.mxu3 %v6479_v55  ;;  %v1931_v55 = vpack.c.b16 %v1927_v61, %v1926_v2  ;;  %v2256_v59 = vpack.c.b16 %v2252_v35, %v2251_v48  ;;  %v4250_v2 = vld [vmem:[#allocation11 + $0x78] sm:$0xf0]  ;;  %v4480_v35 = vld [vmem:[#allocation11 + $0x64] sm:$0xf] }
 0x25e   : > { %2654 = vmatpush.bf16.msra.mxu3 %v4217_v33  ;;  %v4253_v61 = vor.u32 %v4482_v25, %v4250_v2 }
 0x260   : > { %2411 = vmatpush.bf16.msra.mxu0 %v2384_v9 }
 0x261   : > { %1966 = vmatpush.bf16.xpose.msrb.mxu2 %v6890_v34  ;;  %v1920_v34 = vunpack.c.l.b16 %v7990_v24  ;;  %v7996_v24 = vld [vmem:[#allocation26_spill] sm:$0xff] }
 0x262   : > { %2655 = vmatpush.bf16.msra.mxu3 %v4209_v12 }
 0x263   : > { %v1928_v56 = vpack.c.b16 %v1921_v1, %v1920_v34  ;;  %v4476_v34 = vld [vmem:[#allocation11 + $0x44] sm:$0xf] }
 0x265   : > { %2366 = vmatmul.f32.gmra.mxu3 %v6567_v52  ;;  %v2265_v52 = vunpack.c.h.b16 %v6930_v37  ;;  %v7998_v37 = vld [vmem:[#allocation27_spill] sm:$0xff] }
 0x266   : > { %2656 = vmatpush.bf16.msra.mxu3 %v4201_v58  ;;  %v4242_v58 = vld [vmem:[#allocation11 + $0x68] sm:$0xf0] }
 0x267   : > { %v7092_v45 = vpack.c.b16 %v2266_v28, %v2265_v52  ;;  %v4226_v28 = vld [vmem:[#allocation11 + $0x48] sm:$0xf0] }
 0x268   : > { %v4229_v52 = vor.u32 %v4476_v34, %v4226_v28 }
 0x269   : > { %1967 = vmatpush.bf16.xpose.msrb.mxu2 %v6803_v16  ;;  %v1923_v16 = vunpack.c.l.b16 %v7046_v49 }
 0x26a   : > { %2657 = vmatpush.bf16.msra.mxu3 %v4193_v26 }
 0x26b   : > { %v1929_v17 = vpack.c.b16 %v1923_v16, %v1922_v62  ;;  %v4218_v16 = vld [vmem:[#allocation11 + $0x38] sm:$0xf0] }
 0x26d   : > { %2369 = vmatmul.f32.gmra.mxu3 %v6693_v21  ;;  %v7997_v21 = vld [vmem:[#allocation29_spill] sm:$0xff] }
 0x270   : > { %1968 = vmatmul.bf16.vlgmr.msrb.gmra.mxu2 %v1928_v56  ;;  %v4474_v56 = vld [vmem:[#allocation11 + $0x34] sm:$0xf] }
 0x271   : > { %2281 = vmatpush.bf16.xpose.msra.mxu2 %v7083_v46  ;;  %v4221_v62 = vor.u32 %v4474_v56, %v4218_v16 }
 0x275   : > { %2372 = vmatmul.f32.gmra.mxu3 %v1240_v29 }
 0x279   : > { %2282 = vmatpush.bf16.xpose.msra.mxu2 %v7092_v45 }
 0x27d   : > { %2658 = vmatmul.bf16.vlgmr.msra.gmra.mxu3 %v7996_v24 }
 0x280   : > { %1973 = vmatmul.bf16.gmra.mxu2 %v1929_v17  ;;  %v4472_v17 = vld [vmem:[#allocation11 + $0x24] sm:$0xf] }
 0x281   : > { %2283 = vmatpush.bf16.xpose.msra.mxu2 %v7075_v51 }
 0x289   : > { %2284 = vmatpush.bf16.xpose.msra.mxu2 %v7066_v30 }
 0x28d   : > { %2663 = vmatmul.bf16.gmra.mxu3 %v7997_v21 }
 0x290   : > { %1978 = vmatmul.bf16.gmra.mxu2 %v7042_v32 }
 0x291   : > { %2477 = vmatpush.bf16.msrb.mxu2 %v7012_v6  ;;  %v1893_v6 = vlaneseq }
 0x293   : > { %v1894_v3 = vshrl.u32 %v1893_v6, 7  ;;  %v7110_v47 = vand.u32 127, %v1893_v6  ;;  %v4210_v6 = vld [vmem:[#allocation11 + $0x28] sm:$0xf0] }
 0x295   : > { %2478 = vmatpush.bf16.msrb.mxu2 %v7048_v27  ;;  %v1895_v49 = vadd.s32 8, %v1894_v3  ;;  %vm1904_vm0 = vcmp.ge.s32.totalorder %v1894_v3, %v7110_v47  ;;  %v1897_v40 = vadd.s32 24, %v1894_v3  ;;  %v1898_v15 = vadd.s32 32, %v1894_v3 }
 0x296   : > { %v1899_v18 = vadd.s32 40, %v1894_v3  ;;  %v7133_v29 = vadd.s32 48, %v1894_v3  ;;  %v7135_v0 = vadd.s32 56, %v1894_v3 }
 0x297   : > { %vm1905_vm1 = vcmp.ge.s32.totalorder %v1895_v49, %v7110_v47  ;;  %vm1907_vm5 = vcmp.ge.s32.totalorder %v1897_v40, %v7110_v47  ;;  %vm1908_vm4 = vcmp.ge.s32.totalorder %v1898_v15, %v7110_v47  ;;  %v4470_v49 = vld [vmem:[#allocation11 + $0x14] sm:$0xf]  ;;  %v2034_v40 = vpop.f32.mrf.mxu3 }
 0x298   : > { %vm1909_vm6 = vcmp.ge.s32.totalorder %v1899_v18, %v7110_v47  ;;  %vm1910_vm7 = vcmp.ge.s32.totalorder %v7133_v29, %v7110_v47  ;;  %vm1911_vm8 = vcmp.ge.s32.totalorder %v7135_v0, %v7110_v47 }
 0x299   : > { %2479 = vmatpush.bf16.msrb.mxu2 %v7061_v4 }
 0x29d   : > { %2480 = vmatpush.bf16.msrb.mxu2 %v2384_v9  ;;  %2668 = vmatmul.bf16.gmra.mxu3 %v7998_v37 }
 0x2a0   : > { %1983 = vmatmul.bf16.gmra.mxu2 %v1931_v55  ;;  %v4245_v55 = vor.u32 %v4480_v35, %v4242_v58 }
 0x2ad   : > { %2673 = vmatmul.bf16.gmra.mxu3 %v7999_v7 }
 0x2b0   : > { %2285 = vmatmul.bf16.vlgmr.msra.gmra.mxu2 %v7019_v63 }
 0x2c0   : > { %2290 = vmatmul.bf16.gmra.mxu2 %v7063_v20 }
 0x2ca   : > { %v2132_v16 = vpop.trf.xlu2 }
 0x2cb   : > { %4170 = vmatmul.msk.bf16.vlgmr.msra.gmra.mxu1 %vm2082_vm2, %v2132_v16 }
 0x2d0   : > { %2295 = vmatmul.bf16.gmra.mxu2 %v7050_v43  ;;  %v1896_v43 = vadd.s32 16, %v1894_v3 }
 0x2d2   : > { %vm1906_vm3 = vcmp.ge.s32.totalorder %v1896_v43, %v7110_v47 }
 0x2e0   : > { %2300 = vmatmul.bf16.gmra.mxu2 %v2256_v59  ;;  %v4478_v59 = vld [vmem:[#allocation11 + $0x54] sm:$0xf] }
 0x2e1   : > { %v4237_v11 = vor.u32 %v4478_v59, %v4234_v23 }
 0x2f3   : > { %v1969_v19 = vpop.f32.mrf.mxu2 }
 0x2f4   : > { %v1989_v27 = vsel %vm1904_vm0, %v1969_v19, 0.0  ;;  %v4213_v19 = vor.u32 %v4472_v17, %v4210_v6 }
 0x2fb   : > { %v1971_v32 = vpop.f32.mrf.mxu2 }
 0x2fc   : > { %v1990_v63 = vsel %vm1905_vm1, %v1971_v32, 0.0  ;;  %v4202_v32 = vld [vmem:[#allocation11 + $0x18] sm:$0xf0] }
 0x2fd   : > { %v1997_v22 = vpack.c.bf16 %v1990_v63, %v1989_v27  ;;  %v4205_v27 = vor.u32 %v4470_v49, %v4202_v32 }
 0x2ff   : > { %4166 = vmatmul.msk.bf16.vlgmr.msrb.gmra.mxu0 %vm2082_vm2, %v1997_v22 }
 0x300   : > { %2679 = vmatpush.bf16.msrb.mxu0 %v4253_v61 }
 0x303   : > { %v1974_v42 = vpop.f32.mrf.mxu2 }
 0x304   : > { %v1991_v57 = vsel %vm1906_vm3, %v1974_v42, 0.0  ;;  %2680 = vmatpush.bf16.msrb.mxu0 %v4245_v55 }
 0x308   : > { %2681 = vmatpush.bf16.msrb.mxu0 %v4237_v11 }
 0x30b   : > { %v1976_v31 = vpop.f32.mrf.mxu2 }
 0x30c   : > { %v1992_v5 = vsel %vm1907_vm5, %v1976_v31, 0.0  ;;  %2682 = vmatpush.bf16.msrb.mxu0 %v4229_v52  ;;  %v4468_v31 = vld [vmem:[#allocation11 + $0x4] sm:$0xf] }
 0x30d   : > { %v1998_v50 = vpack.c.bf16 %v1992_v5, %v1991_v57  ;;  %v4194_v57 = vld [vmem:[#allocation11 + $0x8] sm:$0xf0] }
 0x30e   : > { %v4197_v5 = vor.u32 %v4468_v31, %v4194_v57 }
 0x30f   : > { %4167 = vmatmul.msk.bf16.gmra.mxu0 %vm2082_vm2, %v1998_v50 }
 0x310   : > { %2683 = vmatpush.bf16.msrb.mxu0 %v4221_v62 }
 0x313   : > { %v1979_v13 = vpop.f32.mrf.mxu2 }
 0x314   : > { %v1993_v4 = vsel %vm1908_vm4, %v1979_v13, 0.0  ;;  %2684 = vmatpush.bf16.msrb.mxu0 %v4213_v19  ;;  %v2037_v13 = vpop.f32.mrf.mxu3 }
 0x318   : > { %2685 = vmatpush.bf16.msrb.mxu0 %v4205_v27 }
 0x31b   : > { %v1981_v36 = vpop.f32.mrf.mxu2 }
 0x31c   : > { %v1994_v8 = vsel %vm1909_vm6, %v1981_v36, 0.0  ;;  %2686 = vmatpush.bf16.msrb.mxu0 %v4197_v5 }
 0x31d   : > { %v1999_v44 = vpack.c.bf16 %v1994_v8, %v1993_v4  ;;  %v2040_v8 = vpop.f32.mrf.mxu3 }
 0x31f   : > { %4168 = vmatmul.msk.bf16.gmra.mxu0 %vm2082_vm2, %v1999_v44 }
 0x323   : > { %v1984_v20 = vpop.f32.mrf.mxu2 }
 0x324   : > { %v1995_v9 = vsel %vm1910_vm7, %v1984_v20, 0.0 }
 0x325   : > { %v2043_v44 = vpop.f32.mrf.mxu3 }
 0x32b   : > { %v1986_v33 = vpop.f32.mrf.mxu2 }
 0x32c   : > { %v1996_v53 = vsel %vm1911_vm8, %v1986_v33, 0.0 }
 0x32d   : > { %v2000_v39 = vpack.c.bf16 %v1996_v53, %v1995_v9  ;;  %v2046_v53 = vpop.f32.mrf.mxu3 }
 0x32f   : > { %4169 = vmatmul.msk.bf16.gmra.mxu0 %vm2082_vm2, %v2000_v39 }
 0x333   : > { %v2286_v14 = vpop.f32.mrf.mxu2 }
 0x334   : > { %v2306_v41 = vsel %vm1904_vm0, %v2286_v14, 0.0 }
 0x335   : > { %v2049_v29 = vpop.f32.mrf.mxu3 }
 0x33b   : > { %v2288_v10 = vpop.f32.mrf.mxu2 }
 0x33c   : > { %v2307_v12 = vsel %vm1905_vm1, %v2288_v10, 0.0 }
 0x33d   : > { %v2314_v54 = vpack.c.bf16 %v2307_v12, %v2306_v41  ;;  %v2052_v0 = vpop.f32.mrf.mxu3 }
 0x33f   : > { %4178 = vmatmul.msk.bf16.vlgmr.msra.gmra.mxu0 %vm2082_vm2, %v2314_v54 }
 0x343   : > { %v2291_v48 = vpop.f32.mrf.mxu2 }
 0x344   : > { %v2308_v38 = vsel %vm1906_vm3, %v2291_v48, 0.0 }
 0x345   : > { %v7179_v12 = vpop.f32.mrf.mxu3 }
 0x34b   : > { %v2293_v60 = vpop.f32.mrf.mxu2 }
 0x34c   : > { %v2309_v26 = vsel %vm1907_vm5, %v2293_v60, 0.0 }
 0x34d   : > { %v2315_v1 = vpack.c.bf16 %v2309_v26, %v2308_v38  ;;  %v2352_v2 = vpop.f32.mrf.mxu3 }
 0x34f   : > { %4179 = vmatmul.msk.bf16.gmra.mxu0 %vm2082_vm2, %v2315_v1 }
 0x353   : > { %v2296_v3 = vpop.f32.mrf.mxu2 }
 0x354   : > { %v2310_v22 = vsel %vm1908_vm4, %v2296_v3, 0.0 }
 0x355   : > { %v2355_v48 = vpop.f32.mrf.mxu3 }
 0x35b   : > { %v2298_v63 = vpop.f32.mrf.mxu2 }
 0x35c   : > { %v2311_v42 = vsel %vm1909_vm6, %v2298_v63, 0.0 }
 0x35d   : > { %v2316_v43 = vpack.c.bf16 %v2311_v42, %v2310_v22  ;;  %v2358_v59 = vpop.f32.mrf.mxu3  ;;  %v2133_v42 = vpop.trf.xlu2 }
 0x35e   : > { %4171 = vmatmul.msk.bf16.gmra.mxu1 %vm2082_vm2, %v2133_v42 }
 0x35f   : > { %4180 = vmatmul.msk.bf16.gmra.mxu0 %vm2082_vm2, %v2316_v43 }
 0x363   : > { %v2301_v50 = vpop.f32.mrf.mxu2 }
 0x364   : > { %v2312_v15 = vsel %vm1910_vm7, %v2301_v50, 0.0 }
 0x365   : > { %v2361_v1 = vpop.f32.mrf.mxu3 }
 0x36b   : > { %v2303_v36 = vpop.f32.mrf.mxu2 }
 0x36c   : > { %v2313_v18 = vsel %vm1911_vm8, %v2303_v36, 0.0 }
 0x36d   : > { %v2317_v4 = vpack.c.bf16 %v2313_v18, %v2312_v15  ;;  %v2364_v19 = vpop.f32.mrf.mxu3 }
 0x36f   : > { %4181 = vmatmul.msk.bf16.gmra.mxu0 %vm2082_vm2, %v2317_v4 }
 0x375   : > { %v2367_v31 = vpop.f32.mrf.mxu3 }
 0x37c   : > { %v2104_v20 = vpop.f32.mrf.mxu0 }
 0x37d   : > { %v7170_v33 = vadd.f32 %v2104_v20, %v2034_v40  ;;  %v2370_v4 = vpop.f32.mrf.mxu3  ;;  %v2134_v20 = vpop.trf.xlu2 }
 0x37e   : > { %4172 = vmatmul.msk.bf16.gmra.mxu1 %vm2082_vm2, %v2134_v20 }
 0x37f   : > { %2687 = vmatmul.bf16.vlgmr.msrb.gmra.mxu0 %v7996_v24  ;;  %v2708_v58 = vmul.f32 %v7170_v33, %v7170_v33 }
 0x384   : > { %v2106_v9 = vpop.f32.mrf.mxu0 }
 0x385   : > { %v7190_v23 = vadd.f32 %v2106_v9, %v2037_v13 }
 0x387   : > { %v2710_v38 = vmul.f32 %v7190_v23, %v7190_v23 }
 0x38c   : > { %v2109_v39 = vpop.f32.mrf.mxu0 }
 0x38d   : > { %v7173_v14 = vadd.f32 %v2109_v39, %v2040_v8 }
 0x38f   : > { %2692 = vmatmul.bf16.gmra.mxu0 %v7997_v21  ;;  %v2712_v52 = vmul.f32 %v7173_v14, %v7173_v14 }
 0x394   : > { %v2111_v47 = vpop.f32.mrf.mxu0 }
 0x395   : > { %v7205_v17 = vadd.f32 %v2111_v47, %v2043_v44  ;;  %v2373_v47 = vpop.f32.mrf.mxu3 }
 0x397   : > { %v2714_v32 = vmul.f32 %v7205_v17, %v7205_v17 }
 0x39c   : > { %v2114_v10 = vpop.f32.mrf.mxu0 }
 0x39d   : > { %v7176_v41 = vadd.f32 %v2114_v10, %v2046_v53  ;;  %v4491_v10 = vld [vmem:[#allocation12 + $0x38] sm:$0xff] }
 0x39e   : > { %3140 = vmatpush.bf16.msrb.mxu1 %v4491_v10 }
 0x39f   : > { %2697 = vmatmul.bf16.gmra.mxu0 %v7998_v37  ;;  %v2716_v43 = vmul.f32 %v7176_v41, %v7176_v41 }
 0x3a4   : > { %v2116_v54 = vpop.f32.mrf.mxu0 }
 0x3a5   : > { %v7220_v5 = vadd.f32 %v2116_v54, %v2049_v29 }
 0x3a7   : > { %v2718_v15 = vmul.f32 %v7220_v5, %v7220_v5 }
 0x3ac   : > { %v2119_v25 = vpop.f32.mrf.mxu0 }
 0x3ad   : > { %v7181_v24 = vadd.f32 %v2119_v25, %v2052_v0 }
 0x3af   : > { %2702 = vmatmul.bf16.gmra.mxu0 %v7999_v7  ;;  %v2720_v9 = vmul.f32 %v7181_v24, %v7181_v24 }
 0x3b4   : > { %v2121_v61 = vpop.f32.mrf.mxu0 }
 0x3b5   : > { %v7236_v29 = vadd.f32 %v2121_v61, %v7179_v12  ;;  %v4490_v12 = vld [vmem:[#allocation12 + $0x30] sm:$0xff] }
 0x3b6   : > { %3141 = vmatpush.bf16.msrb.mxu1 %v4490_v12 }
 0x3bc   : > { %v2413_v21 = vpop.f32.mrf.mxu0 }
 0x3bd   : > { %v7184_v35 = vadd.f32 %v2413_v21, %v2352_v2  ;;  %v2722_v2 = vmul.f32 %v7236_v29, %v7236_v29  ;;  %v2135_v21 = vpop.trf.xlu2 }
 0x3be   : > { %4173 = vmatmul.msk.bf16.gmra.mxu1 %vm2082_vm2, %v2135_v21 }
 0x3bf   : > { %v2709_v37 = vmul.f32 %v7184_v35, %v7184_v35 }
 0x3c1   : > { %v2724_v55 = vadd.f32 %v2709_v37, %v2708_v58  ;;  %v4489_v58 = vld [vmem:[#allocation12 + $0x28] sm:$0xff] }
 0x3c2   : > { %3142 = vmatpush.bf16.msrb.mxu1 %v4489_v58 }
 0x3c3   : > { %2725 = vadd.xlane.f32.xlu0 %v2724_v55 }
 0x3c4   : > { %v2415_v11 = vpop.f32.mrf.mxu0 }
 0x3c5   : > { %v7192_v60 = vadd.f32 %v2415_v11, %v2355_v48  ;;  %v2136_v61 = vpop.trf.xlu2 }
 0x3c7   : > { %v2711_v7 = vmul.f32 %v7192_v60, %v7192_v60 }
 0x3c9   : > { %v2727_v26 = vadd.f32 %v2711_v7, %v2710_v38 }
 0x3cb   : > { %2728 = vadd.xlane.f32.xlu1 %v2727_v26 }
 0x3cc   : > { %v2418_v34 = vpop.f32.mrf.mxu0 }
 0x3cd   : > { %v7198_v28 = vadd.f32 %v2418_v34, %v2358_v59  ;;  %v2137_v37 = vpop.trf.xlu2  ;;  %v4488_v59 = vld [vmem:[#allocation12 + $0x20] sm:$0xff] }
 0x3ce   : > { %4174 = vmatmul.msk.bf16.gmra.mxu1 %vm2082_vm2, %v2136_v61 }
 0x3cf   : > { %v2713_v56 = vmul.f32 %v7198_v28, %v7198_v28  ;;  %3143 = vmatpush.bf16.msrb.mxu1 %v4488_v59  ;;  %v4486_v59 = vld [vmem:[#allocation12 + $0x10] sm:$0xff] }
 0x3d1   : > { %v2730_v62 = vadd.f32 %v2713_v56, %v2712_v52 }
 0x3d3   : > { %2731 = vadd.xlane.f32.xlu0 %v2730_v62 }
 0x3d4   : > { %v2420_v6 = vpop.f32.mrf.mxu0 }
 0x3d5   : > { %v7207_v3 = vadd.f32 %v2420_v6, %v2361_v1  ;;  %v2138_v1 = vpop.trf.xlu2 }
 0x3d7   : > { %v2715_v49 = vmul.f32 %v7207_v3, %v7207_v3 }
 0x3d9   : > { %v2733_v27 = vadd.f32 %v2715_v49, %v2714_v32  ;;  %v4499_v49 = vld [vmem:[#allocation12 + $0x78] sm:$0xff] }
 0x3da   : > { %v4487_v32 = vld [vmem:[#allocation12 + $0x18] sm:$0xff]  ;;  %3169 = vmatpush.bf16.msrb.mxu3 %v4499_v49 }
 0x3db   : > { %2734 = vadd.xlane.f32.xlu1 %v2733_v27  ;;  %3144 = vmatpush.bf16.msrb.mxu1 %v4487_v32 }
 0x3dc   : > { %v2423_v63 = vpop.f32.mrf.mxu0 }
 0x3dd   : > { %v7213_v22 = vadd.f32 %v2423_v63, %v2364_v19  ;;  %v4498_v63 = vld [vmem:[#allocation12 + $0x70] sm:$0xff] }
 0x3de   : > { %4175 = vmatmul.msk.bf16.gmra.mxu1 %vm2082_vm2, %v2137_v37  ;;  %3170 = vmatpush.bf16.msrb.mxu3 %v4498_v63 }
 0x3df   : > { %v2717_v40 = vmul.f32 %v7213_v22, %v7213_v22  ;;  %3145 = vmatpush.bf16.msrb.mxu1 %v4486_v59 }
 0x3e1   : > { %v2736_v57 = vadd.f32 %v2717_v40, %v2716_v43 }
 0x3e3   : > { %2737 = vadd.xlane.f32.xlu0 %v2736_v57 }
 0x3e4   : > { %v2425_v50 = vpop.f32.mrf.mxu0 }
 0x3e5   : > { %v7222_v13 = vadd.f32 %v2425_v50, %v2367_v31 }
 0x3e7   : > { %v2719_v36 = vmul.f32 %v7222_v13, %v7222_v13 }
 0x3e9   : > { %v2739_v18 = vadd.f32 %v2719_v36, %v2718_v15 }
 0x3eb   : > { %2740 = vadd.xlane.f32.xlu1 %v2739_v18 }
 0x3ec   : > { %v2428_v8 = vpop.f32.mrf.mxu0 }
 0x3ed   : > { %v7228_v44 = vadd.f32 %v2428_v8, %v2370_v4  ;;  %v4497_v4 = vld [vmem:[#allocation12 + $0x68] sm:$0xff]  ;;  %v2139_v8 = vpop.trf.xlu2 }
 0x3ee   : > { %4176 = vmatmul.msk.bf16.gmra.mxu1 %vm2082_vm2, %v2138_v1  ;;  %3171 = vmatpush.bf16.msrb.mxu3 %v4497_v4 }
 0x3ef   : > { %v2721_v53 = vmul.f32 %v7228_v44, %v7228_v44 }
 0x3f1   : > { %v2742_v39 = vadd.f32 %v2721_v53, %v2720_v9  ;;  %v4496_v53 = vld [vmem:[#allocation12 + $0x60] sm:$0xff] }
 0x3f2   : > { %3172 = vmatpush.bf16.msrb.mxu3 %v4496_v53 }
 0x3f3   : > { %2743 = vadd.xlane.f32.xlu0 %v2742_v39 }
 0x3f4   : > { %v2430_v0 = vpop.f32.mrf.mxu0 }
 0x3f5   : > { %v7238_v54 = vadd.f32 %v2430_v0, %v2373_v47 }
 0x3f7   : > { %v2723_v25 = vmul.f32 %v7238_v54, %v7238_v54 }
 0x3f9   : > { %v2745_v48 = vadd.f32 %v2723_v25, %v2722_v2 }
 0x3fb   : > { %2746 = vadd.xlane.f32.xlu1 %v2745_v48 }
 0x3fe   : > { %4177 = vmatmul.msk.bf16.gmra.mxu1 %vm2082_vm2, %v2139_v8 }
 0x436   : > { %v2726_v55 = vpop.xlane.xlu0 %2725 }
 0x437   : > { %4865 = vrsqrt.f32 %v2726_v55  ;;  %vm2755_vm9 = vcmp.eq.f32.partialorder %v2726_v55, inf  ;;  %v2758_v20 = vand.u32 2147483648, %v2726_v55  ;;  %vm2757_vm10 = vcmp.eq.f32.partialorder %v2726_v55, 0.0 }
 0x43d   : > { %v4866_v11 = vpop.eup %4865 }
 0x43e   : > { %v2749_v7 = vmul.f32 %v4866_v11, %v2726_v55  ;;  %v2729_v38 = vpop.xlane.xlu1 %2728 }
 0x43f   : > { %4867 = vrsqrt.f32 %v2729_v38  ;;  %vm2767_vm11 = vcmp.eq.f32.partialorder %v2729_v38, inf  ;;  %v2770_v0 = vand.u32 2147483648, %v2729_v38  ;;  %vm2769_vm12 = vcmp.eq.f32.partialorder %v2729_v38, 0.0 }
 0x440   : > { %v2750_v26 = vmul.f32 %v4866_v11, %v2749_v7 }
 0x442   : > { %v2751_v34 = vmul.f32 0.5, %v2750_v26  ;;  %v4494_v26 = vld [vmem:[#allocation12 + $0x50] sm:$0xff] }
 0x444   : > { %v2752_v52 = vsub.f32 1.5, %v2751_v34 }
 0x445   : > { %v4868_v56 = vpop.eup %4867 }
 0x446   : > { %v2761_v16 = vmul.f32 %v4868_v56, %v2729_v38  ;;  %v7248_v62 = vpop.xlane.xlu0 %2731  ;;  %v2753_v6 = vmul.f32 %v4866_v11, %v2752_v52 }
 0x447   : > { %4869 = vrsqrt.f32 %v7248_v62  ;;  %vm2779_vm13 = vcmp.eq.f32.partialorder %v7248_v62, inf  ;;  %v2782_v34 = vand.u32 2147483648, %v7248_v62  ;;  %vm2781_vm14 = vcmp.eq.f32.partialorder %v7248_v62, 0.0 }
 0x448   : > { %v2762_v19 = vmul.f32 %v4868_v56, %v2761_v16  ;;  %v2754_v42 = vmul.f32 %v2753_v6, %v2726_v55  ;;  %v7266_v16 = vpop.f32.mrf.mxu3 }
 0x44a   : > { %v2763_v27 = vmul.f32 0.5, %v2762_v19  ;;  %v2756_v36 = vsel %vm2755_vm9, %v2726_v55, %v2754_v42  ;;  %v4495_v55 = vld [vmem:[#allocation12 + $0x58] sm:$0xff]  ;;  %v7271_v19 = vpop.f32.mrf.mxu0 }
 0x44b   : > { %v2759_v39 = vsel %vm2757_vm10, %v2758_v20, %v2756_v36  ;;  %3173 = vmatpush.bf16.msrb.mxu3 %v4495_v55  ;;  %v4484_v20 = vld [vmem:[#allocation12] sm:$0xff] }
 0x44c   : > { %v2764_v43 = vsub.f32 1.5, %v2763_v27  ;;  %v2844_v2 = vmul.f32 0.125, %v2759_v39 }
 0x44d   : > { %v4870_v40 = vpop.eup %4869 }
 0x44e   : > { %v2765_v31 = vmul.f32 %v4868_v56, %v2764_v43  ;;  %v2773_v57 = vmul.f32 %v4870_v40, %v7248_v62  ;;  %v7252_v50 = vpop.xlane.xlu1 %2734  ;;  %v7261_v7 = vadd.f32 1e-06, %v2844_v2 }
 0x44f   : > { %4871 = vrsqrt.f32 %v7252_v50  ;;  %3174 = vmatpush.bf16.msrb.mxu3 %v4494_v26  ;;  %vm2791_vm15 = vcmp.eq.f32.partialorder %v7252_v50, inf  ;;  %v2794_v36 = vand.u32 2147483648, %v7252_v50  ;;  %vm2793_vm0 = vcmp.eq.f32.partialorder %v7252_v50, 0.0 }
 0x450   : > { %v2766_v15 = vmul.f32 %v2765_v31, %v2729_v38  ;;  %v2774_v18 = vmul.f32 %v4870_v40, %v2773_v57  ;;  %v2173_v31 = vpop.f32.mrf.mxu1  ;;  %vm2865_vm7 = vweird.f32 %v7261_v7 }
 0x452   : > { %v2775_v9 = vmul.f32 0.5, %v2774_v18  ;;  %v2768_v47 = vsel %vm2767_vm11, %v2729_v38, %v2766_v15  ;;  %v4929_v15 = vld [vmem:[#allocation2 + $0xb0] sm:$0xff] }
 0x453   : > { %v2771_v48 = vsel %vm2769_vm12, %v2770_v0, %v2768_v47  ;;  %v2213_v18 = vadd.f32 %v4929_v15, %v2173_v31 }
 0x454   : > { %v2776_v10 = vsub.f32 1.5, %v2775_v9  ;;  %v2845_v11 = vmul.f32 0.125, %v2771_v48  ;;  %v4492_v9 = vld [vmem:[#allocation12 + $0x40] sm:$0xff] }
 0x455   : > { %v4872_v25 = vpop.eup %4871  ;;  %2229 = vst [vmem:[#allocation2 + $0xb0] sm:$0xff] %v2213_v18 }
 0x456   : > { %v2777_v21 = vmul.f32 %v4870_v40, %v2776_v10  ;;  %v2785_v12 = vmul.f32 %v4872_v25, %v7252_v50  ;;  %v7257_v61 = vpop.xlane.xlu0 %2737  ;;  %v7268_v6 = vadd.f32 1e-06, %v2845_v11  ;;  %v4485_v40 = vld [vmem:[#allocation12 + $0x8] sm:$0xff] }
 0x457   : > { %4873 = vrsqrt.f32 %v7257_v61  ;;  %3146 = vmatpush.bf16.msrb.mxu1 %v4485_v40  ;;  %vm2803_vm1 = vcmp.eq.f32.partialorder %v7257_v61, inf  ;;  %vm2805_vm3 = vcmp.eq.f32.partialorder %v7257_v61, 0.0  ;;  %v2806_v55 = vand.u32 2147483648, %v7257_v61 }
 0x458   : > { %v2778_v58 = vmul.f32 %v2777_v21, %v7248_v62  ;;  %v2786_v37 = vmul.f32 %v4872_v25, %v2785_v12  ;;  %4875 = vrcp.f32 %v7261_v7  ;;  %v7293_v12 = vpop.f32.mrf.mxu3  ;;  %vm2881_vm10 = vweird.f32 %v7268_v6 }
 0x45a   : > { %v2787_v38 = vmul.f32 0.5, %v2786_v37  ;;  %v2780_v1 = vsel %vm2779_vm13, %v7248_v62, %v2778_v58  ;;  %v4493_v62 = vld [vmem:[#allocation12 + $0x48] sm:$0xff]  ;;  %v7298_v58 = vpop.f32.mrf.mxu0 }
 0x45b   : > { %v2783_v49 = vsel %vm2781_vm14, %v2782_v34, %v2780_v1  ;;  %3175 = vmatpush.bf16.msrb.mxu3 %v4493_v62  ;;  %3147 = vmatpush.bf16.msrb.mxu1 %v4484_v20  ;;  %v2869_v1 = vand.u32 2147483647, %v7261_v7 }
 0x45c   : > { %v2788_v52 = vsub.f32 1.5, %v2787_v38  ;;  %v2846_v57 = vmul.f32 0.125, %v2783_v49  ;;  %v2175_v38 = vpop.f32.mrf.mxu1 }
 0x45d   : > { %v4874_v56 = vpop.eup %4873  ;;  %vm2870_vm8 = vcmp.eq.f32.partialorder %v2869_v1, 8.507059e+37 }
 0x45e   : > { %v2789_v32 = vmul.f32 %v4872_v25, %v2788_v52  ;;  %v2797_v27 = vmul.f32 %v4874_v56, %v7257_v61  ;;  %v7275_v63 = vpop.xlane.xlu1 %2740  ;;  %v7284_v39 = vpop.eup %4875  ;;  %v7286_v10 = vadd.f32 1e-06, %v2846_v57 }
 0x45f   : > { %4877 = vrsqrt.f32 %v7275_v63  ;;  %3176 = vmatpush.bf16.msrb.mxu3 %v4492_v9  ;;  %v2861_v11 = vmul.f32 %v7284_v39, %v7261_v7  ;;  %vm2815_vm5 = vcmp.eq.f32.partialorder %v7275_v63, inf  ;;  %vm2817_vm4 = vcmp.eq.f32.partialorder %v7275_v63, 0.0 }
 0x460   : > { %v2790_v42 = vmul.f32 %v2789_v32, %v7252_v50  ;;  %v2798_v43 = vmul.f32 %v4874_v56, %v2797_v27  ;;  %4879 = vrcp.f32 %v7268_v6  ;;  %v2818_v27 = vand.u32 2147483648, %v7275_v63 }
 0x461   : > { %vm2866_vm6 = vweird.f32 %v7284_v39 }
 0x462   : > { %v2792_v4 = vsel %vm2791_vm15, %v7252_v50, %v2790_v42  ;;  %v2799_v8 = vmul.f32 0.5, %v2798_v43  ;;  %v2871_v43 = vand.u32 2147483648, %v7261_v7  ;;  %vm2867_vm9 = vmor %vm2865_vm7, %vm2866_vm6  ;;  %v2887_v7 = vand.u32 2147483648, %v7268_v6 }
 0x463   : > { %v2795_v53 = vsel %vm2793_vm0, %v2794_v36, %v2792_v4 }
 0x464   : > { %v2800_v47 = vsub.f32 1.5, %v2799_v8  ;;  %v2847_v25 = vmul.f32 0.125, %v2795_v53  ;;  %v2872_v53 = vor.u32 1.1754944e-38, %v2871_v43  ;;  %v4931_v43 = vld [vmem:[#allocation2 + $0xd8] sm:$0xff] }
 0x465   : > { %v4878_v0 = vpop.eup %4877 }
 0x466   : > { %v2801_v2 = vmul.f32 %v4874_v56, %v2800_v47  ;;  %v2809_v48 = vmul.f32 %v4878_v0, %v7275_v63  ;;  %v7289_v21 = vpop.xlane.xlu0 %2743  ;;  %v7291_v50 = vpop.eup %4879  ;;  %v7305_v26 = vadd.f32 1e-06, %v2847_v25  ;;  %v2862_v56 = vsub.f32 1.0, %v2861_v11 }
 0x467   : > { %4881 = vrsqrt.f32 %v7289_v21  ;;  %v2877_v49 = vmul.f32 %v7291_v50, %v7268_v6  ;;  %v2830_v42 = vand.u32 2147483648, %v7289_v21  ;;  %vm2827_vm11 = vcmp.eq.f32.partialorder %v7289_v21, inf }
 0x468   : > { %v2802_v37 = vmul.f32 %v2801_v2, %v7257_v61  ;;  %v2810_v59 = vmul.f32 %v4878_v0, %v2809_v48  ;;  %4883 = vrcp.f32 %v7286_v10  ;;  %v2863_v31 = vmul.f32 %v7284_v39, %v2862_v56  ;;  %v2178_v48 = vpop.f32.mrf.mxu1 }
 0x469   : > { %4885 = vrcp.f32 %v7305_v26  ;;  %v2878_v36 = vsub.f32 1.0, %v2877_v49  ;;  %vm2882_vm12 = vweird.f32 %v7291_v50  ;;  %v2885_v11 = vand.u32 2147483647, %v7268_v6 }
 0x46a   : > { %v2804_v34 = vsel %vm2803_vm1, %v7257_v61, %v2802_v37  ;;  %v2811_v52 = vmul.f32 0.5, %v2810_v59  ;;  %v4930_v61 = vld [vmem:[#allocation2] sm:$0xff]  ;;  %v2864_v20 = vadd.f32 %v7284_v39, %v2863_v31  ;;  %v7335_v37 = vpop.f32.mrf.mxu3  ;;  %vm2829_vm13 = vcmp.eq.f32.partialorder %v7289_v21, 0.0  ;;  %vm2883_vm14 = vmor %vm2881_vm10, %vm2882_vm12 }
 0x46b   : > { %v2807_v32 = vsel %vm2805_vm3, %v2806_v55, %v2804_v34  ;;  %v2214_v15 = vadd.f32 %v4930_v61, %v2175_v38  ;;  %v2879_v59 = vmul.f32 %v7291_v50, %v2878_v36  ;;  %v7341_v38 = vpop.f32.mrf.mxu0  ;;  %vm2886_vm15 = vcmp.eq.f32.partialorder %v2885_v11, 8.507059e+37 }
 0x46c   : > { %v2848_v40 = vmul.f32 0.125, %v2807_v32  ;;  %v2812_v62 = vsub.f32 1.5, %v2811_v52  ;;  %v2868_v2 = vsel %vm2867_vm9, %v7284_v39, %v2864_v20  ;;  %vm2897_vm1 = vweird.f32 %v7286_v10 }
 0x46d   : > { %v4882_v57 = vpop.eup %4881  ;;  %2230 = vst [vmem:[#allocation2] sm:$0xff] %v2214_v15  ;;  %v2873_v55 = vsel %vm2870_vm8, %v2872_v53, %v2868_v2  ;;  %v2880_v32 = vadd.f32 %v7291_v50, %v2879_v59  ;;  %vm2913_vm8 = vweird.f32 %v7305_v26 }
 0x46e   : > { %v2813_v18 = vmul.f32 %v4878_v0, %v2812_v62  ;;  %v2821_v4 = vmul.f32 %v4882_v57, %v7289_v21  ;;  %v7323_v8 = vpop.xlane.xlu1 %2746  ;;  %v7326_v9 = vpop.eup %4883  ;;  %v7331_v47 = vadd.f32 1e-06, %v2848_v40  ;;  %v2874_v39 = vmul.f32 %v2873_v55, %v7170_v33 }
 0x46f   : > { %4887 = vrsqrt.f32 %v7323_v8  ;;  %v2875_v52 = vmul.f32 %v2873_v55, %v7184_v35  ;;  %v7349_v56 = vpop.eup %4885  ;;  %v2215_v40 = vadd.f32 %v4931_v43, %v2178_v48  ;;  %v2893_v62 = vmul.f32 %v7326_v9, %v7286_v10 }
 0x470   : > { %v2814_v0 = vmul.f32 %v2813_v18, %v7275_v63  ;;  %v2822_v25 = vmul.f32 %v4882_v57, %v2821_v4  ;;  %4889 = vrcp.f32 %v7331_v47  ;;  %v2888_v33 = vor.u32 1.1754944e-38, %v2887_v7 }
 0x471   : > { %2231 = vst [vmem:[#allocation2 + $0xd8] sm:$0xff] %v2215_v40  ;;  %v2894_v61 = vsub.f32 1.0, %v2893_v62  ;;  %v2989_v20 = vmul.f32 %v2875_v52, %v7271_v19  ;;  %vm2898_vm0 = vweird.f32 %v7326_v9  ;;  %v2909_v11 = vmul.f32 %v7349_v56, %v7305_v26 }
 0x472   : > { %v2816_v1 = vsel %vm2815_vm5, %v7275_v63, %v2814_v0  ;;  %v2823_v34 = vmul.f32 0.5, %v2822_v25  ;;  %v2884_v63 = vsel %vm2883_vm14, %v7291_v50, %v2880_v32  ;;  %vm7392_vm3 = vmor %vm2897_vm1, %vm2898_vm0  ;;  %v2917_v62 = vand.u32 2147483647, %v7305_v26 }
 0x473   : > { %v2819_v49 = vsel %vm2817_vm4, %v2818_v27, %v2816_v1  ;;  %v2988_v27 = vmul.f32 %v2874_v39, %v7266_v16  ;;  %v2889_v4 = vsel %vm2886_vm15, %v2888_v33, %v2884_v63  ;;  %v2895_v0 = vmul.f32 %v7326_v9, %v2894_v61  ;;  %v2666_v1 = vpop.f32.mrf.mxu3 }
 0x474   : > { %v2849_v31 = vmul.f32 0.125, %v2819_v49  ;;  %v2824_v36 = vsub.f32 1.5, %v2823_v34  ;;  %v2890_v6 = vmul.f32 %v2889_v4, %v7190_v23  ;;  %v2891_v7 = vmul.f32 %v2889_v4, %v7192_v60 }
 0x475   : > { %v4888_v35 = vpop.eup %4887  ;;  %v2901_v16 = vand.u32 2147483647, %v7286_v10  ;;  %v2896_v48 = vadd.f32 %v7326_v9, %v2895_v0  ;;  %v2903_v23 = vand.u32 2147483648, %v7286_v10  ;;  %v2695_v10 = vpop.f32.mrf.mxu0  ;;  %v2910_v43 = vsub.f32 1.0, %v2909_v11 }
 0x476   : > { %v2825_v15 = vmul.f32 %v4882_v57, %v2824_v36  ;;  %v2833_v18 = vmul.f32 %v4888_v35, %v7323_v8  ;;  %v7365_v53 = vadd.f32 1e-06, %v2849_v31  ;;  %v2180_v57 = vpop.f32.mrf.mxu1  ;;  %v2990_v2 = vmul.f32 %v2890_v6, %v7293_v12  ;;  %v7377_v55 = vpop.eup %4889 }
 0x477   : > { %v2991_v19 = vmul.f32 %v2891_v7, %v7298_v58  ;;  %v2900_v32 = vsel %vm7392_vm3, %v7326_v9, %v2896_v48  ;;  %vm2902_vm5 = vcmp.eq.f32.partialorder %v2901_v16, 8.507059e+37  ;;  %vm2914_vm4 = vweird.f32 %v7349_v56  ;;  %v4932_v9 = vld [vmem:[#allocation2 + $0x18] sm:$0xff] }
 0x478   : > { %v2826_v50 = vmul.f32 %v2825_v15, %v7289_v21  ;;  %v2834_v25 = vmul.f32 %v4888_v35, %v2833_v18  ;;  %4891 = vrcp.f32 %v7365_v53  ;;  %v3004_v58 = vpack.c.bf16 %v2990_v2, %v2988_v27  ;;  %vm2915_vm9 = vmor %vm2913_vm8, %vm2914_vm4 }
 0x479   : > { %v3005_v34 = vpack.c.bf16 %v2991_v19, %v2989_v20  ;;  %v2911_v40 = vmul.f32 %v7349_v56, %v2910_v43  ;;  %v2919_v31 = vand.u32 2147483648, %v7305_v26  ;;  %vm2839_vm6 = vcmp.eq.f32.partialorder %v7323_v8, inf  ;;  %v4933_v20 = vld [vmem:[#allocation2 + $0x50] sm:$0xff] }
 0x47a   : > { %v2828_v60 = vsel %vm2827_vm11, %v7289_v21, %v2826_v50  ;;  %v2835_v59 = vmul.f32 0.5, %v2834_v25  ;;  %3148 = vmatmul.bf16.vlgmr.msrb.gmra.mxu1 %v3004_v58  ;;  %v2904_v21 = vor.u32 1.1754944e-38, %v2903_v23  ;;  %vm2841_vm7 = vcmp.eq.f32.partialorder %v7323_v8, 0.0 }
 0x47b   : > { %v2831_v12 = vsel %vm2829_vm13, %v2830_v42, %v2828_v60  ;;  %3177 = vmatmul.bf16.vlgmr.msrb.gmra.mxu3 %v3005_v34  ;;  %v2216_v33 = vadd.f32 %v4932_v9, %v2180_v57  ;;  %v2912_v61 = vadd.f32 %v7349_v56, %v2911_v40  ;;  %v2842_v18 = vand.u32 2147483648, %v7323_v8  ;;  %v2669_v60 = vpop.f32.mrf.mxu3 }
 0x47c   : > { %v2850_v52 = vmul.f32 0.125, %v2831_v12  ;;  %v2836_v49 = vsub.f32 1.5, %v2835_v59  ;;  %v2905_v36 = vsel %vm2902_vm5, %v2904_v21, %v2900_v32  ;;  %v2920_v4 = vor.u32 1.1754944e-38, %v2919_v31  ;;  %v4934_v32 = vld [vmem:[#allocation2 + $0x68] sm:$0xff] }
 0x47d   : > { %2232 = vst [vmem:[#allocation2 + $0x18] sm:$0xff] %v2216_v33  ;;  %v2925_v7 = vmul.f32 %v7377_v55, %v7331_v47  ;;  %v2906_v26 = vmul.f32 %v2905_v36, %v7173_v14  ;;  %v2916_v50 = vsel %vm2915_vm9, %v7349_v56, %v2912_v61  ;;  %vm2918_vm10 = vcmp.eq.f32.partialorder %v2917_v62, 8.507059e+37 }
 0x47e   : > { %v2837_v42 = vmul.f32 %v4888_v35, %v2836_v49  ;;  %v7405_v63 = vadd.f32 1e-06, %v2850_v52  ;;  %v2183_v35 = vpop.f32.mrf.mxu1  ;;  %v7410_v15 = vpop.eup %4891  ;;  %v2921_v16 = vsel %vm2918_vm10, %v2920_v4, %v2916_v50  ;;  %v2907_v57 = vmul.f32 %v2905_v36, %v7198_v28 }
 0x47f   : > { %v2217_v6 = vadd.f32 %v4933_v20, %v2183_v35  ;;  %v2926_v2 = vsub.f32 1.0, %v2925_v7  ;;  %v2922_v48 = vmul.f32 %v2921_v16, %v7205_v17  ;;  %v2923_v23 = vmul.f32 %v2921_v16, %v7207_v3 }
 0x480   : > { %v2838_v27 = vmul.f32 %v2837_v42, %v7323_v8  ;;  %4893 = vrcp.f32 %v7405_v63  ;;  %v2941_v56 = vmul.f32 %v7410_v15, %v7365_v53  ;;  %v2992_v12 = vmul.f32 %v2906_v26, %v7335_v37 }
 0x481   : > { %2233 = vst [vmem:[#allocation2 + $0x50] sm:$0xff] %v2217_v6  ;;  %v2927_v14 = vmul.f32 %v7377_v55, %v2926_v2  ;;  %v2994_v11 = vmul.f32 %v2922_v48, %v2666_v1  ;;  %v2995_v28 = vmul.f32 %v2923_v23, %v2695_v10  ;;  %v2993_v58 = vmul.f32 %v2907_v57, %v7341_v38  ;;  %v4935_v6 = vld [vmem:[#allocation2 + $0x30] sm:$0xff] }
 0x482   : > { %v2840_v0 = vsel %vm2839_vm6, %v7323_v8, %v2838_v27  ;;  %v2698_v8 = vpop.f32.mrf.mxu0  ;;  %vm2930_vm11 = vweird.f32 %v7377_v55  ;;  %v2942_v17 = vsub.f32 1.0, %v2941_v56  ;;  %vm2946_vm12 = vweird.f32 %v7410_v15 }
 0x483   : > { %v2843_v25 = vsel %vm2841_vm7, %v2842_v18, %v2840_v0  ;;  %v2928_v3 = vadd.f32 %v7377_v55, %v2927_v14  ;;  %v2951_v34 = vand.u32 2147483648, %v7365_v53  ;;  %v3006_v52 = vpack.c.bf16 %v2994_v11, %v2992_v12  ;;  %v2671_v27 = vpop.f32.mrf.mxu3  ;;  %v4936_v11 = vld [vmem:[#allocation2 + $0x48] sm:$0xff] }
 0x484   : > { %v2851_v19 = vmul.f32 0.125, %v2843_v25  ;;  %v3007_v49 = vpack.c.bf16 %v2995_v28, %v2993_v58  ;;  %v2943_v1 = vmul.f32 %v7410_v15, %v2942_v17  ;;  %v2949_v37 = vand.u32 2147483647, %v7365_v53 }
 0x485   : > { %vm2929_vm13 = vweird.f32 %v7331_v47  ;;  %v2935_v38 = vand.u32 2147483648, %v7331_v47  ;;  %v2933_v42 = vand.u32 2147483647, %v7331_v47  ;;  %vm2945_vm15 = vweird.f32 %v7365_v53 }
 0x486   : > { %v7431_v59 = vadd.f32 1e-06, %v2851_v19  ;;  %v2185_v39 = vpop.f32.mrf.mxu1  ;;  %v7442_v10 = vpop.eup %4893  ;;  %vm7448_vm14 = vmor %vm2929_vm13, %vm2930_vm11  ;;  %v2944_v40 = vadd.f32 %v7410_v15, %v2943_v1  ;;  %v2952_v62 = vor.u32 1.1754944e-38, %v2951_v34  ;;  %vm2950_vm1 = vcmp.eq.f32.partialorder %v2949_v37, 8.507059e+37  ;;  %v4937_v37 = vld [vmem:[#allocation2 + $0x80] sm:$0xff] }
 0x487   : > { %v2218_v43 = vadd.f32 %v4934_v32, %v2185_v39  ;;  %vm2947_vm0 = vmor %vm2945_vm15, %vm2946_vm12  ;;  %v2932_v31 = vsel %vm7448_vm14, %v7377_v55, %v2928_v3  ;;  %v2957_v47 = vmul.f32 %v7442_v10, %v7405_v63  ;;  %v2936_v33 = vor.u32 1.1754944e-38, %v2935_v38 }
 0x488   : > { %4895 = vrcp.f32 %v7431_v59  ;;  %v2948_v36 = vsel %vm2947_vm0, %v7410_v15, %v2944_v40  ;;  %vm2934_vm3 = vcmp.eq.f32.partialorder %v2933_v42, 8.507059e+37  ;;  %vm2962_vm4 = vweird.f32 %v7442_v10 }
 0x489   : > { %2234 = vst [vmem:[#allocation2 + $0x68] sm:$0xff] %v2218_v43  ;;  %v2953_v53 = vsel %vm2950_vm1, %v2952_v62, %v2948_v36  ;;  %v2937_v18 = vsel %vm2934_vm3, %v2936_v33, %v2932_v31  ;;  %v2958_v7 = vsub.f32 1.0, %v2957_v47  ;;  %vm2977_vm6 = vweird.f32 %v7431_v59  ;;  %v4938_v33 = vld [vmem:[#allocation2 + $0x88] sm:$0xff] }
 0x48a   : > { %3153 = vmatmul.bf16.gmra.mxu1 %v3006_v52  ;;  %v2700_v35 = vpop.f32.mrf.mxu0  ;;  %v2954_v20 = vmul.f32 %v2953_v53, %v7220_v5  ;;  %v2955_v55 = vmul.f32 %v2953_v53, %v7222_v13  ;;  %v2938_v26 = vmul.f32 %v2937_v18, %v7176_v41  ;;  %v2939_v50 = vmul.f32 %v2937_v18, %v7213_v22  ;;  %v4939_v53 = vld [vmem:[#allocation2 + $0xe8] sm:$0xff]  ;;  %v4941_v18 = vld [vmem:[#allocation2 + $0x60] sm:$0xff] }
 0x48b   : > { %3182 = vmatmul.bf16.gmra.mxu3 %v3007_v49  ;;  %v2959_v2 = vmul.f32 %v7442_v10, %v2958_v7  ;;  %v2981_v5 = vand.u32 2147483647, %v7431_v59  ;;  %v2983_v41 = vand.u32 2147483648, %v7431_v59  ;;  %v2674_v12 = vpop.f32.mrf.mxu3  ;;  %vm2961_vm8 = vweird.f32 %v7405_v63  ;;  %v4943_v7 = vld [vmem:[#allocation2 + $0x8] sm:$0xff] }
 0x48c   : > { %v2998_v16 = vmul.f32 %v2954_v20, %v2671_v27  ;;  %v2999_v57 = vmul.f32 %v2955_v55, %v2700_v35  ;;  %v2996_v19 = vmul.f32 %v2938_v26, %v2669_v60  ;;  %v2997_v48 = vmul.f32 %v2939_v50, %v2698_v8  ;;  %vm2963_vm9 = vmor %vm2961_vm8, %vm2962_vm4  ;;  %v4940_v27 = vld [vmem:[#allocation2 + $0xb8] sm:$0xff]  ;;  %v4942_v55 = vld [vmem:[#allocation2 + $0xf0] sm:$0xff] }
 0x48d   : > { %v2960_v56 = vadd.f32 %v7442_v10, %v2959_v2  ;;  %v2967_v8 = vand.u32 2147483648, %v7405_v63  ;;  %v2965_v58 = vand.u32 2147483647, %v7405_v63  ;;  %vm2982_vm10 = vcmp.eq.f32.partialorder %v2981_v5, 8.507059e+37  ;;  %v4944_v50 = vld [vmem:[#allocation2 + $0x78] sm:$0xff] }
 0x48e   : > { %v4896_v9 = vpop.eup %4895  ;;  %v2188_v4 = vpop.f32.mrf.mxu1  ;;  %v3008_v22 = vpack.c.bf16 %v2998_v16, %v2996_v19  ;;  %v3009_v14 = vpack.c.bf16 %v2999_v57, %v2997_v48  ;;  %v4945_v48 = vld [vmem:[%s5555_s2] sm:$0xff] }
 0x48f   : > { %v2973_v61 = vmul.f32 %v4896_v9, %v7431_v59  ;;  %v2219_v15 = vadd.f32 %v4935_v6, %v2188_v4  ;;  %vm2978_vm5 = vweird.f32 %v4896_v9  ;;  %v2984_v59 = vor.u32 1.1754944e-38, %v2983_v41 }
 0x490   : > { %vm2979_vm7 = vmor %vm2977_vm6, %vm2978_vm5  ;;  %v2964_v3 = vsel %vm2963_vm9, %v7442_v10, %v2960_v56  ;;  %v2968_v34 = vor.u32 1.1754944e-38, %v2967_v8  ;;  %vm2966_vm11 = vcmp.eq.f32.partialorder %v2965_v58, 8.507059e+37  ;;  %v4947_v8 = vld [vmem:[%s5555_s2 + $0x10] sm:$0xff] }
 0x491   : > { %v2974_v0 = vsub.f32 1.0, %v2973_v61  ;;  %2235 = vst [vmem:[#allocation2 + $0x30] sm:$0xff] %v2219_v15 }
 0x492   : > { %v2703_v60 = vpop.f32.mrf.mxu0  ;;  %v2969_v52 = vsel %vm2966_vm11, %v2968_v34, %v2964_v3 }
 0x493   : > { %v2975_v25 = vmul.f32 %v4896_v9, %v2974_v0  ;;  %v2970_v32 = vmul.f32 %v2969_v52, %v7181_v24  ;;  %v2971_v43 = vmul.f32 %v2969_v52, %v7228_v44  ;;  %v2676_v21 = vpop.f32.mrf.mxu3 }
 0x495   : > { %v2976_v23 = vadd.f32 %v4896_v9, %v2975_v25  ;;  %v3000_v62 = vmul.f32 %v2970_v32, %v2674_v12  ;;  %v3001_v31 = vmul.f32 %v2971_v43, %v2703_v60 }
 0x496   : > { %v2190_v13 = vpop.f32.mrf.mxu1 }
 0x497   : > { %v2220_v28 = vadd.f32 %v4936_v11, %v2190_v13  ;;  %v2980_v17 = vsel %vm2979_vm7, %v4896_v9, %v2976_v23 }
 0x498   : > { %v2985_v39 = vsel %vm2982_vm10, %v2984_v59, %v2980_v17 }
 0x499   : > { %2236 = vst [vmem:[#allocation2 + $0x48] sm:$0xff] %v2220_v28  ;;  %v2986_v1 = vmul.f32 %v2985_v39, %v7236_v29  ;;  %v2987_v63 = vmul.f32 %v2985_v39, %v7238_v54  ;;  %v4948_v39 = vld [vmem:[%s5555_s2 + $0x18] sm:$0xff] }
 0x49a   : > { %3158 = vmatmul.bf16.gmra.mxu1 %v3008_v22  ;;  %v2705_v42 = vpop.f32.mrf.mxu0 }
 0x49b   : > { %3187 = vmatmul.bf16.gmra.mxu3 %v3009_v14  ;;  %v3002_v10 = vmul.f32 %v2986_v1, %v2676_v21  ;;  %v3003_v40 = vmul.f32 %v2987_v63, %v2705_v42  ;;  %v4946_v14 = vld [vmem:[%s5555_s2 + $0x8] sm:$0xff] }
 0x49d   : > { %v3010_v47 = vpack.c.bf16 %v3002_v10, %v3000_v62  ;;  %v3011_v9 = vpack.c.bf16 %v3003_v40, %v3001_v31  ;;  %v4950_v10 = vld [vmem:[%s5555_s2 + $0x28] sm:$0xff] }
 0x49e   : > { %v2193_v49 = vpop.f32.mrf.mxu1 }
 0x49f   : > { %v2221_v38 = vadd.f32 %v4937_v37, %v2193_v49  ;;  %v4949_v37 = vld [vmem:[%s5555_s2 + $0x20] sm:$0xff] }
 0x4a1   : > { %2237 = vst [vmem:[#allocation2 + $0x80] sm:$0xff] %v2221_v38 }
 0x4a6   : > { %v2195_v36 = vpop.f32.mrf.mxu1 }
 0x4a7   : > { %v2222_v29 = vadd.f32 %v4938_v33, %v2195_v36 }
 0x4a9   : > { %2238 = vst [vmem:[#allocation2 + $0x88] sm:$0xff] %v2222_v29 }
 0x4aa   : > { %3163 = vmatmul.bf16.gmra.mxu1 %v3010_v47 }
 0x4ab   : > { %3192 = vmatmul.bf16.gmra.mxu3 %v3011_v9  ;;  %v4951_v9 = vld [vmem:[%s5555_s2 + $0x30] sm:$0xff] }
 0x4ae   : > { %v2198_v54 = vpop.f32.mrf.mxu1 }
 0x4af   : > { %v2223_v24 = vadd.f32 %v4939_v53, %v2198_v54 }
 0x4b1   : > { %2239 = vst [vmem:[#allocation2 + $0xe8] sm:$0xff] %v2223_v24 }
 0x4b6   : > { %v2200_v44 = vpop.f32.mrf.mxu1 }
 0x4b7   : > { %v2224_v61 = vadd.f32 %v4940_v27, %v2200_v44  ;;  %v4952_v44 = vld [vmem:[%s5555_s2 + $0x38] sm:$0xff] }
 0x4b9   : > { %2240 = vst [vmem:[#allocation2 + $0xb8] sm:$0xff] %v2224_v61 }
 0x4be   : > { %v2203_v35 = vpop.f32.mrf.mxu1 }
 0x4bf   : > { %v2225_v4 = vadd.f32 %v4941_v18, %v2203_v35 }
 0x4c1   : > { %2241 = vst [vmem:[#allocation2 + $0x60] sm:$0xff] %v2225_v4 }
 0x4c6   : > { %v2205_v20 = vpop.f32.mrf.mxu1 }
 0x4c7   : > { %v2226_v6 = vadd.f32 %v4942_v55, %v2205_v20 }
 0x4c9   : > { %2242 = vst [vmem:[#allocation2 + $0xf0] sm:$0xff] %v2226_v6  ;;  %v4376_v6 = vld [vmem:[#allocation14 + $0x70] sm:$0xf] }
 0x4ce   : > { %v2208_v15 = vpop.f32.mrf.mxu1 }
 0x4cf   : > { %v2227_v0 = vadd.f32 %v4943_v7, %v2208_v15  ;;  %v4515_v15 = vld [vmem:[#allocation14 + $0x74] sm:$0xf0]  ;;  %v4514_v7 = vld [vmem:[#allocation14 + $0x74] sm:$0xf] }
 0x4d1   : > { %2243 = vst [vmem:[#allocation2 + $0x8] sm:$0xff] %v2227_v0  ;;  %v4377_v0 = vor.u32 %v4515_v15, %v4376_v6 }
 0x4d3   : > { %3562 = vmatpush.bf16.msra.mxu0 %v4377_v0 }
 0x4d6   : > { %v2210_v26 = vpop.f32.mrf.mxu1 }
 0x4d7   : > { %v2228_v25 = vadd.f32 %v4944_v50, %v2210_v26  ;;  %v4378_v26 = vld [vmem:[#allocation14 + $0x78] sm:$0xf0] }
 0x4d9   : > { %2244 = vst [vmem:[#allocation2 + $0x78] sm:$0xff] %v2228_v25 }
 0x4f7   : > { %v3149_v16 = vpop.f32.mrf.mxu1 }
 0x4fe   : > { %v3178_v57 = vpop.f32.mrf.mxu3 }
 0x4ff   : > { %v3179_v2 = vadd.f32 %v3178_v57, %v3149_v16  ;;  %v3151_v19 = vpop.f32.mrf.mxu1 }
 0x501   : > { %v7485_v23 = vadd.f32 %v4945_v48, %v3179_v2 }
 0x503   : > { %v3206_v5 = vmul.f32 %v7485_v23, %v7485_v23 }
 0x505   : > { %3214 = vadd.xlane.f32.xlu0 %v3206_v5  ;;  %v4368_v5 = vld [vmem:[#allocation14 + $0x60] sm:$0xf] }
 0x506   : > { %v3180_v41 = vpop.f32.mrf.mxu3 }
 0x507   : > { %v3181_v13 = vadd.f32 %v3180_v41, %v3151_v19  ;;  %v3154_v22 = vpop.f32.mrf.mxu1  ;;  %v4513_v41 = vld [vmem:[#allocation14 + $0x64] sm:$0xf0] }
 0x509   : > { %v7490_v56 = vadd.f32 %v4946_v14, %v3181_v13  ;;  %v4512_v13 = vld [vmem:[#allocation14 + $0x64] sm:$0xf]  ;;  %v4370_v14 = vld [vmem:[#allocation14 + $0x68] sm:$0xf0] }
 0x50b   : > { %v3207_v11 = vmul.f32 %v7490_v56, %v7490_v56 }
 0x50d   : > { %3216 = vadd.xlane.f32.xlu1 %v3207_v11  ;;  %v4360_v11 = vld [vmem:[#allocation14 + $0x50] sm:$0xf] }
 0x50e   : > { %v3183_v28 = vpop.f32.mrf.mxu3 }
 0x50f   : > { %v3184_v12 = vadd.f32 %v3183_v28, %v3154_v22  ;;  %v3156_v60 = vpop.f32.mrf.mxu1  ;;  %v4369_v22 = vor.u32 %v4513_v41, %v4368_v5  ;;  %v4511_v28 = vld [vmem:[#allocation14 + $0x54] sm:$0xf0]  ;;  %v4328_v5 = vld [vmem:[#allocation14 + $0x10] sm:$0xf] }
 0x510   : > { %v4503_v41 = vld [vmem:[#allocation14 + $0x14] sm:$0xf0] }
 0x511   : > { %v7495_v58 = vadd.f32 %v4947_v8, %v3184_v12  ;;  %v4373_v8 = vor.u32 %v4512_v13, %v4370_v14  ;;  %3563 = vmatpush.bf16.msra.mxu0 %v4369_v22 }
 0x513   : > { %v3208_v17 = vmul.f32 %v7495_v58, %v7495_v58 }
 0x515   : > { %3218 = vadd.xlane.f32.xlu0 %v3208_v17  ;;  %v4510_v17 = vld [vmem:[#allocation14 + $0x54] sm:$0xf] }
 0x516   : > { %v3185_v59 = vpop.f32.mrf.mxu3 }
 0x517   : > { %v3186_v3 = vadd.f32 %v3185_v59, %v3156_v60  ;;  %v3159_v34 = vpop.f32.mrf.mxu1  ;;  %v4362_v59 = vld [vmem:[#allocation14 + $0x58] sm:$0xf0] }
 0x519   : > { %v7500_v52 = vadd.f32 %v4948_v39, %v3186_v3 }
 0x51b   : > { %v3209_v49 = vmul.f32 %v7500_v52, %v7500_v52 }
 0x51d   : > { %3220 = vadd.xlane.f32.xlu1 %v3209_v49 }
 0x51e   : > { %v3188_v1 = vpop.f32.mrf.mxu3 }
 0x51f   : > { %v3189_v63 = vadd.f32 %v3188_v1, %v3159_v34  ;;  %v3161_v32 = vpop.f32.mrf.mxu1  ;;  %v4361_v34 = vor.u32 %v4511_v28, %v4360_v11  ;;  %v4365_v1 = vor.u32 %v4510_v17, %v4362_v59  ;;  %v4502_v11 = vld [vmem:[#allocation14 + $0x14] sm:$0xf]  ;;  %v4330_v28 = vld [vmem:[#allocation14 + $0x18] sm:$0xf0] }
 0x521   : > { %v7505_v38 = vadd.f32 %v4949_v37, %v3189_v63  ;;  %3564 = vmatpush.bf16.msra.mxu0 %v4361_v34 }
 0x523   : > { %v3210_v43 = vmul.f32 %v7505_v38, %v7505_v38 }
 0x525   : > { %3222 = vadd.xlane.f32.xlu0 %v3210_v43 }
 0x526   : > { %v3190_v21 = vpop.f32.mrf.mxu3 }
 0x527   : > { %v3191_v42 = vadd.f32 %v3190_v21, %v3161_v32  ;;  %v3164_v31 = vpop.f32.mrf.mxu1 }
 0x529   : > { %v7510_v40 = vadd.f32 %v4950_v10, %v3191_v42 }
 0x52b   : > { %v3211_v62 = vmul.f32 %v7510_v40, %v7510_v40 }
 0x52d   : > { %3224 = vadd.xlane.f32.xlu1 %v3211_v62  ;;  %v4352_v62 = vld [vmem:[#allocation14 + $0x40] sm:$0xf] }
 0x52e   : > { %v3193_v36 = vpop.f32.mrf.mxu3 }
 0x52f   : > { %v3194_v47 = vadd.f32 %v3193_v36, %v3164_v31  ;;  %v3166_v54 = vpop.f32.mrf.mxu1  ;;  %v4509_v31 = vld [vmem:[#allocation14 + $0x44] sm:$0xf0]  ;;  %v4508_v36 = vld [vmem:[#allocation14 + $0x44] sm:$0xf] }
 0x531   : > { %v7515_v33 = vadd.f32 %v4951_v9, %v3194_v47  ;;  %v4353_v47 = vor.u32 %v4509_v31, %v4352_v62  ;;  %v4354_v9 = vld [vmem:[#allocation14 + $0x48] sm:$0xf0] }
 0x533   : > { %v3212_v29 = vmul.f32 %v7515_v33, %v7515_v33  ;;  %3565 = vmatpush.bf16.msra.mxu0 %v4353_v47  ;;  %v4322_v47 = vld [vmem:[#allocation14 + $0x8] sm:$0xf0] }
 0x535   : > { %3226 = vadd.xlane.f32.xlu0 %v3212_v29  ;;  %v4344_v29 = vld [vmem:[#allocation14 + $0x30] sm:$0xf] }
 0x536   : > { %v3195_v53 = vpop.f32.mrf.mxu3 }
 0x537   : > { %v3196_v24 = vadd.f32 %v3195_v53, %v3166_v54  ;;  %v4507_v54 = vld [vmem:[#allocation14 + $0x34] sm:$0xf0] }
 0x539   : > { %v7520_v27 = vadd.f32 %v4952_v44, %v3196_v24  ;;  %v4357_v44 = vor.u32 %v4508_v36, %v4354_v9 }
 0x53b   : > { %v3213_v61 = vmul.f32 %v7520_v27, %v7520_v27 }
 0x53d   : > { %3228 = vadd.xlane.f32.xlu1 %v3213_v61  ;;  %v4506_v61 = vld [vmem:[#allocation14 + $0x34] sm:$0xf] }
 0x55e   : > { %2433 = vxpose.xlu0.c.b16.start [1/4] (short) %v7066_v30, 128  ;;  %v4381_v30 = vor.u32 %v4514_v7, %v4378_v26 }
 0x560   : > { %3591 = vmatpush.bf16.msra.mxu1 %v4381_v30 }
 0x564   : > { %3592 = vmatpush.bf16.msra.mxu1 %v4373_v8 }
 0x568   : > { %3593 = vmatpush.bf16.msra.mxu1 %v4365_v1 }
 0x56c   : > { %3594 = vmatpush.bf16.msra.mxu1 %v4357_v44 }
 0x56e   : > { %2434 = vxpose.xlu0.c.b16.cont [2/4] (short) %v7075_v51, 128 }
 0x578   : > { %v3215_v35 = vpop.xlane.xlu0 %3214 }
 0x579   : > { %4897 = vrsqrt.f32 %v3215_v35  ;;  %vm3237_vm12 = vcmp.eq.f32.partialorder %v3215_v35, inf  ;;  %v3240_v2 = vand.u32 2147483648, %v3215_v35  ;;  %vm3239_vm13 = vcmp.eq.f32.partialorder %v3215_v35, 0.0 }
 0x57e   : > { %2435 = vxpose.xlu0.c.b16.cont [3/4] (short) %v7092_v45, 128 }
 0x57f   : > { %v4898_v18 = vpop.eup %4897 }
 0x580   : > { %v3231_v4 = vmul.f32 %v4898_v18, %v3215_v35  ;;  %v7527_v20 = vpop.xlane.xlu1 %3216 }
 0x581   : > { %4899 = vrsqrt.f32 %v7527_v20  ;;  %vm3249_vm14 = vcmp.eq.f32.partialorder %v7527_v20, inf  ;;  %v3252_v42 = vand.u32 2147483648, %v7527_v20  ;;  %vm3251_vm15 = vcmp.eq.f32.partialorder %v7527_v20, 0.0 }
 0x582   : > { %v3232_v55 = vmul.f32 %v4898_v18, %v3231_v4  ;;  %v4345_v4 = vor.u32 %v4507_v54, %v4344_v29 }
 0x584   : > { %v3233_v50 = vmul.f32 0.5, %v3232_v55  ;;  %3566 = vmatpush.bf16.msra.mxu0 %v4345_v4 }
 0x586   : > { %v3234_v51 = vsub.f32 1.5, %v3233_v50 }
 0x587   : > { %v4900_v25 = vpop.eup %4899 }
 0x588   : > { %v3235_v16 = vmul.f32 %v4898_v18, %v3234_v51  ;;  %v3243_v45 = vmul.f32 %v4900_v25, %v7527_v20  ;;  %v7531_v57 = vpop.xlane.xlu0 %3218 }
 0x589   : > { %4901 = vrsqrt.f32 %v7531_v57  ;;  %vm3261_vm0 = vcmp.eq.f32.partialorder %v7531_v57, inf  ;;  %vm3263_vm1 = vcmp.eq.f32.partialorder %v7531_v57, 0.0  ;;  %v3264_v30 = vand.u32 2147483648, %v7531_v57 }
 0x58a   : > { %v3236_v19 = vmul.f32 %v3235_v16, %v3215_v35  ;;  %v3244_v48 = vmul.f32 %v4900_v25, %v3243_v45  ;;  %v4336_v16 = vld [vmem:[#allocation14 + $0x20] sm:$0xf]  ;;  %v4505_v45 = vld [vmem:[#allocation14 + $0x24] sm:$0xf0] }
 0x58c   : > { %v3238_v12 = vsel %vm3237_vm12, %v3215_v35, %v3236_v19  ;;  %v3245_v60 = vmul.f32 0.5, %v3244_v48  ;;  %v4346_v35 = vld [vmem:[#allocation14 + $0x38] sm:$0xf0]  ;;  %v4337_v19 = vor.u32 %v4505_v45, %v4336_v16  ;;  %v4338_v48 = vld [vmem:[#allocation14 + $0x28] sm:$0xf0] }
 0x58d   : > { %v3241_v3 = vsel %vm3239_vm13, %v3240_v2, %v3238_v12  ;;  %v4349_v15 = vor.u32 %v4506_v61, %v4346_v35  ;;  %v4504_v2 = vld [vmem:[#allocation14 + $0x24] sm:$0xf] }
 0x58e   : > { %v3326_v39 = vmul.f32 0.125, %v3241_v3  ;;  %v3246_v49 = vsub.f32 1.5, %v3245_v60  ;;  %2436 = vxpose.xlu0.c.b16.end [4/4] (short) %v7083_v46, 128  ;;  %v4341_v14 = vor.u32 %v4504_v2, %v4338_v48  ;;  %3567 = vmatpush.bf16.msra.mxu0 %v4337_v19  ;;  %v4329_v60 = vor.u32 %v4503_v41, %v4328_v5 }
 0x58f   : > { %v4902_v63 = vpop.eup %4901  ;;  %3595 = vmatpush.bf16.msra.mxu1 %v4349_v15  ;;  %v4333_v3 = vor.u32 %v4502_v11, %v4330_v28 }
 0x590   : > { %v3247_v37 = vmul.f32 %v4900_v25, %v3246_v49  ;;  %v3255_v32 = vmul.f32 %v4902_v63, %v7531_v57  ;;  %v7536_v43 = vpop.xlane.xlu1 %3220  ;;  %v7538_v21 = vadd.f32 1e-06, %v3326_v39 }
 0x591   : > { %4903 = vrsqrt.f32 %v7536_v43  ;;  %vm3273_vm3 = vcmp.eq.f32.partialorder %v7536_v43, inf  ;;  %vm3275_vm5 = vcmp.eq.f32.partialorder %v7536_v43, 0.0  ;;  %v3276_v31 = vand.u32 2147483648, %v7536_v43 }
 0x592   : > { %v3248_v10 = vmul.f32 %v3247_v37, %v7527_v20  ;;  %v3256_v46 = vmul.f32 %v4902_v63, %v3255_v32  ;;  %4905 = vrcp.f32 %v7538_v21  ;;  %3568 = vmatpush.bf16.msra.mxu0 %v4329_v60  ;;  %vm3347_vm8 = vweird.f32 %v7538_v21 }
 0x593   : > { %3596 = vmatpush.bf16.msra.mxu1 %v4341_v14 }
 0x594   : > { %v3250_v53 = vsel %vm3249_vm14, %v7527_v20, %v3248_v10  ;;  %v3257_v24 = vmul.f32 0.5, %v3256_v46  ;;  %v4501_v10 = vld [vmem:[#allocation14 + $0x4] sm:$0xf0]  ;;  %v4500_v46 = vld [vmem:[#allocation14 + $0x4] sm:$0xf] }
 0x595   : > { %v3253_v18 = vsel %vm3251_vm15, %v3252_v42, %v3250_v53  ;;  %v4320_v42 = vld [vmem:[#allocation14] sm:$0xf]  ;;  %v4325_v54 = vor.u32 %v4500_v46, %v4322_v47 }
 0x596   : > { %v3327_v55 = vmul.f32 0.125, %v3253_v18  ;;  %v3258_v6 = vsub.f32 1.5, %v3257_v24  ;;  %v4321_v36 = vor.u32 %v4501_v10, %v4320_v42 }
 0x597   : > { %v4904_v7 = vpop.eup %4903  ;;  %3597 = vmatpush.bf16.msra.mxu1 %v4333_v3 }
 0x598   : > { %v7547_v0 = vadd.f32 1e-06, %v3327_v55  ;;  %v3259_v26 = vmul.f32 %v4902_v63, %v3258_v6  ;;  %v3267_v50 = vmul.f32 %v4904_v7, %v7536_v43  ;;  %v7550_v20 = vpop.xlane.xlu0 %3222  ;;  %v7563_v8 = vpop.eup %4905  ;;  %3569 = vmatpush.bf16.msra.mxu0 %v4321_v36 }
 0x599   : > { %4907 = vrsqrt.f32 %v7550_v20  ;;  %v3343_v62 = vmul.f32 %v7563_v8, %v7538_v21  ;;  %vm3285_vm4 = vcmp.eq.f32.partialorder %v7550_v20, inf  ;;  %vm3287_vm6 = vcmp.eq.f32.partialorder %v7550_v20, 0.0 }
 0x59a   : > { %v3260_v51 = vmul.f32 %v3259_v26, %v7531_v57  ;;  %v3268_v25 = vmul.f32 %v4904_v7, %v3267_v50  ;;  %4909 = vrcp.f32 %v7547_v0  ;;  %vm3348_vm7 = vweird.f32 %v7563_v8 }
 0x59b   : > { %v3344_v53 = vsub.f32 1.0, %v3343_v62  ;;  %3598 = vmatpush.bf16.msra.mxu1 %v4325_v54  ;;  %vm7605_vm9 = vmor %vm3347_vm8, %vm3348_vm7  ;;  %v3366_v19 = vand.u32 2147483647, %v7547_v0  ;;  %v3368_v5 = vand.u32 2147483648, %v7547_v0  ;;  %vm3362_vm12 = vweird.f32 %v7547_v0 }
 0x59c   : > { %v3262_v13 = vsel %vm3261_vm0, %v7531_v57, %v3260_v51  ;;  %v3269_v22 = vmul.f32 0.5, %v3268_v25  ;;  %v3288_v51 = vand.u32 2147483648, %v7550_v20  ;;  %v3351_v25 = vand.u32 2147483647, %v7538_v21 }
 0x59d   : > { %v3265_v12 = vsel %vm3263_vm1, %v3264_v30, %v3262_v13  ;;  %v3345_v18 = vmul.f32 %v7563_v8, %v3344_v53  ;;  %vm3367_vm14 = vcmp.eq.f32.partialorder %v3366_v19, 8.507059e+37 }
 0x59e   : > { %v3328_v17 = vmul.f32 0.125, %v3265_v12  ;;  %v3270_v59 = vsub.f32 1.5, %v3269_v22  ;;  %vm3352_vm11 = vcmp.eq.f32.partialorder %v3351_v25, 8.507059e+37 }
 0x59f   : > { %v4908_v34 = vpop.eup %4907  ;;  %v3346_v50 = vadd.f32 %v7563_v8, %v3345_v18 }
 0x5a0   : > { %v7565_v39 = vadd.f32 1e-06, %v3328_v17  ;;  %v3271_v49 = vmul.f32 %v4904_v7, %v3270_v59  ;;  %v3279_v1 = vmul.f32 %v4908_v34, %v7550_v20  ;;  %v7568_v63 = vpop.xlane.xlu1 %3224  ;;  %v7572_v57 = vpop.eup %4909  ;;  %v3369_v17 = vor.u32 1.1754944e-38, %v3368_v5 }
 0x5a1   : > { %4911 = vrsqrt.f32 %v7568_v63  ;;  %v3358_v44 = vmul.f32 %v7572_v57, %v7547_v0  ;;  %vm3363_vm10 = vweird.f32 %v7572_v57  ;;  %v3350_v48 = vsel %vm7605_vm9, %v7563_v8, %v3346_v50 }
 0x5a2   : > { %v3272_v37 = vmul.f32 %v3271_v49, %v7536_v43  ;;  %v3280_v32 = vmul.f32 %v4908_v34, %v3279_v1  ;;  %4913 = vrcp.f32 %v7565_v39  ;;  %vm3364_vm13 = vmor %vm3362_vm12, %vm3363_vm10  ;;  %vm3297_vm15 = vcmp.eq.f32.partialorder %v7568_v63, inf }
 0x5a3   : > { %v3359_v55 = vsub.f32 1.0, %v3358_v44  ;;  %v3300_v62 = vand.u32 2147483648, %v7568_v63  ;;  %vm3299_vm0 = vcmp.eq.f32.partialorder %v7568_v63, 0.0 }
 0x5a4   : > { %v3274_v9 = vsel %vm3273_vm3, %v7536_v43, %v3272_v37  ;;  %v3281_v29 = vmul.f32 0.5, %v3280_v32  ;;  %v3353_v43 = vand.u32 2147483648, %v7538_v21 }
 0x5a5   : > { %v3277_v24 = vsel %vm3275_vm5, %v3276_v31, %v3274_v9  ;;  %v3360_v21 = vmul.f32 %v7572_v57, %v3359_v55 }
 0x5a6   : > { %v3329_v61 = vmul.f32 0.125, %v3277_v24  ;;  %v3282_v35 = vsub.f32 1.5, %v3281_v29  ;;  %v3354_v22 = vor.u32 1.1754944e-38, %v3353_v43 }
 0x5a7   : > { %v4912_v4 = vpop.eup %4911  ;;  %v3361_v28 = vadd.f32 %v7572_v57, %v3360_v21 }
 0x5a8   : > { %v7590_v6 = vadd.f32 1e-06, %v3329_v61  ;;  %v3283_v15 = vmul.f32 %v4908_v34, %v3282_v35  ;;  %v3291_v7 = vmul.f32 %v4912_v4, %v7568_v63  ;;  %v7593_v26 = vpop.xlane.xlu0 %3226  ;;  %v7596_v30 = vpop.eup %4913  ;;  %v3355_v8 = vsel %vm3352_vm11, %v3354_v22, %v3350_v48 }
 0x5a9   : > { %4915 = vrsqrt.f32 %v7593_v26  ;;  %v3373_v14 = vmul.f32 %v7596_v30, %v7565_v39  ;;  %v3365_v3 = vsel %vm3364_vm13, %v7572_v57, %v3361_v28  ;;  %v3356_v42 = vmul.f32 %v3355_v8, %v7485_v23 }
 0x5aa   : > { %v3284_v16 = vmul.f32 %v3283_v15, %v7550_v20  ;;  %v3292_v45 = vmul.f32 %v4912_v4, %v3291_v7  ;;  %4917 = vrcp.f32 %v7590_v6  ;;  %v3370_v37 = vsel %vm3367_vm14, %v3369_v17, %v3365_v3 }
 0x5ab   : > { %v3374_v34 = vsub.f32 1.0, %v3373_v14  ;;  %v3371_v10 = vmul.f32 %v3370_v37, %v7490_v56  ;;  %vm3309_vm1 = vcmp.eq.f32.partialorder %v7593_v26, inf  ;;  %vm3378_vm3 = vweird.f32 %v7596_v30 }
 0x5ac   : > { %v3286_v41 = vsel %vm3285_vm4, %v7550_v20, %v3284_v16  ;;  %v3293_v13 = vmul.f32 0.5, %v3292_v45  ;;  %v3383_v61 = vand.u32 2147483648, %v7565_v39  ;;  %vm3311_vm5 = vcmp.eq.f32.partialorder %v7593_v26, 0.0 }
 0x5ad   : > { %v3289_v11 = vsel %vm3287_vm6, %v3288_v51, %v3286_v41  ;;  %v3462_v31 = vpack.c.bf16 %v3371_v10, %v3356_v42  ;;  %v3375_v36 = vmul.f32 %v7596_v30, %v3374_v34  ;;  %vm3377_vm4 = vweird.f32 %v7565_v39 }
 0x5ae   : > { %v3330_v12 = vmul.f32 0.125, %v3289_v11  ;;  %v3294_v60 = vsub.f32 1.5, %v3293_v13  ;;  %vm7657_vm7 = vmor %vm3377_vm4, %vm3378_vm3  ;;  %v3398_v50 = vand.u32 2147483648, %v7590_v6  ;;  %v3384_v19 = vor.u32 1.1754944e-38, %v3383_v61 }
 0x5af   : > { %v4916_v59 = vpop.eup %4915  ;;  %3570 = vmatmul.bf16.vlgmr.msra.gmra.mxu0 %v3462_v31  ;;  %3599 = vmatmul.bf16.vlgmr.msra.gmra.mxu1 %v3462_v31  ;;  %v3376_v53 = vadd.f32 %v7596_v30, %v3375_v36  ;;  %v3312_v48 = vand.u32 2147483648, %v7593_v26  ;;  %vm3392_vm9 = vweird.f32 %v7590_v6 }
 0x5b0   : > { %v7629_v49 = vadd.f32 1e-06, %v3330_v12  ;;  %v3295_v20 = vmul.f32 %v4912_v4, %v3294_v60  ;;  %v3303_v1 = vmul.f32 %v4916_v59, %v7593_v26  ;;  %v7632_v32 = vpop.xlane.xlu1 %3228  ;;  %v4918_v0 = vpop.eup %4917  ;;  %v3399_v13 = vor.u32 1.1754944e-38, %v3398_v50 }
 0x5b1   : > { %4919 = vrsqrt.f32 %v7632_v32  ;;  %v3388_v29 = vmul.f32 %v4918_v0, %v7590_v6  ;;  %vm3393_vm6 = vweird.f32 %v4918_v0  ;;  %v3380_v51 = vsel %vm7657_vm7, %v7596_v30, %v3376_v53 }
 0x5b2   : > { %4921 = vrcp.f32 %v7629_v49  ;;  %v3296_v57 = vmul.f32 %v3295_v20, %v7568_v63  ;;  %v3304_v46 = vmul.f32 %v4916_v59, %v3303_v1  ;;  %vm3394_vm10 = vmor %vm3392_vm9, %vm3393_vm6  ;;  %vm3321_vm12 = vcmp.eq.f32.partialorder %v7632_v32, inf }
 0x5b3   : > { %v3389_v35 = vsub.f32 1.0, %v3388_v29  ;;  %vm3323_vm13 = vcmp.eq.f32.partialorder %v7632_v32, 0.0  ;;  %v3324_v37 = vand.u32 2147483648, %v7632_v32 }
 0x5b4   : > { %v3298_v47 = vsel %vm3297_vm15, %v7568_v63, %v3296_v57  ;;  %v3305_v9 = vmul.f32 0.5, %v3304_v46  ;;  %v3381_v63 = vand.u32 2147483647, %v7565_v39  ;;  %v3396_v39 = vand.u32 2147483647, %v7590_v6 }
 0x5b5   : > { %v3301_v54 = vsel %vm3299_vm0, %v3300_v62, %v3298_v47  ;;  %v3390_v25 = vmul.f32 %v4918_v0, %v3389_v35  ;;  %vm3407_vm0 = vweird.f32 %v7629_v49  ;;  %v3413_v47 = vand.u32 2147483648, %v7629_v49 }
 0x5b6   : > { %v3331_v24 = vmul.f32 0.125, %v3301_v54  ;;  %v3306_v44 = vsub.f32 1.5, %v3305_v9  ;;  %vm3382_vm8 = vcmp.eq.f32.partialorder %v3381_v63, 8.507059e+37  ;;  %vm3397_vm11 = vcmp.eq.f32.partialorder %v3396_v39, 8.507059e+37 }
 0x5b7   : > { %v4920_v18 = vpop.eup %4919  ;;  %v3391_v21 = vadd.f32 %v4918_v0, %v3390_v25  ;;  %v3385_v41 = vsel %vm3382_vm8, %v3384_v19, %v3380_v51  ;;  %v3411_v9 = vand.u32 2147483647, %v7629_v49 }
 0x5b8   : > { %v7652_v4 = vpop.eup %4921  ;;  %v7654_v43 = vadd.f32 1e-06, %v3331_v24  ;;  %v3307_v55 = vmul.f32 %v4916_v59, %v3306_v44  ;;  %v3315_v15 = vmul.f32 %v4920_v18, %v7632_v32  ;;  %v3386_v6 = vmul.f32 %v3385_v41, %v7495_v58 }
 0x5b9   : > { %v3403_v16 = vmul.f32 %v7652_v4, %v7629_v49  ;;  %v3395_v14 = vsel %vm3394_vm10, %v4918_v0, %v3391_v21  ;;  %vm3408_vm14 = vweird.f32 %v7652_v4  ;;  %vm3412_vm6 = vcmp.eq.f32.partialorder %v3411_v9, 8.507059e+37 }
 0x5ba   : > { %4923 = vrcp.f32 %v7654_v43  ;;  %v3308_v45 = vmul.f32 %v3307_v55, %v7593_v26  ;;  %v3316_v2 = vmul.f32 %v4920_v18, %v3315_v15  ;;  %v3400_v60 = vsel %vm3397_vm11, %v3399_v13, %v3395_v14 }
 0x5bb   : > { %v3404_v11 = vsub.f32 1.0, %v3403_v16  ;;  %v3401_v8 = vmul.f32 %v3400_v60, %v7500_v52  ;;  %v3426_v10 = vand.u32 2147483647, %v7654_v43  ;;  %v3428_v57 = vand.u32 2147483648, %v7654_v43 }
 0x5bc   : > { %v3310_v30 = vsel %vm3309_vm1, %v7593_v26, %v3308_v45  ;;  %v3317_v5 = vmul.f32 0.5, %v3316_v2  ;;  %vm7696_vm1 = vmor %vm3407_vm0, %vm3408_vm14  ;;  %vm3422_vm3 = vweird.f32 %v7654_v43 }
 0x5bd   : > { %v3313_v22 = vsel %vm3311_vm5, %v3312_v48, %v3310_v30  ;;  %v3463_v34 = vpack.c.bf16 %v3401_v8, %v3386_v6  ;;  %v3405_v20 = vmul.f32 %v7652_v4, %v3404_v11  ;;  %v3429_v24 = vor.u32 1.1754944e-38, %v3428_v57  ;;  %v4523_v6 = vld [vmem:[#allocation15 + $0x38] sm:$0xff]  ;;  %v4520_v57 = vld [vmem:[#allocation15 + $0x20] sm:$0xff] }
 0x5be   : > { %v3332_v28 = vmul.f32 0.125, %v3313_v22  ;;  %v3318_v12 = vsub.f32 1.5, %v3317_v5  ;;  %vm3427_vm4 = vcmp.eq.f32.partialorder %v3426_v10, 8.507059e+37  ;;  %3696 = vmatpush.bf16.msra.mxu2 %v4523_v6  ;;  %4540 = vmatpush.bf16.msra.mxu3 %v4523_v6  ;;  %v4957_v6 = vld [vmem:[#allocation2 + $0xe0] sm:$0xff] }
 0x5bf   : > { %3575 = vmatmul.bf16.gmra.mxu0 %v3463_v34  ;;  %3604 = vmatmul.bf16.gmra.mxu1 %v3463_v34  ;;  %v3406_v62 = vadd.f32 %v7652_v4, %v3405_v20 }
 0x5c0   : > { %v4924_v17 = vpop.eup %4923  ;;  %v7680_v59 = vadd.f32 1e-06, %v3332_v28  ;;  %v3319_v3 = vmul.f32 %v4920_v18, %v3318_v12  ;;  %v3414_v18 = vor.u32 1.1754944e-38, %v3413_v47  ;;  %v4518_v47 = vld [vmem:[#allocation15 + $0x10] sm:$0xff] }
 0x5c1   : > { %v3418_v26 = vmul.f32 %v4924_v17, %v7654_v43  ;;  %vm3423_vm15 = vweird.f32 %v4924_v17  ;;  %v3410_v44 = vsel %vm7696_vm1, %v7652_v4, %v3406_v62 }
 0x5c2   : > { %4925 = vrcp.f32 %v7680_v59  ;;  %v3320_v1 = vmul.f32 %v3319_v3, %v7632_v32  ;;  %vm3424_vm5 = vmor %vm3422_vm3, %vm3423_vm15  ;;  %v3415_v49 = vsel %vm3412_vm6, %v3414_v18, %v3410_v44  ;;  %vm3437_vm9 = vweird.f32 %v7680_v59  ;;  %v4516_v44 = vld [vmem:[#allocation15] sm:$0xff] }
 0x5c3   : > { %v3419_v0 = vsub.f32 1.0, %v3418_v26  ;;  %v3416_v15 = vmul.f32 %v3415_v49, %v7505_v38  ;;  %v3443_v19 = vand.u32 2147483648, %v7680_v59  ;;  %v3441_v48 = vand.u32 2147483647, %v7680_v59  ;;  %v4521_v26 = vld [vmem:[#allocation15 + $0x28] sm:$0xff] }
 0x5c4   : > { %v3322_v42 = vsel %vm3321_vm12, %v7632_v32, %v3320_v1  ;;  %v4517_v32 = vld [vmem:[#allocation15 + $0x8] sm:$0xff] }
 0x5c5   : > { %v3325_v46 = vsel %vm3323_vm13, %v3324_v37, %v3322_v42  ;;  %v3420_v31 = vmul.f32 %v4924_v17, %v3419_v0  ;;  %v3444_v13 = vor.u32 1.1754944e-38, %v3443_v19  ;;  %vm3442_vm14 = vcmp.eq.f32.partialorder %v3441_v48, 8.507059e+37  ;;  %v4953_v48 = vld [vmem:[#allocation2 + $0x38] sm:$0xff] }
 0x5c6   : > { %v3333_v36 = vmul.f32 0.125, %v3325_v46  ;;  %v4519_v46 = vld [vmem:[#allocation15 + $0x18] sm:$0xff] }
 0x5c7   : > { %v3421_v29 = vadd.f32 %v4924_v17, %v3420_v31 }
 0x5c8   : > { %v4926_v54 = vpop.eup %4925  ;;  %v3341_v53 = vadd.f32 1e-06, %v3333_v36 }
 0x5c9   : > { %v3425_v61 = vsel %vm3424_vm5, %v4924_v17, %v3421_v29  ;;  %v3433_v35 = vmul.f32 %v4926_v54, %v7680_v59  ;;  %vm3438_vm7 = vweird.f32 %v4926_v54  ;;  %v4522_v17 = vld [vmem:[#allocation15 + $0x30] sm:$0xff] }
 0x5ca   : > { %4927 = vrcp.f32 %v3341_v53  ;;  %v3430_v63 = vsel %vm3427_vm4, %v3429_v24, %v3425_v61  ;;  %v3458_v4 = vand.u32 2147483648, %v3341_v53  ;;  %v3456_v2 = vand.u32 2147483647, %v3341_v53  ;;  %vm3439_vm10 = vmor %vm3437_vm9, %vm3438_vm7  ;;  %3697 = vmatpush.bf16.msra.mxu2 %v4522_v17  ;;  %4541 = vmatpush.bf16.msra.mxu3 %v4522_v17 }
 0x5cb   : > { %v3431_v55 = vmul.f32 %v3430_v63, %v7510_v40  ;;  %v3434_v43 = vsub.f32 1.0, %v3433_v35  ;;  %vm3452_vm11 = vweird.f32 %v3341_v53 }
 0x5cc   : > { %v3459_v30 = vor.u32 1.1754944e-38, %v3458_v4  ;;  %vm3457_vm13 = vcmp.eq.f32.partialorder %v3456_v2, 8.507059e+37 }
 0x5cd   : > { %v3464_v50 = vpack.c.bf16 %v3431_v55, %v3416_v15  ;;  %v3435_v51 = vmul.f32 %v4926_v54, %v3434_v43 }
 0x5ce   : > { %3698 = vmatpush.bf16.msra.mxu2 %v4521_v26  ;;  %4542 = vmatpush.bf16.msra.mxu3 %v4521_v26 }
 0x5cf   : > { %3580 = vmatmul.bf16.gmra.mxu0 %v3464_v50  ;;  %3609 = vmatmul.bf16.gmra.mxu1 %v3464_v50  ;;  %v3436_v16 = vadd.f32 %v4926_v54, %v3435_v51 }
 0x5d0   : > { %v4928_v7 = vpop.eup %4927 }
 0x5d1   : > { %v3448_v25 = vmul.f32 %v4928_v7, %v3341_v53  ;;  %vm3453_vm8 = vweird.f32 %v4928_v7  ;;  %v3440_v5 = vsel %vm3439_vm10, %v4926_v54, %v3436_v16 }
 0x5d2   : > { %vm3454_vm12 = vmor %vm3452_vm11, %vm3453_vm8  ;;  %v3445_v14 = vsel %vm3442_vm14, %v3444_v13, %v3440_v5  ;;  %4543 = vmatpush.bf16.msra.mxu3 %v4520_v57  ;;  %3699 = vmatpush.bf16.msra.mxu2 %v4520_v57  ;;  %v4954_v5 = vld [vmem:[#allocation2 + $0x58] sm:$0xff] }
 0x5d3   : > { %v3449_v39 = vsub.f32 1.0, %v3448_v25  ;;  %v3446_v28 = vmul.f32 %v3445_v14, %v7515_v33 }
 0x5d5   : > { %v3450_v45 = vmul.f32 %v4928_v7, %v3449_v39 }
 0x5d6   : > { %4544 = vmatpush.bf16.msra.mxu3 %v4519_v46  ;;  %3700 = vmatpush.bf16.msra.mxu2 %v4519_v46 }
 0x5d7   : > { %v3451_v21 = vadd.f32 %v4928_v7, %v3450_v45 }
 0x5d9   : > { %v3455_v41 = vsel %vm3454_vm12, %v4928_v7, %v3451_v21 }
 0x5da   : > { %v3460_v22 = vsel %vm3457_vm13, %v3459_v30, %v3455_v41  ;;  %4545 = vmatpush.bf16.msra.mxu3 %v4518_v47  ;;  %3701 = vmatpush.bf16.msra.mxu2 %v4518_v47  ;;  %v4963_v47 = vld [vmem:[#allocation2 + $0x10] sm:$0xff] }
 0x5db   : > { %v3461_v11 = vmul.f32 %v3460_v22, %v7520_v27  ;;  %v4955_v22 = vld [vmem:[#allocation2 + $0x40] sm:$0xff] }
 0x5dd   : > { %v3465_v12 = vpack.c.bf16 %v3461_v11, %v3446_v28  ;;  %v4956_v28 = vld [vmem:[#allocation2 + $0xc8] sm:$0xff] }
 0x5de   : > { %4546 = vmatpush.bf16.msra.mxu3 %v4517_v32  ;;  %3702 = vmatpush.bf16.msra.mxu2 %v4517_v32 }
 0x5df   : > { %3585 = vmatmul.bf16.gmra.mxu0 %v3465_v12  ;;  %3614 = vmatmul.bf16.gmra.mxu1 %v3465_v12 }
 0x5e2   : > { %4547 = vmatpush.bf16.msra.mxu3 %v4516_v44  ;;  %3703 = vmatpush.bf16.msra.mxu2 %v4516_v44 }
 0x60a   : > { %v2441_v60 = vpop.trf.xlu0 }
 0x60b   : > { %4182 = vmatmul.msk.bf16.vlgmr.msrb.gmra.mxu2 %vm2082_vm2, %v2441_v60 }
 0x61a   : > { %v2442_v8 = vpop.trf.xlu0 }
 0x61b   : > { %4183 = vmatmul.msk.bf16.gmra.mxu2 %vm2082_vm2, %v2442_v8 }
 0x62a   : > { %v2443_v59 = vpop.trf.xlu0 }
 0x62b   : > { %4184 = vmatmul.msk.bf16.gmra.mxu2 %vm2082_vm2, %v2443_v59  ;;  %v4958_v59 = vld [vmem:[#allocation2 + $0x90] sm:$0xff] }
 0x62c   : > { %v3571_v3 = vpop.f32.mrf.mxu0  ;;  %v3600_v34 = vpop.f32.mrf.mxu1 }
 0x62d   : > { %v3620_v20 = vmul.f32 %v3600_v34, %v3571_v3 }
 0x634   : > { %v3573_v1 = vpop.f32.mrf.mxu0  ;;  %v3602_v37 = vpop.f32.mrf.mxu1 }
 0x635   : > { %v3621_v0 = vmul.f32 %v3602_v37, %v3573_v1  ;;  %v4960_v37 = vld [vmem:[#allocation2 + $0xc0] sm:$0xff] }
 0x637   : > { %v3628_v10 = vpack.c.bf16 %v3621_v0, %v3620_v20  ;;  %v4959_v20 = vld [vmem:[#allocation2 + $0x70] sm:$0xff] }
 0x63a   : > { %v2444_v42 = vpop.trf.xlu0 }
 0x63b   : > { %4185 = vmatmul.msk.bf16.gmra.mxu2 %vm2082_vm2, %v2444_v42 }
 0x63c   : > { %v3576_v62 = vpop.f32.mrf.mxu0  ;;  %v3605_v31 = vpop.f32.mrf.mxu1 }
 0x63d   : > { %v3622_v36 = vmul.f32 %v3605_v31, %v3576_v62  ;;  %v4962_v62 = vld [vmem:[#allocation2 + $0xd0] sm:$0xff] }
 0x644   : > { %v3578_v9 = vpop.f32.mrf.mxu0  ;;  %v3607_v29 = vpop.f32.mrf.mxu1 }
 0x645   : > { %v3623_v54 = vmul.f32 %v3607_v29, %v3578_v9  ;;  %v4964_v29 = vld [vmem:[#allocation2 + $0x28] sm:$0xff] }
 0x647   : > { %v3629_v24 = vpack.c.bf16 %v3623_v54, %v3622_v36 }
 0x64a   : > { %v2445_v53 = vpop.trf.xlu0 }
 0x64b   : > { %4186 = vmatmul.msk.bf16.gmra.mxu2 %vm2082_vm2, %v2445_v53 }
 0x64c   : > { %v3581_v61 = vpop.f32.mrf.mxu0  ;;  %v3610_v35 = vpop.f32.mrf.mxu1 }
 0x64d   : > { %v3624_v18 = vmul.f32 %v3610_v35, %v3581_v61 }
 0x654   : > { %v3583_v63 = vpop.f32.mrf.mxu0  ;;  %v3612_v49 = vpop.f32.mrf.mxu1 }
 0x655   : > { %v3625_v55 = vmul.f32 %v3612_v49, %v3583_v63  ;;  %v4966_v63 = vld [vmem:[#allocation2 + $0xf8] sm:$0xff] }
 0x657   : > { %v3630_v15 = vpack.c.bf16 %v3625_v55, %v3624_v18 }
 0x65a   : > { %v2446_v43 = vpop.trf.xlu0 }
 0x65b   : > { %4187 = vmatmul.msk.bf16.gmra.mxu2 %vm2082_vm2, %v2446_v43 }
 0x65c   : > { %v3586_v7 = vpop.f32.mrf.mxu0  ;;  %v3615_v50 = vpop.f32.mrf.mxu1 }
 0x65d   : > { %v3626_v39 = vmul.f32 %v3615_v50, %v3586_v7  ;;  %v4967_v7 = vld [vmem:[#allocation2 + $0x20] sm:$0xff] }
 0x664   : > { %v3588_v51 = vpop.f32.mrf.mxu0  ;;  %v3617_v25 = vpop.f32.mrf.mxu1 }
 0x665   : > { %v3627_v4 = vmul.f32 %v3617_v25, %v3588_v51 }
 0x667   : > { %v3631_v45 = vpack.c.bf16 %v3627_v4, %v3626_v39 }
 0x669   : > { %3719 = vmatmul.bf16.vlgmr.msra.gmra.mxu3 %v3631_v45 }
 0x66a   : > { %v2447_v16 = vpop.trf.xlu0 }
 0x66b   : > { %4188 = vmatmul.msk.bf16.gmra.mxu2 %vm2082_vm2, %v2447_v16 }
 0x67a   : > { %v2448_v2 = vpop.trf.xlu0 }
 0x67b   : > { %4189 = vmatmul.msk.bf16.gmra.mxu2 %vm2082_vm2, %v2448_v2 }
 0x68b   : > { %3704 = vmatmul.bf16.vlgmr.msra.gmra.mxu2 %v3628_v10  ;;  %v4961_v10 = vld [vmem:[#allocation2 + $0xa8] sm:$0xff] }
 0x68e   : > { %v2482_v19 = vpop.f32.mrf.mxu2 }
 0x68f   : > { %v2522_v21 = vadd.f32 %v4953_v48, %v2482_v19 }
 0x691   : > { %2538 = vst [vmem:[#allocation2 + $0x38] sm:$0xff] %v2522_v21 }
 0x696   : > { %v2484_v30 = vpop.f32.mrf.mxu2 }
 0x697   : > { %v2523_v41 = vadd.f32 %v4954_v5, %v2484_v30 }
 0x699   : > { %2539 = vst [vmem:[#allocation2 + $0x58] sm:$0xff] %v2523_v41 }
 0x69b   : > { %3709 = vmatmul.bf16.gmra.mxu2 %v3629_v24  ;;  %v4965_v24 = vld [vmem:[#allocation2 + $0xa0] sm:$0xff] }
 0x69e   : > { %v2487_v13 = vpop.f32.mrf.mxu2 }
 0x69f   : > { %v2524_v14 = vadd.f32 %v4955_v22, %v2487_v13 }
 0x6a1   : > { %2540 = vst [vmem:[#allocation2 + $0x40] sm:$0xff] %v2524_v14 }
 0x6a6   : > { %v2489_v11 = vpop.f32.mrf.mxu2 }
 0x6a7   : > { %v2525_v12 = vadd.f32 %v4956_v28, %v2489_v11 }
 0x6a9   : > { %2541 = vst [vmem:[#allocation2 + $0xc8] sm:$0xff] %v2525_v12 }
 0x6ab   : > { %3714 = vmatmul.bf16.gmra.mxu2 %v3630_v15 }
 0x6ae   : > { %v2492_v60 = vpop.f32.mrf.mxu2 }
 0x6af   : > { %v2526_v8 = vadd.f32 %v4957_v6, %v2492_v60 }
 0x6b1   : > { %2542 = vst [vmem:[#allocation2 + $0xe0] sm:$0xff] %v2526_v8 }
 0x6b6   : > { %v2494_v17 = vpop.f32.mrf.mxu2 }
 0x6b7   : > { %v2527_v3 = vadd.f32 %v4958_v59, %v2494_v17 }
 0x6b9   : > { %2543 = vst [vmem:[#allocation2 + $0x90] sm:$0xff] %v2527_v3 }
 0x6be   : > { %v2497_v34 = vpop.f32.mrf.mxu2 }
 0x6bf   : > { %v2528_v26 = vadd.f32 %v4959_v20, %v2497_v34 }
 0x6c1   : > { %2544 = vst [vmem:[#allocation2 + $0x70] sm:$0xff] %v2528_v26 }
 0x6c6   : > { %v2499_v1 = vpop.f32.mrf.mxu2 }
 0x6c7   : > { %v2529_v0 = vadd.f32 %v4960_v37, %v2499_v1 }
 0x6c9   : > { %2545 = vst [vmem:[#allocation2 + $0xc0] sm:$0xff] %v2529_v0 }
 0x6ce   : > { %v2502_v42 = vpop.f32.mrf.mxu2 }
 0x6cf   : > { %v2530_v57 = vadd.f32 %v4961_v10, %v2502_v42 }
 0x6d1   : > { %2546 = vst [vmem:[#allocation2 + $0xa8] sm:$0xff] %v2530_v57 }
 0x6d6   : > { %v2504_v46 = vpop.f32.mrf.mxu2 }
 0x6d7   : > { %v2531_v31 = vadd.f32 %v4962_v62, %v2504_v46 }
 0x6d9   : > { %2547 = vst [vmem:[#allocation2 + $0xd0] sm:$0xff] %v2531_v31 }
 0x6de   : > { %v2507_v36 = vpop.f32.mrf.mxu2 }
 0x6df   : > { %v2532_v32 = vadd.f32 %v4963_v47, %v2507_v36 }
 0x6e1   : > { %2548 = vst [vmem:[#allocation2 + $0x10] sm:$0xff] %v2532_v32 }
 0x6e6   : > { %v2509_v9 = vpop.f32.mrf.mxu2 }
 0x6e7   : > { %v2533_v54 = vadd.f32 %v4964_v29, %v2509_v9 }
 0x6e9   : > { %2549 = vst [vmem:[#allocation2 + $0x28] sm:$0xff] %v2533_v54 }
 0x6ec   : > { %v3720_v61 = vpop.f32.mrf.mxu3 }
 0x6ed   : > { %v3731_v35 = vadd.f32 %v3720_v61, %v7515_v33  ;;  %v4968_v33 = vld [vmem:[#allocation2 + $0x98] sm:$0xff] }
 0x6ee   : > { %v2512_v53 = vpop.f32.mrf.mxu2 }
 0x6ef   : > { %v2534_v44 = vadd.f32 %v4965_v24, %v2512_v53  ;;  %3739 = vst [vmem:[%s5577_s6 + $0x30] sm:$0xff] %v3731_v35 }
 0x6f1   : > { %2550 = vst [vmem:[#allocation2 + $0xa0] sm:$0xff] %v2534_v44 }
 0x6f4   : > { %v3722_v55 = vpop.f32.mrf.mxu3 }
 0x6f5   : > { %v3732_v43 = vadd.f32 %v3722_v55, %v7520_v27 }
 0x6f6   : > { %v2514_v18 = vpop.f32.mrf.mxu2 }
 0x6f7   : > { %v2535_v49 = vadd.f32 %v4966_v63, %v2514_v18  ;;  %3740 = vst [vmem:[%s5577_s6 + $0x38] sm:$0xff] %v3732_v43 }
 0x6f9   : > { %2551 = vst [vmem:[#allocation2 + $0xf8] sm:$0xff] %v2535_v49 }
 0x6fe   : > { %v2517_v15 = vpop.f32.mrf.mxu2 }
 0x6ff   : > { %v2536_v50 = vadd.f32 %v4967_v7, %v2517_v15 }
 0x701   : > { %2552 = vst [vmem:[#allocation2 + $0x20] sm:$0xff] %v2536_v50 }
 0x706   : > { %v2519_v51 = vpop.f32.mrf.mxu2 }
 0x707   : > { %v2537_v25 = vadd.f32 %v4968_v33, %v2519_v51 }
 0x709   : > { %2553 = vst [vmem:[#allocation2 + $0x98] sm:$0xff] %v2537_v25 }
 0x70e   : > { %v3705_v39 = vpop.f32.mrf.mxu2 }
 0x70f   : > { %v3725_v4 = vadd.f32 %v3705_v39, %v7485_v23 }
 0x711   : > { %3733 = vst [vmem:[%s5577_s6] sm:$0xff] %v3725_v4 }
 0x716   : > { %v3707_v16 = vpop.f32.mrf.mxu2 }
 0x717   : > { %v3726_v27 = vadd.f32 %v3707_v16, %v7490_v56 }
 0x719   : > { %3734 = vst [vmem:[%s5577_s6 + $0x8] sm:$0xff] %v3726_v27 }
 0x71e   : > { %v3710_v45 = vpop.f32.mrf.mxu2 }
 0x71f   : > { %v3727_v2 = vadd.f32 %v3710_v45, %v7495_v58 }
 0x721   : > { %3735 = vst [vmem:[%s5577_s6 + $0x10] sm:$0xff] %v3727_v2 }
 0x726   : > { %v3712_v19 = vpop.f32.mrf.mxu2 }
 0x727   : > { %v3728_v48 = vadd.f32 %v3712_v19, %v7500_v52 }
 0x729   : > { %3736 = vst [vmem:[%s5577_s6 + $0x18] sm:$0xff] %v3728_v48 }
 0x72e   : > { %v3715_v23 = vpop.f32.mrf.mxu2 }
 0x72f   : > { %v3729_v56 = vadd.f32 %v3715_v23, %v7505_v38 }
 0x731   : > { %3737 = vst [vmem:[%s5577_s6 + $0x20] sm:$0xff] %v3729_v56 }
 0x736   : > { %v3717_v58 = vpop.f32.mrf.mxu2 }
 0x737   : > { %v3730_v52 = vadd.f32 %v3717_v58, %v7510_v40 }
 0x739   : > { %3738 = vst [vmem:[%s5577_s6 + $0x28] sm:$0xff] %v3730_v52 }
 0x73a   : > { %5236 = shalt.err (!%p5233_p13)
}
 0x73b   : > { %s5337_s22 = smov 128   ;;  %s5338_s6 = smov 8  }
 0x73c   : > { %4578 = dma.vmem_to_hbm [thread:$0]  (%p5522_p0), %s3757_s3, 1024, %s3759_s20, %s3742_s30, %s5337_s22, %s5337_s22, %s5338_s6  }
 0x73d PF: > { %p4625_p4 = scmp.ge.s32.totalorder %s5323_s12, 2  ;;  %s3773_s14 = sand.u32 1, %s5295_s27  }
 0x73e   : > { %s3774_s18 = scalar_lea.sflag [#allocation5], %s3773_s14 }
 0x73f   : > { %p4607_p5 = pnand %p4625_p4, %p5528_p2 }
 0x741   : > { %p4608_p6 = pneg %p4607_p5 }
 0x743   : > { %5290 = dma.done.wait (%p4608_p6), %s3774_s18, 1024  }
 0x744   : > { %5292 = vsyncadd (%p4608_p6), %s3774_s18, 4294966272  ;;  %s28_s12 = sadd.s32 1, %s5323_s12   ;;  %s8012_s1 = sld [smem:[#allocation25_spill]] }
 0x745   : > { %p25_p9 = scmp.ge.s32.totalorder %s28_s12, 10   ;;  %s8013_s27 = smov %s5299_s28 }
 0x746   : > { %s8014_s28 = smov %s5303_s29  ;;  %s8015_s29 = smov %s5538_s19 }
 0x747   : > { %s8016_s30 = smov %s5315_s10  ;;  %s8017_s9 = smov %s5319_s11 }
 0x748   : > { %s8018_s10 = smov %s8021_s8  ;;  %27 = sbr.rel (!%p25_p9) target bundleno = 20 (0x14), region = 130 }
 0x74a   : > { %s8019_s11 = smov %s8012_s1 }
 0x74d   :  { %3780 = vsyncpa [#allocation4], 1 }
 0x74e   :  { %3782 = vsyncpa [#allocation4 + $0x1], 1 }
 0x74f   :  { %3783 = vsyncpa [#allocation7], 1 }
 0x750   :  { %3784 = vsyncpa [#allocation10], 1 }
 0x751   :  { %3785 = vsyncpa [#allocation13], 1 }
 0x752   :  { %3786 = vsyncpa [#allocation16], 1 }
 0x753   :  { %3787 = vsyncpa [#allocation5], 1 }
 0x754   :  { %3789 = vsyncpa [#allocation5 + $0x1], 1 }

</bundles_post_ra>
